<compile_context>
chip_gen: v7x
topology: tpu7x:2x2x1
jax: 0.10.0
libtpu: 0.0.40
codegen_flags: <defaults>
</compile_context>

<pallas_src>
import jax
import jax.numpy as jnp
from jax.experimental import pallas as pl
from jax.experimental.pallas import tpu as pltpu

INPUT_DIM = 1280
H1, H2, H3 = 1024, 256, 128
HIDDEN_DIM = 64
OUTPUT_DIM = 2
CLS_PAD = 64                    # classifier padded to 64 output lanes
PACK_DIM = CLS_PAD + HIDDEN_DIM  # 128-lane packed output: [logits_pad | features]
LN_EPS = 1e-5


def _round_up(n, m):
    return (n + m - 1) // m * m


def _ln_relu_block(h_in_bf16, w_ref, b_ref, g_ref, beta_ref):
    """bf16 activations @ bf16 weights -> f32 acc, then LayerNorm -> ReLU in f32."""
    h = jnp.dot(h_in_bf16, w_ref[...], preferred_element_type=jnp.float32) + b_ref[...]
    d = h.shape[-1]
    inv_d = 1.0 / d
    s = jnp.sum(h, axis=-1, keepdims=True)
    s2 = jnp.sum(h * h, axis=-1, keepdims=True)
    mu = s * inv_d
    var = jnp.maximum(s2 * inv_d - mu * mu, 0.0)
    h = (h - mu) * jax.lax.rsqrt(var + LN_EPS)
    h = h * g_ref[...] + beta_ref[...]
    return jnp.maximum(h, 0.0)


def cobra_kernel(
    x_ref,
    w1_ref, b1_ref, g1_ref, be1_ref,
    w2_ref, b2_ref, g2_ref, be2_ref,
    w3_ref, b3_ref, g3_ref, be3_ref,
    w4_ref, b4_ref, g4_ref, be4_ref,
    wc_ref, bc_ref,
    out_ref,
):
    # In-kernel bf16 cast of the f32 input (hidden under the 1280x1024 MXU work).
    h = _ln_relu_block(x_ref[...].astype(jnp.bfloat16), w1_ref, b1_ref, g1_ref, be1_ref)  # (tb, 1024)
    h = _ln_relu_block(h.astype(jnp.bfloat16), w2_ref, b2_ref, g2_ref, be2_ref)           # (tb, 256)
    h = _ln_relu_block(h.astype(jnp.bfloat16), w3_ref, b3_ref, g3_ref, be3_ref)           # (tb, 128)
    h = _ln_relu_block(h.astype(jnp.bfloat16), w4_ref, b4_ref, g4_ref, be4_ref)           # (tb, 64) f32

    # Classifier against the (64, 64) zero-padded weight (cols 2..63 are zero).
    logits = jnp.dot(h.astype(jnp.bfloat16), wc_ref[...],
                     preferred_element_type=jnp.float32) + bc_ref[...]                    # (tb, 64)

    # Pack [logits_pad64 | features64] -> single lane-dense (tb, 128) store.
    out_ref[...] = jnp.concatenate([logits, h], axis=-1).astype(out_ref.dtype)


def cobra_forward(x, params, *, tile_b=256):
    """x: (B, INPUT_DIM) float32. Returns (logits (B, 2), features (B, 64))."""
    B, D = x.shape
    assert D == INPUT_DIM

    # Aim for >=2 grid steps (v7x megacore) while keeping the tile a multiple of
    # 16; the ragged last block needs no padding/copy (Pallas masks OOB rows).
    tb = min(tile_b, max(16, _round_up((B + 1) // 2, 16)))
    grid = (pl.cdiv(B, tb),)

    def row_spec(d):
        return pl.BlockSpec((tb, d), lambda i: (i, 0))

    def full_spec(shape):
        return pl.BlockSpec(shape, lambda i: (0,) * len(shape))

    in_specs = [row_spec(INPUT_DIM)]
    flat_params = []
    for (w, b, g, be) in params["blocks"]:
        in_specs += [full_spec(w.shape), full_spec(b.shape),
                     full_spec(g.shape), full_spec(be.shape)]
        flat_params += [w, b, g, be]

    wc_pad, bc_pad = params["classifier"]     # pre-padded (64, 64) bf16 / (1, 64) f32
    in_specs += [full_spec(wc_pad.shape), full_spec(bc_pad.shape)]
    flat_params += [wc_pad, bc_pad]

    grid_spec = pltpu.PrefetchScalarGridSpec(
        num_scalar_prefetch=0,
        grid=grid,
        in_specs=in_specs,
        out_specs=row_spec(PACK_DIM),
    )

    packed = pl.pallas_call(
        cobra_kernel,
        out_shape=jax.ShapeDtypeStruct((B, PACK_DIM), jnp.float32),
        grid_spec=grid_spec,
        compiler_params=pltpu.CompilerParams(
            dimension_semantics=("parallel",),
            vmem_limit_bytes=32 << 20,
        ),
    )(x, *flat_params)

    logits = packed[:, :OUTPUT_DIM]
    features = packed[:, CLS_PAD:]
    return logits, features


def init_params(key):
    """Deterministic synthetic init (PyTorch-style uniform +-1/sqrt(fan_in)).

    Linear weights are stored transposed (in_features, out_features) in bf16;
    biases / LayerNorm params are (1, D) f32. The classifier is pre-padded to
    64 output lanes here (hoisted out of the forward path).
    """
    dims = [(INPUT_DIM, H1), (H1, H2), (H2, H3), (H3, HIDDEN_DIM)]
    blocks = []
    keys = jax.random.split(key, len(dims) + 1)
    for k, (din, dout) in zip(keys[:-1], dims):
        kw, kb = jax.random.split(k)
        bound = 1.0 / jnp.sqrt(din)
        w = jax.random.uniform(kw, (din, dout), jnp.float32, -bound, bound).astype(jnp.bfloat16)
        b = jax.random.uniform(kb, (1, dout), jnp.float32, -bound, bound)
        gamma = jnp.ones((1, dout), jnp.float32)      # LayerNorm weight
        beta = jnp.zeros((1, dout), jnp.float32)      # LayerNorm bias
        blocks.append((w, b, gamma, beta))
    kw, kb = jax.random.split(keys[-1])
    bound = 1.0 / jnp.sqrt(HIDDEN_DIM)
    wc = jax.random.uniform(kw, (HIDDEN_DIM, OUTPUT_DIM), jnp.float32, -bound, bound).astype(jnp.bfloat16)
    bc = jax.random.uniform(kb, (1, OUTPUT_DIM), jnp.float32, -bound, bound)
    wc_pad = jnp.zeros((HIDDEN_DIM, CLS_PAD), jnp.bfloat16).at[:, :OUTPUT_DIM].set(wc)
    bc_pad = jnp.zeros((1, CLS_PAD), jnp.float32).at[:, :OUTPUT_DIM].set(bc)
    return {"blocks": blocks, "classifier": (wc_pad, bc_pad)}


def reference_forward(x, params):
    """Plain-JAX reference with the same bf16-matmul / f32-LN numerics."""
    h = x.astype(jnp.float32)
    for (w, b, g, be) in params["blocks"]:
        h = jnp.dot(h.astype(jnp.bfloat16), w, preferred_element_type=jnp.float32) + b
        mu = jnp.mean(h, axis=-1, keepdims=True)
        var = jnp.mean((h - mu) ** 2, axis=-1, keepdims=True)
        h = (h - mu) / jnp.sqrt(var + LN_EPS)
        h = h * g + be
        h = jnp.maximum(h, 0.0)
    wc_pad, bc_pad = params["classifier"]
    logits = jnp.dot(h.astype(jnp.bfloat16), wc_pad[:, :OUTPUT_DIM],
                     preferred_element_type=jnp.float32) + bc_pad[:, :OUTPUT_DIM]
    return logits, h


if __name__ == "__main__":
    key = jax.random.PRNGKey(0)
    kp, kx = jax.random.split(key)
    params = init_params(kp)

    # Small batch, deliberately not a multiple of the tile so the ragged last
    # block (masked OOB rows) and the 2-step grid path are both exercised.
    B = 24
    x = jax.random.normal(kx, (B, INPUT_DIM), jnp.float32)

    logits, features = cobra_forward(x, params)
    logits = jax.block_until_ready(logits)
    features = jax.block_until_ready(features)

    # sanity check against plain-JAX reference (bf16 matmuls -> looser tolerance)
    ref_logits, ref_features = reference_forward(x, params)
    assert logits.shape == (B, OUTPUT_DIM)
    assert features.shape == (B, HIDDEN_DIM)
    assert jnp.allclose(logits, ref_logits, atol=1e-2, rtol=1e-2)
    assert jnp.allclose(features, ref_features, atol=1e-2, rtol=1e-2)

    print("KERNEL_OK")
</pallas_src>

<mosaic_0001>
module attributes {stable_mosaic.version = 11 : i64} {
  func.func @cobra_kernel(%arg0: i32, %arg1: memref<16x1280xf32, #tpu.memory_space<vmem>>, %arg2: memref<1280x1024xbf16, #tpu.memory_space<vmem>>, %arg3: memref<1x1024xf32, #tpu.memory_space<vmem>>, %arg4: memref<1x1024xf32, #tpu.memory_space<vmem>>, %arg5: memref<1x1024xf32, #tpu.memory_space<vmem>>, %arg6: memref<1024x256xbf16, #tpu.memory_space<vmem>>, %arg7: memref<1x256xf32, #tpu.memory_space<vmem>>, %arg8: memref<1x256xf32, #tpu.memory_space<vmem>>, %arg9: memref<1x256xf32, #tpu.memory_space<vmem>>, %arg10: memref<256x128xbf16, #tpu.memory_space<vmem>>, %arg11: memref<1x128xf32, #tpu.memory_space<vmem>>, %arg12: memref<1x128xf32, #tpu.memory_space<vmem>>, %arg13: memref<1x128xf32, #tpu.memory_space<vmem>>, %arg14: memref<128x64xbf16, #tpu.memory_space<vmem>>, %arg15: memref<1x64xf32, #tpu.memory_space<vmem>>, %arg16: memref<1x64xf32, #tpu.memory_space<vmem>>, %arg17: memref<1x64xf32, #tpu.memory_space<vmem>>, %arg18: memref<64x64xbf16, #tpu.memory_space<vmem>>, %arg19: memref<1x64xf32, #tpu.memory_space<vmem>>, %arg20: memref<16x128xf32, #tpu.memory_space<vmem>>) attributes {dimension_semantics = [#tpu.dimension_semantics<parallel>], iteration_bounds = array<i64: 2>, scalar_prefetch = 0 : i64, scratch_operands = 0 : i64, tpu.core_type = #tpu.core_type<tc>, window_params = [{transform_indices = @transform_0, window_bounds = array<i64: 16, 1280>}, {pipeline_mode = #tpu.pipeline_mode<synchronous>, transform_indices = @transform_1, window_bounds = array<i64: 1280, 1024>}, {pipeline_mode = #tpu.pipeline_mode<synchronous>, transform_indices = @transform_2, window_bounds = array<i64: 1, 1024>}, {pipeline_mode = #tpu.pipeline_mode<synchronous>, transform_indices = @transform_3, window_bounds = array<i64: 1, 1024>}, {pipeline_mode = #tpu.pipeline_mode<synchronous>, transform_indices = @transform_4, window_bounds = array<i64: 1, 1024>}, {pipeline_mode = #tpu.pipeline_mode<synchronous>, transform_indices = @transform_5, window_bounds = array<i64: 1024, 256>}, {pipeline_mode = #tpu.pipeline_mode<synchronous>, transform_indices = @transform_6, window_bounds = array<i64: 1, 256>}, {pipeline_mode = #tpu.pipeline_mode<synchronous>, transform_indices = @transform_7, window_bounds = array<i64: 1, 256>}, {pipeline_mode = #tpu.pipeline_mode<synchronous>, transform_indices = @transform_8, window_bounds = array<i64: 1, 256>}, {pipeline_mode = #tpu.pipeline_mode<synchronous>, transform_indices = @transform_9, window_bounds = array<i64: 256, 128>}, {pipeline_mode = #tpu.pipeline_mode<synchronous>, transform_indices = @transform_10, window_bounds = array<i64: 1, 128>}, {pipeline_mode = #tpu.pipeline_mode<synchronous>, transform_indices = @transform_11, window_bounds = array<i64: 1, 128>}, {pipeline_mode = #tpu.pipeline_mode<synchronous>, transform_indices = @transform_12, window_bounds = array<i64: 1, 128>}, {pipeline_mode = #tpu.pipeline_mode<synchronous>, transform_indices = @transform_13, window_bounds = array<i64: 128, 64>}, {pipeline_mode = #tpu.pipeline_mode<synchronous>, transform_indices = @transform_14, window_bounds = array<i64: 1, 64>}, {pipeline_mode = #tpu.pipeline_mode<synchronous>, transform_indices = @transform_15, window_bounds = array<i64: 1, 64>}, {pipeline_mode = #tpu.pipeline_mode<synchronous>, transform_indices = @transform_16, window_bounds = array<i64: 1, 64>}, {pipeline_mode = #tpu.pipeline_mode<synchronous>, transform_indices = @transform_17, window_bounds = array<i64: 64, 64>}, {pipeline_mode = #tpu.pipeline_mode<synchronous>, transform_indices = @transform_18, window_bounds = array<i64: 1, 64>}, {transform_indices = @transform_19, window_bounds = array<i64: 16, 128>}]} {
    %c0 = arith.constant 0 : index
    %c0_0 = arith.constant 0 : index
    %0 = vector.load %arg1[%c0, %c0_0] : memref<16x1280xf32, #tpu.memory_space<vmem>>, vector<16x1280xf32>
    %1 = arith.truncf %0 : vector<16x1280xf32> to vector<16x1280xbf16>
    %c0_1 = arith.constant 0 : index
    %c0_2 = arith.constant 0 : index
    %2 = vector.load %arg2[%c0_1, %c0_2] : memref<1280x1024xbf16, #tpu.memory_space<vmem>>, vector<1280x1024xbf16>
    %cst = arith.constant dense<0.000000e+00> : vector<16x1024xf32>
    %3 = tpu.matmul %1, %2, %cst {dimension_numbers = #tpu.dot_dimension_numbers<[1], [0], [0], [1], [0, 0, 1, 1], [], []>} : vector<16x1280xbf16>, vector<1280x1024xbf16>, vector<16x1024xf32> -> vector<16x1024xf32>
    %c0_3 = arith.constant 0 : index
    %c0_4 = arith.constant 0 : index
    %4 = vector.load %arg3[%c0_3, %c0_4] : memref<1x1024xf32, #tpu.memory_space<vmem>>, vector<1x1024xf32>
    %5 = vector.broadcast %4 : vector<1x1024xf32> to vector<16x1024xf32>
    %6 = arith.addf %3, %5 : vector<16x1024xf32>
    %cst_5 = arith.constant dense<0.000000e+00> : vector<16xf32>
    %7 = vector.multi_reduction <add>, %6, %cst_5 [1] : vector<16x1024xf32> to vector<16xf32>
    %8 = vector.shape_cast %7 : vector<16xf32> to vector<16x1xf32>
    %9 = arith.mulf %6, %6 : vector<16x1024xf32>
    %cst_6 = arith.constant dense<0.000000e+00> : vector<16xf32>
    %10 = vector.multi_reduction <add>, %9, %cst_6 [1] : vector<16x1024xf32> to vector<16xf32>
    %11 = vector.shape_cast %10 : vector<16xf32> to vector<16x1xf32>
    %cst_7 = arith.constant 9.765625E-4 : f32
    %12 = vector.broadcast %cst_7 : f32 to vector<16x1xf32>
    %13 = arith.mulf %8, %12 : vector<16x1xf32>
    %cst_8 = arith.constant 9.765625E-4 : f32
    %14 = vector.broadcast %cst_8 : f32 to vector<16x1xf32>
    %15 = arith.mulf %11, %14 : vector<16x1xf32>
    %16 = arith.mulf %13, %13 : vector<16x1xf32>
    %17 = arith.subf %15, %16 : vector<16x1xf32>
    %cst_9 = arith.constant 0.000000e+00 : f32
    %18 = vector.broadcast %cst_9 : f32 to vector<16x1xf32>
    %19 = arith.maximumf %17, %18 : vector<16x1xf32>
    %20 = vector.broadcast %13 : vector<16x1xf32> to vector<16x1024xf32>
    %21 = arith.subf %6, %20 : vector<16x1024xf32>
    %cst_10 = arith.constant 9.99999974E-6 : f32
    %22 = vector.broadcast %cst_10 : f32 to vector<16x1xf32>
    %23 = arith.addf %19, %22 : vector<16x1xf32>
    %24 = math.rsqrt %23 : vector<16x1xf32>
    %25 = vector.broadcast %24 : vector<16x1xf32> to vector<16x1024xf32>
    %26 = arith.mulf %21, %25 : vector<16x1024xf32>
    %c0_11 = arith.constant 0 : index
    %c0_12 = arith.constant 0 : index
    %27 = vector.load %arg4[%c0_11, %c0_12] : memref<1x1024xf32, #tpu.memory_space<vmem>>, vector<1x1024xf32>
    %28 = vector.broadcast %27 : vector<1x1024xf32> to vector<16x1024xf32>
    %29 = arith.mulf %26, %28 : vector<16x1024xf32>
    %c0_13 = arith.constant 0 : index
    %c0_14 = arith.constant 0 : index
    %30 = vector.load %arg5[%c0_13, %c0_14] : memref<1x1024xf32, #tpu.memory_space<vmem>>, vector<1x1024xf32>
    %31 = vector.broadcast %30 : vector<1x1024xf32> to vector<16x1024xf32>
    %32 = arith.addf %29, %31 : vector<16x1024xf32>
    %cst_15 = arith.constant 0.000000e+00 : f32
    %33 = vector.broadcast %cst_15 : f32 to vector<16x1024xf32>
    %34 = arith.maximumf %32, %33 : vector<16x1024xf32>
    %35 = arith.truncf %34 : vector<16x1024xf32> to vector<16x1024xbf16>
    %c0_16 = arith.constant 0 : index
    %c0_17 = arith.constant 0 : index
    %36 = vector.load %arg6[%c0_16, %c0_17] : memref<1024x256xbf16, #tpu.memory_space<vmem>>, vector<1024x256xbf16>
    %cst_18 = arith.constant dense<0.000000e+00> : vector<16x256xf32>
    %37 = tpu.matmul %35, %36, %cst_18 {dimension_numbers = #tpu.dot_dimension_numbers<[1], [0], [0], [1], [0, 0, 1, 1], [], []>} : vector<16x1024xbf16>, vector<1024x256xbf16>, vector<16x256xf32> -> vector<16x256xf32>
    %c0_19 = arith.constant 0 : index
    %c0_20 = arith.constant 0 : index
    %38 = vector.load %arg7[%c0_19, %c0_20] : memref<1x256xf32, #tpu.memory_space<vmem>>, vector<1x256xf32>
    %39 = vector.broadcast %38 : vector<1x256xf32> to vector<16x256xf32>
    %40 = arith.addf %37, %39 : vector<16x256xf32>
    %cst_21 = arith.constant dense<0.000000e+00> : vector<16xf32>
    %41 = vector.multi_reduction <add>, %40, %cst_21 [1] : vector<16x256xf32> to vector<16xf32>
    %42 = vector.shape_cast %41 : vector<16xf32> to vector<16x1xf32>
    %43 = arith.mulf %40, %40 : vector<16x256xf32>
    %cst_22 = arith.constant dense<0.000000e+00> : vector<16xf32>
    %44 = vector.multi_reduction <add>, %43, %cst_22 [1] : vector<16x256xf32> to vector<16xf32>
    %45 = vector.shape_cast %44 : vector<16xf32> to vector<16x1xf32>
    %cst_23 = arith.constant 3.906250e-03 : f32
    %46 = vector.broadcast %cst_23 : f32 to vector<16x1xf32>
    %47 = arith.mulf %42, %46 : vector<16x1xf32>
    %cst_24 = arith.constant 3.906250e-03 : f32
    %48 = vector.broadcast %cst_24 : f32 to vector<16x1xf32>
    %49 = arith.mulf %45, %48 : vector<16x1xf32>
    %50 = arith.mulf %47, %47 : vector<16x1xf32>
    %51 = arith.subf %49, %50 : vector<16x1xf32>
    %cst_25 = arith.constant 0.000000e+00 : f32
    %52 = vector.broadcast %cst_25 : f32 to vector<16x1xf32>
    %53 = arith.maximumf %51, %52 : vector<16x1xf32>
    %54 = vector.broadcast %47 : vector<16x1xf32> to vector<16x256xf32>
    %55 = arith.subf %40, %54 : vector<16x256xf32>
    %cst_26 = arith.constant 9.99999974E-6 : f32
    %56 = vector.broadcast %cst_26 : f32 to vector<16x1xf32>
    %57 = arith.addf %53, %56 : vector<16x1xf32>
    %58 = math.rsqrt %57 : vector<16x1xf32>
    %59 = vector.broadcast %58 : vector<16x1xf32> to vector<16x256xf32>
    %60 = arith.mulf %55, %59 : vector<16x256xf32>
    %c0_27 = arith.constant 0 : index
    %c0_28 = arith.constant 0 : index
    %61 = vector.load %arg8[%c0_27, %c0_28] : memref<1x256xf32, #tpu.memory_space<vmem>>, vector<1x256xf32>
    %62 = vector.broadcast %61 : vector<1x256xf32> to vector<16x256xf32>
    %63 = arith.mulf %60, %62 : vector<16x256xf32>
    %c0_29 = arith.constant 0 : index
    %c0_30 = arith.constant 0 : index
    %64 = vector.load %arg9[%c0_29, %c0_30] : memref<1x256xf32, #tpu.memory_space<vmem>>, vector<1x256xf32>
    %65 = vector.broadcast %64 : vector<1x256xf32> to vector<16x256xf32>
    %66 = arith.addf %63, %65 : vector<16x256xf32>
    %cst_31 = arith.constant 0.000000e+00 : f32
    %67 = vector.broadcast %cst_31 : f32 to vector<16x256xf32>
    %68 = arith.maximumf %66, %67 : vector<16x256xf32>
    %69 = arith.truncf %68 : vector<16x256xf32> to vector<16x256xbf16>
    %c0_32 = arith.constant 0 : index
    %c0_33 = arith.constant 0 : index
    %70 = vector.load %arg10[%c0_32, %c0_33] : memref<256x128xbf16, #tpu.memory_space<vmem>>, vector<256x128xbf16>
    %cst_34 = arith.constant dense<0.000000e+00> : vector<16x128xf32>
    %71 = tpu.matmul %69, %70, %cst_34 {dimension_numbers = #tpu.dot_dimension_numbers<[1], [0], [0], [1], [0, 0, 1, 1], [], []>} : vector<16x256xbf16>, vector<256x128xbf16>, vector<16x128xf32> -> vector<16x128xf32>
    %c0_35 = arith.constant 0 : index
    %c0_36 = arith.constant 0 : index
    %72 = vector.load %arg11[%c0_35, %c0_36] : memref<1x128xf32, #tpu.memory_space<vmem>>, vector<1x128xf32>
    %73 = vector.broadcast %72 : vector<1x128xf32> to vector<16x128xf32>
    %74 = arith.addf %71, %73 : vector<16x128xf32>
    %cst_37 = arith.constant dense<0.000000e+00> : vector<16xf32>
    %75 = vector.multi_reduction <add>, %74, %cst_37 [1] : vector<16x128xf32> to vector<16xf32>
    %76 = vector.shape_cast %75 : vector<16xf32> to vector<16x1xf32>
    %77 = arith.mulf %74, %74 : vector<16x128xf32>
    %cst_38 = arith.constant dense<0.000000e+00> : vector<16xf32>
    %78 = vector.multi_reduction <add>, %77, %cst_38 [1] : vector<16x128xf32> to vector<16xf32>
    %79 = vector.shape_cast %78 : vector<16xf32> to vector<16x1xf32>
    %cst_39 = arith.constant 7.812500e-03 : f32
    %80 = vector.broadcast %cst_39 : f32 to vector<16x1xf32>
    %81 = arith.mulf %76, %80 : vector<16x1xf32>
    %cst_40 = arith.constant 7.812500e-03 : f32
    %82 = vector.broadcast %cst_40 : f32 to vector<16x1xf32>
    %83 = arith.mulf %79, %82 : vector<16x1xf32>
    %84 = arith.mulf %81, %81 : vector<16x1xf32>
    %85 = arith.subf %83, %84 : vector<16x1xf32>
    %cst_41 = arith.constant 0.000000e+00 : f32
    %86 = vector.broadcast %cst_41 : f32 to vector<16x1xf32>
    %87 = arith.maximumf %85, %86 : vector<16x1xf32>
    %88 = vector.broadcast %81 : vector<16x1xf32> to vector<16x128xf32>
    %89 = arith.subf %74, %88 : vector<16x128xf32>
    %cst_42 = arith.constant 9.99999974E-6 : f32
    %90 = vector.broadcast %cst_42 : f32 to vector<16x1xf32>
    %91 = arith.addf %87, %90 : vector<16x1xf32>
    %92 = math.rsqrt %91 : vector<16x1xf32>
    %93 = vector.broadcast %92 : vector<16x1xf32> to vector<16x128xf32>
    %94 = arith.mulf %89, %93 : vector<16x128xf32>
    %c0_43 = arith.constant 0 : index
    %c0_44 = arith.constant 0 : index
    %95 = vector.load %arg12[%c0_43, %c0_44] : memref<1x128xf32, #tpu.memory_space<vmem>>, vector<1x128xf32>
    %96 = vector.broadcast %95 : vector<1x128xf32> to vector<16x128xf32>
    %97 = arith.mulf %94, %96 : vector<16x128xf32>
    %c0_45 = arith.constant 0 : index
    %c0_46 = arith.constant 0 : index
    %98 = vector.load %arg13[%c0_45, %c0_46] : memref<1x128xf32, #tpu.memory_space<vmem>>, vector<1x128xf32>
    %99 = vector.broadcast %98 : vector<1x128xf32> to vector<16x128xf32>
    %100 = arith.addf %97, %99 : vector<16x128xf32>
    %cst_47 = arith.constant 0.000000e+00 : f32
    %101 = vector.broadcast %cst_47 : f32 to vector<16x128xf32>
    %102 = arith.maximumf %100, %101 : vector<16x128xf32>
    %103 = arith.truncf %102 : vector<16x128xf32> to vector<16x128xbf16>
    %c0_48 = arith.constant 0 : index
    %c0_49 = arith.constant 0 : index
    %104 = vector.load %arg14[%c0_48, %c0_49] : memref<128x64xbf16, #tpu.memory_space<vmem>>, vector<128x64xbf16>
    %cst_50 = arith.constant dense<0.000000e+00> : vector<16x64xf32>
    %105 = tpu.matmul %103, %104, %cst_50 {dimension_numbers = #tpu.dot_dimension_numbers<[1], [0], [0], [1], [0, 0, 1, 1], [], []>} : vector<16x128xbf16>, vector<128x64xbf16>, vector<16x64xf32> -> vector<16x64xf32>
    %c0_51 = arith.constant 0 : index
    %c0_52 = arith.constant 0 : index
    %106 = vector.load %arg15[%c0_51, %c0_52] : memref<1x64xf32, #tpu.memory_space<vmem>>, vector<1x64xf32>
    %107 = vector.broadcast %106 : vector<1x64xf32> to vector<16x64xf32>
    %108 = arith.addf %105, %107 : vector<16x64xf32>
    %cst_53 = arith.constant dense<0.000000e+00> : vector<16xf32>
    %109 = vector.multi_reduction <add>, %108, %cst_53 [1] : vector<16x64xf32> to vector<16xf32>
    %110 = vector.shape_cast %109 : vector<16xf32> to vector<16x1xf32>
    %111 = arith.mulf %108, %108 : vector<16x64xf32>
    %cst_54 = arith.constant dense<0.000000e+00> : vector<16xf32>
    %112 = vector.multi_reduction <add>, %111, %cst_54 [1] : vector<16x64xf32> to vector<16xf32>
    %113 = vector.shape_cast %112 : vector<16xf32> to vector<16x1xf32>
    %cst_55 = arith.constant 1.562500e-02 : f32
    %114 = vector.broadcast %cst_55 : f32 to vector<16x1xf32>
    %115 = arith.mulf %110, %114 : vector<16x1xf32>
    %cst_56 = arith.constant 1.562500e-02 : f32
    %116 = vector.broadcast %cst_56 : f32 to vector<16x1xf32>
    %117 = arith.mulf %113, %116 : vector<16x1xf32>
    %118 = arith.mulf %115, %115 : vector<16x1xf32>
    %119 = arith.subf %117, %118 : vector<16x1xf32>
    %cst_57 = arith.constant 0.000000e+00 : f32
    %120 = vector.broadcast %cst_57 : f32 to vector<16x1xf32>
    %121 = arith.maximumf %119, %120 : vector<16x1xf32>
    %122 = vector.broadcast %115 : vector<16x1xf32> to vector<16x64xf32>
    %123 = arith.subf %108, %122 : vector<16x64xf32>
    %cst_58 = arith.constant 9.99999974E-6 : f32
    %124 = vector.broadcast %cst_58 : f32 to vector<16x1xf32>
    %125 = arith.addf %121, %124 : vector<16x1xf32>
    %126 = math.rsqrt %125 : vector<16x1xf32>
    %127 = vector.broadcast %126 : vector<16x1xf32> to vector<16x64xf32>
    %128 = arith.mulf %123, %127 : vector<16x64xf32>
    %c0_59 = arith.constant 0 : index
    %c0_60 = arith.constant 0 : index
    %129 = vector.load %arg16[%c0_59, %c0_60] : memref<1x64xf32, #tpu.memory_space<vmem>>, vector<1x64xf32>
    %130 = vector.broadcast %129 : vector<1x64xf32> to vector<16x64xf32>
    %131 = arith.mulf %128, %130 : vector<16x64xf32>
    %c0_61 = arith.constant 0 : index
    %c0_62 = arith.constant 0 : index
    %132 = vector.load %arg17[%c0_61, %c0_62] : memref<1x64xf32, #tpu.memory_space<vmem>>, vector<1x64xf32>
    %133 = vector.broadcast %132 : vector<1x64xf32> to vector<16x64xf32>
    %134 = arith.addf %131, %133 : vector<16x64xf32>
    %cst_63 = arith.constant 0.000000e+00 : f32
    %135 = vector.broadcast %cst_63 : f32 to vector<16x64xf32>
    %136 = arith.maximumf %134, %135 : vector<16x64xf32>
    %137 = arith.truncf %136 : vector<16x64xf32> to vector<16x64xbf16>
    %c0_64 = arith.constant 0 : index
    %c0_65 = arith.constant 0 : index
    %138 = vector.load %arg18[%c0_64, %c0_65] : memref<64x64xbf16, #tpu.memory_space<vmem>>, vector<64x64xbf16>
    %cst_66 = arith.constant dense<0.000000e+00> : vector<16x64xf32>
    %139 = tpu.matmul %137, %138, %cst_66 {dimension_numbers = #tpu.dot_dimension_numbers<[1], [0], [0], [1], [0, 0, 1, 1], [], []>} : vector<16x64xbf16>, vector<64x64xbf16>, vector<16x64xf32> -> vector<16x64xf32>
    %c0_67 = arith.constant 0 : index
    %c0_68 = arith.constant 0 : index
    %140 = vector.load %arg19[%c0_67, %c0_68] : memref<1x64xf32, #tpu.memory_space<vmem>>, vector<1x64xf32>
    %141 = vector.broadcast %140 : vector<1x64xf32> to vector<16x64xf32>
    %142 = arith.addf %139, %141 : vector<16x64xf32>
    %143 = tpu.concatenate %142, %136 in 1 : vector<16x64xf32>, vector<16x64xf32> -> vector<16x128xf32>
    %c0_69 = arith.constant 0 : index
    %c0_70 = arith.constant 0 : index
    %144 = vector.load %arg20[%c0_69, %c0_70] : memref<16x128xf32, #tpu.memory_space<vmem>>, vector<16x128xf32>
    tpu.vector_store %arg20[%c0_69, %c0_70], %143 {strides = array<i32>} : memref<16x128xf32, #tpu.memory_space<vmem>>, vector<16x128xf32>,
    return
  }
  func.func @transform_0(%arg0: i32) -> (i32, i32) {
    %c0_i32 = arith.constant 0 : i32
    %c0_i32_0 = arith.constant 0 : i32
    return %arg0, %c0_i32 : i32, i32
  }
  func.func @transform_1(%arg0: i32) -> (i32, i32) {
    %c0_i32 = arith.constant 0 : i32
    %c0_i32_0 = arith.constant 0 : i32
    %c0_i32_1 = arith.constant 0 : i32
    return %c0_i32, %c0_i32_0 : i32, i32
  }
  func.func @transform_2(%arg0: i32) -> (i32, i32) {
    %c0_i32 = arith.constant 0 : i32
    %c0_i32_0 = arith.constant 0 : i32
    %c0_i32_1 = arith.constant 0 : i32
    return %c0_i32, %c0_i32_0 : i32, i32
  }
  func.func @transform_3(%arg0: i32) -> (i32, i32) {
    %c0_i32 = arith.constant 0 : i32
    %c0_i32_0 = arith.constant 0 : i32
    %c0_i32_1 = arith.constant 0 : i32
    return %c0_i32, %c0_i32_0 : i32, i32
  }
  func.func @transform_4(%arg0: i32) -> (i32, i32) {
    %c0_i32 = arith.constant 0 : i32
    %c0_i32_0 = arith.constant 0 : i32
    %c0_i32_1 = arith.constant 0 : i32
    return %c0_i32, %c0_i32_0 : i32, i32
  }
  func.func @transform_5(%arg0: i32) -> (i32, i32) {
    %c0_i32 = arith.constant 0 : i32
    %c0_i32_0 = arith.constant 0 : i32
    %c0_i32_1 = arith.constant 0 : i32
    return %c0_i32, %c0_i32_0 : i32, i32
  }
  func.func @transform_6(%arg0: i32) -> (i32, i32) {
    %c0_i32 = arith.constant 0 : i32
    %c0_i32_0 = arith.constant 0 : i32
    %c0_i32_1 = arith.constant 0 : i32
    return %c0_i32, %c0_i32_0 : i32, i32
  }
  func.func @transform_7(%arg0: i32) -> (i32, i32) {
    %c0_i32 = arith.constant 0 : i32
    %c0_i32_0 = arith.constant 0 : i32
    %c0_i32_1 = arith.constant 0 : i32
    return %c0_i32, %c0_i32_0 : i32, i32
  }
  func.func @transform_8(%arg0: i32) -> (i32, i32) {
    %c0_i32 = arith.constant 0 : i32
    %c0_i32_0 = arith.constant 0 : i32
    %c0_i32_1 = arith.constant 0 : i32
    return %c0_i32, %c0_i32_0 : i32, i32
  }
  func.func @transform_9(%arg0: i32) -> (i32, i32) {
    %c0_i32 = arith.constant 0 : i32
    %c0_i32_0 = arith.constant 0 : i32
    %c0_i32_1 = arith.constant 0 : i32
    return %c0_i32, %c0_i32_0 : i32, i32
  }
  func.func @transform_10(%arg0: i32) -> (i32, i32) {
    %c0_i32 = arith.constant 0 : i32
    %c0_i32_0 = arith.constant 0 : i32
    %c0_i32_1 = arith.constant 0 : i32
    return %c0_i32, %c0_i32_0 : i32, i32
  }
  func.func @transform_11(%arg0: i32) -> (i32, i32) {
    %c0_i32 = arith.constant 0 : i32
    %c0_i32_0 = arith.constant 0 : i32
    %c0_i32_1 = arith.constant 0 : i32
    return %c0_i32, %c0_i32_0 : i32, i32
  }
  func.func @transform_12(%arg0: i32) -> (i32, i32) {
    %c0_i32 = arith.constant 0 : i32
    %c0_i32_0 = arith.constant 0 : i32
    %c0_i32_1 = arith.constant 0 : i32
    return %c0_i32, %c0_i32_0 : i32, i32
  }
  func.func @transform_13(%arg0: i32) -> (i32, i32) {
    %c0_i32 = arith.constant 0 : i32
    %c0_i32_0 = arith.constant 0 : i32
    %c0_i32_1 = arith.constant 0 : i32
    return %c0_i32, %c0_i32_0 : i32, i32
  }
  func.func @transform_14(%arg0: i32) -> (i32, i32) {
    %c0_i32 = arith.constant 0 : i32
    %c0_i32_0 = arith.constant 0 : i32
    %c0_i32_1 = arith.constant 0 : i32
    return %c0_i32, %c0_i32_0 : i32, i32
  }
  func.func @transform_15(%arg0: i32) -> (i32, i32) {
    %c0_i32 = arith.constant 0 : i32
    %c0_i32_0 = arith.constant 0 : i32
    %c0_i32_1 = arith.constant 0 : i32
    return %c0_i32, %c0_i32_0 : i32, i32
  }
  func.func @transform_16(%arg0: i32) -> (i32, i32) {
    %c0_i32 = arith.constant 0 : i32
    %c0_i32_0 = arith.constant 0 : i32
    %c0_i32_1 = arith.constant 0 : i32
    return %c0_i32, %c0_i32_0 : i32, i32
  }
  func.func @transform_17(%arg0: i32) -> (i32, i32) {
    %c0_i32 = arith.constant 0 : i32
    %c0_i32_0 = arith.constant 0 : i32
    %c0_i32_1 = arith.constant 0 : i32
    return %c0_i32, %c0_i32_0 : i32, i32
  }
  func.func @transform_18(%arg0: i32) -> (i32, i32) {
    %c0_i32 = arith.constant 0 : i32
    %c0_i32_0 = arith.constant 0 : i32
    %c0_i32_1 = arith.constant 0 : i32
    return %c0_i32, %c0_i32_0 : i32, i32
  }
  func.func @transform_19(%arg0: i32) -> (i32, i32) {
    %c0_i32 = arith.constant 0 : i32
    %c0_i32_0 = arith.constant 0 : i32
    return %arg0, %c0_i32 : i32, i32
  }
}

</mosaic_0001>

<bundles_post_ra>
// kernel: tpu_custom_call.1
= control target key start
LH: loop header
LB: loop body
LE: loop exit
PB: predicated region body
PF: predicated region fallthrough
CT: control target
= control target key end

     0   :  { %s10877_s0 = inlined_call_operand.hbm [shape: f32[24,1280], index: 0, kind: input, shape index: {}]   ;;  %s10878_s1 = inlined_call_operand.hbm [shape: bf16[1280,1024], index: 1, kind: input, shape index: {}]   ;;  %s10879_s2 = inlined_call_operand.hbm [shape: f32[1,1024], index: 2, kind: input, shape index: {}]   ;;  %s10880_s3 = inlined_call_operand.hbm [shape: f32[1,1024], index: 3, kind: input, shape index: {}]   ;;  %s10881_s4 = inlined_call_operand.hbm [shape: f32[1,1024], index: 4, kind: input, shape index: {}]   ;;  %s10882_s5 = inlined_call_operand.hbm [shape: bf16[1024,256], index: 5, kind: input, shape index: {}]   ;;  %s10883_s6 = inlined_call_operand.hbm [shape: f32[1,256], index: 6, kind: input, shape index: {}]   ;;  %s10884_s7 = inlined_call_operand.hbm [shape: f32[1,256], index: 7, kind: input, shape index: {}]   ;;  %s10885_s8 = inlined_call_operand.hbm [shape: f32[1,256], index: 8, kind: input, shape index: {}]   ;;  %s10886_s9 = inlined_call_operand.hbm [shape: bf16[256,128], index: 9, kind: input, shape index: {}]   ;;  %s10887_s10 = inlined_call_operand.hbm [shape: f32[1,128], index: 10, kind: input, shape index: {}]   ;;  %s10888_s11 = inlined_call_operand.hbm [shape: f32[1,128], index: 11, kind: input, shape index: {}]   ;;  %s10889_s12 = inlined_call_operand.hbm [shape: f32[1,128], index: 12, kind: input, shape index: {}]   ;;  %s10890_s13 = inlined_call_operand.vmem [shape: bf16[128,64], index: 13, kind: input, shape index: {}]   ;;  %s10891_s14 = inlined_call_operand.hbm [shape: f32[1,64], index: 14, kind: input, shape index: {}]   ;;  %s10892_s15 = inlined_call_operand.hbm [shape: f32[1,64], index: 15, kind: input, shape index: {}]   ;;  %s10893_s16 = inlined_call_operand.hbm [shape: f32[1,64], index: 16, kind: input, shape index: {}]   ;;  %s10894_s17 = inlined_call_operand.hbm [shape: bf16[64,64], index: 17, kind: input, shape index: {}]   ;;  %s10895_s18 = inlined_call_operand.hbm [shape: f32[1,64], index: 18, kind: input, shape index: {}]   ;;  %s10896_s19 = inlined_call_operand.hbm [shape: f32[24,128], index: 19, kind: output, shape index: {}]  }
   0x1   :  { %10926 = sst [smem:[#allocation55_spill]] %s10877_s0 }
   0x2   :  { %10927 = sst [smem:[#allocation56_spill]] %s10878_s1 }
   0x3   :  { %10928 = sst [smem:[#allocation57_spill]] %s10879_s2 }
   0x4   :  { %10929 = sst [smem:[#allocation58_spill]] %s10880_s3 }
   0x5   :  { %10930 = sst [smem:[#allocation59_spill]] %s10881_s4 }
   0x6   :  { %10931 = sst [smem:[#allocation60_spill]] %s10890_s13 }
   0x7   :  { %10932 = sst [smem:[#allocation61_spill]] %s10895_s18 }
   0x8   :  { %10933 = sst [smem:[#allocation62_spill]] %s10896_s19 }
   0x9   :  { %24 = vsyncpa [#allocation3], 0 }
   0xa   :  { %26 = vsyncpa [#allocation3 + $0x1], 0 }
   0xb   :  { %27 = vsyncpa [#allocation6], 0 }
   0xc   :  { %28 = vsyncpa [#allocation9], 0 }
   0xd   :  { %29 = vsyncpa [#allocation12], 0 }
   0xe   :  { %30 = vsyncpa [#allocation15], 0 }
   0xf   :  { %31 = vsyncpa [#allocation18], 0 }
  0x10   :  { %32 = vsyncpa [#allocation21], 0 }
  0x11   :  { %33 = vsyncpa [#allocation24], 0 }
  0x12   :  { %34 = vsyncpa [#allocation27], 0 }
  0x13   :  { %35 = vsyncpa [#allocation30], 0 }
  0x14   :  { %36 = vsyncpa [#allocation4], 0 }
  0x15   :  { %38 = vsyncpa [#allocation4 + $0x1], 0  ;;  %s9868_s0 = smov 0   ;;  %s9870_s30 = smov 0  }
  0x16   :  { %s9872_s20 = smov 0   ;;  %s9874_s21 = smov 0  }
  0x17 LB: > { %10934 = sst [smem:[#allocation43_spill]] %s9722_s0  ;;  %s9889_s1 = sadd.s32 4294967295, %s9734_s21   ;;  %s9734_s21 = sphi %s9874_s21, %s11001_s21   ;;  %s9730_s20 = sphi %s9872_s20, %s11004_s20   ;;  %s9726_s30 = sphi %s9870_s30, %s11003_s30   ;;  %s9722_s0 = sphi %s9868_s0, %s11002_s0  }
  0x18   : > { %10935 = sst [smem:[#allocation44_spill]] %s9726_s30  ;;  %s7641_s22 = sadd.s32 4294967294, %s9734_s21  }
  0x19   : > { %10936 = sst [smem:[#allocation45_spill]] %s9730_s20  ;;  %s9893_s2 = sadd.s32 1, %s9734_s21  }
  0x1a   : > { %10937 = sst [smem:[#allocation46_spill]] %s9734_s21  ;;  %s51_s23 = sadd.s32 1, %s9730_s20 }
  0x1b   : > { %10938 = sst [smem:[#allocation47_spill]] %s9889_s1  ;;  %s48_s24 = ssub.s32 %s9734_s21, %s9893_s2 }
  0x1c   : > { %10939 = sst [smem:[#allocation48_spill]] %s9893_s2  ;;  %p58_p0 = scmp.ne.s32.totalorder %s9730_s20, %s9726_s30 }
  0x1d   : > { %p49_p1 = scmp.eq.s32.totalorder %s48_s24, 0  ;;  %p59_p2 = scmp.eq.s32.totalorder %s9734_s21, 0 }
  0x1e   : > { %p64_p3 = scmp.ne.s32.totalorder %s9726_s30, %s9722_s0  ;;  %p10913_p4 = scmp.eq.s32.totalorder %s9889_s1, 0 }
  0x1f   : > { %s9905_s25 = scalar_select %p49_p1, %s9730_s20, %s51_s23  }
  0x20   : > { %p9907_p5 = por %p59_p2, %p58_p0  ;;  %p9913_p6 = por %p10913_p4, %p64_p3 }
  0x21   : > { %10940 = sst [smem:[#allocation49_spill]] %s9905_s25  ;;  %p466_p7 = scmp.eq.s32.totalorder %s9889_s1, 1 }
  0x22   : > { %s10941_s3 = scalar_select %p9907_p5, 1, 0 }
  0x23   : > { %s10943_s26 = scalar_select %p9913_p6, 1, 0 }
  0x24   : > { %10942 = sst [smem:[#allocation50_spill]] %s10941_s3  ;;  %p472_p8 = scmp.eq.s32.totalorder %s7641_s22, 1 }
  0x25   : > { %10944 = sst [smem:[#allocation51_spill]] %s10943_s26  ;;  %p7642_p9 = scmp.ge.s32.totalorder %s9734_s21, 1 }
  0x26   : > { %p479_p10 = scmp.lt.s32.totalorder %s9734_s21, 3  ;;  %p9920_p11 = por %p466_p7, %p58_p0 }
  0x27   : > { %p9924_p12 = por %p472_p8, %p64_p3  ;;  %s9736_s23 = smov [#allocation5]  }
  0x28   : > { %s10945_s27 = scalar_select %p9920_p11, 1, 0 }
  0x29   : > { %s10947_s28 = scalar_select %p9924_p12, 1, 0 }
  0x2a   : > { %10946 = sst [smem:[#allocation52_spill]] %s10945_s27  ;;  %p9928_p13 = pnand %p7642_p9, %p479_p10 }
  0x2b   : > { %10948 = sst [smem:[#allocation53_spill]] %s10947_s28  ;;  %s491_s24 = sshll.u32 %s9736_s23, 4  ;;  %s492_s24 = int_to_ptr.vmem [resolvable:$true] %s491_s24 }
  0x2c   : > { %s10949_s29 = scalar_select %p9928_p13, 1, 0 }
  0x2d   : > { %p8738_p1 = pneg %p9928_p13  ;;  %s9737_s25 = smov [#allocation8]  }
  0x2e   : > { %10950 = sst [smem:[#allocation54_spill]] %s10949_s29  ;;  %s516_s2 = sshll.u32 %s9737_s25, 4  ;;  %s9940_s2 = int_to_ptr.vmem [resolvable:$true] %s516_s2 }
  0x2f   : > { %p9936_p2 = pnand %p8738_p1, %p10913_p4  ;;  %s10952_s19 = sld [smem:[#allocation56_spill]] }
  0x31   : > { %p9950_p3 = pneg %p9936_p2 }
  0x35   : > { %s9128_s27 = scalar_lea.hbm %s10952_s19, 81920 }
  0x36   : > { %p9129_p0 = scmp.ne.s32.totalorder %s10952_s19, %s9128_s27  ;;  %p9135_p9 = scmp.lt.u32.totalorder %s9128_s27, %s10952_s19 }
  0x38   : > { %p9131_p7 = pnand %p9950_p3, %p9129_p0 }
  0x3a   : > { %p9132_p8 = pneg %p9131_p7 }
  0x3c   : > { %p9137_p10 = pnand %p9135_p9, %p9132_p8 }
  0x3e   : > { %9140 = shalt.err (!%p9137_p10)
}
  0x3f   : > { %s9141_s0 = scalar_lea.vmem %s492_s24, 81920  ;;  %p9149_p11 = scmp.lt.s32.totalorder %s492_s24, %s492_s24 }
  0x40   : > { %p9142_p1 = scmp.ne.s32.totalorder %s492_s24, %s9141_s0  ;;  %p9150_p6 = scmp.lt.s32.totalorder %s9141_s0, %s9141_s0 }
  0x42   : > { %p9144_p4 = pnand %p9142_p1, %p9950_p3  ;;  %p9151_p13 = por %p9150_p6, %p9149_p11 }
  0x44   : > { %p9145_p12 = pneg %p9144_p4 }
  0x46   : > { %p9152_p5 = pnand %p9151_p13, %p9145_p12 }
  0x48   : > { %9155 = shalt.err (!%p9152_p5)
}
  0x49   : > { %s9738_s13 = smov 512   ;;  %s9739_s26 = smov 32  }
  0x4a   : > { %8741 = dma.hbm_to_vmem [thread:$0]  (!%p9936_p2), %s10952_s19, 81920, %s492_s24, [#allocation6], %s9738_s13, %s9738_s13, %s9739_s26  }
  0x4b   : > { %s10954_s30 = sld [smem:[#allocation58_spill]] }
  0x51   : > { %s10955_s29 = smov %s10954_s30  ;;  %s9156_s20 = scalar_lea.hbm %s10954_s30, 128 }
  0x52   : > { %p9157_p4 = scmp.ne.s32.totalorder %s10955_s29, %s9156_s20  ;;  %p9163_p11 = scmp.lt.u32.totalorder %s9156_s20, %s10955_s29 }
  0x54   : > { %p9159_p6 = pnand %p9157_p4, %p9950_p3 }
  0x56   : > { %p9160_p5 = pneg %p9159_p6 }
  0x58   : > { %p9165_p12 = pnand %p9163_p11, %p9160_p5 }
  0x5a   : > { %9168 = shalt.err (!%p9165_p12)
}
  0x5b   : > { %s9169_s24 = scalar_lea.vmem %s9940_s2, 128  ;;  %p9177_p8 = scmp.lt.s32.totalorder %s9940_s2, %s9940_s2 }
  0x5c   : > { %p9170_p13 = scmp.ne.s32.totalorder %s9940_s2, %s9169_s24  ;;  %p9178_p9 = scmp.lt.s32.totalorder %s9169_s24, %s9169_s24 }
  0x5e   : > { %p9172_p0 = pnand %p9170_p13, %p9950_p3  ;;  %p9179_p10 = por %p9178_p9, %p9177_p8 }
  0x60   : > { %p9173_p7 = pneg %p9172_p0 }
  0x62   : > { %p9180_p1 = pnand %p9179_p10, %p9173_p7 }
  0x64   : > { %9183 = shalt.err (!%p9180_p1)
}
  0x65   : > { %8747 = dma.hbm_to_vmem [thread:$0]  (!%p9936_p2), %s10955_s29, 128, %s9940_s2, [#allocation9]  }
  0x66   : > { %s9740_s20 = smov [#allocation11]   ;;  %s9184_s26 = scalar_lea.hbm %s10882_s5, 16384 }
  0x67   : > { %s537_s21 = sshll.u32 %s9740_s20, 4  ;;  %p9185_p4 = scmp.ne.s32.totalorder %s10882_s5, %s9184_s26  ;;  %s538_s21 = int_to_ptr.vmem [resolvable:$true] %s537_s21 }
  0x68   : > { %p9191_p11 = scmp.lt.u32.totalorder %s9184_s26, %s10882_s5 }
  0x69   : > { %p9187_p6 = pnand %p9185_p4, %p9950_p3 }
  0x6b   : > { %p9188_p5 = pneg %p9187_p6 }
  0x6d   : > { %p9193_p12 = pnand %p9191_p11, %p9188_p5 }
  0x6f   : > { %9196 = shalt.err (!%p9193_p12)
}
  0x70   : > { %s9197_s2 = scalar_lea.vmem %s538_s21, 16384  ;;  %p9205_p8 = scmp.lt.s32.totalorder %s538_s21, %s538_s21 }
  0x71   : > { %p9198_p13 = scmp.ne.s32.totalorder %s538_s21, %s9197_s2  ;;  %p9206_p9 = scmp.lt.s32.totalorder %s9197_s2, %s9197_s2 }
  0x73   : > { %p9200_p0 = pnand %p9198_p13, %p9950_p3  ;;  %p9207_p10 = por %p9206_p9, %p9205_p8 }
  0x75   : > { %p9201_p7 = pneg %p9200_p0 }
  0x77   : > { %p9208_p1 = pnand %p9207_p10, %p9201_p7 }
  0x79   : > { %9211 = shalt.err (!%p9208_p1)
}
  0x7a   : > { %s9741_s0 = smov 128   ;;  %s9742_s24 = smov 8  }
  0x7b   : > { %8753 = dma.hbm_to_vmem [thread:$0]  (!%p9936_p2), %s10882_s5, 16384, %s538_s21, [#allocation12], %s9741_s0, %s9741_s0, %s9742_s24  }
  0x7c   : > { %s9743_s20 = smov [#allocation14]   ;;  %s9744_s13 = smov [#allocation17]  }
  0x7d   : > { %s562_s3 = sshll.u32 %s9743_s20, 4  ;;  %s583_s26 = sshll.u32 %s9744_s13, 4  ;;  %s563_s3 = int_to_ptr.vmem [resolvable:$true] %s562_s3  ;;  %s10007_s26 = int_to_ptr.vmem [resolvable:$true] %s583_s26 }
  0x7e   : > { %s9212_s28 = scalar_lea.hbm %s10884_s7, 32 }
  0x7f   : > { %p9213_p4 = scmp.ne.s32.totalorder %s10884_s7, %s9212_s28  ;;  %p9219_p11 = scmp.lt.u32.totalorder %s9212_s28, %s10884_s7 }
  0x81   : > { %p9215_p6 = pnand %p9213_p4, %p9950_p3 }
  0x83   : > { %p9216_p5 = pneg %p9215_p6 }
  0x85   : > { %p9221_p12 = pnand %p9219_p11, %p9216_p5 }
  0x87   : > { %9224 = shalt.err (!%p9221_p12)
}
  0x88   : > { %s9225_s0 = scalar_lea.vmem %s563_s3, 32  ;;  %p9233_p8 = scmp.lt.s32.totalorder %s563_s3, %s563_s3 }
  0x89   : > { %p9226_p13 = scmp.ne.s32.totalorder %s563_s3, %s9225_s0  ;;  %p9234_p9 = scmp.lt.s32.totalorder %s9225_s0, %s9225_s0 }
  0x8b   : > { %p9228_p0 = pnand %p9226_p13, %p9950_p3  ;;  %p9235_p10 = por %p9234_p9, %p9233_p8 }
  0x8d   : > { %p9229_p7 = pneg %p9228_p0 }
  0x8f   : > { %p9236_p1 = pnand %p9235_p10, %p9229_p7 }
  0x91   : > { %9239 = shalt.err (!%p9236_p1)
}
  0x92   : > { %8759 = dma.hbm_to_vmem [thread:$0]  (!%p9936_p2), %s10884_s7, 32, %s563_s3, [#allocation15]  }
  0x93   : > { %s9240_s1 = scalar_lea.hbm %s10886_s9, 2048 }
  0x94   : > { %p9241_p4 = scmp.ne.s32.totalorder %s10886_s9, %s9240_s1  ;;  %p9247_p11 = scmp.lt.u32.totalorder %s9240_s1, %s10886_s9 }
  0x96   : > { %p9243_p6 = pnand %p9241_p4, %p9950_p3 }
  0x98   : > { %p9244_p5 = pneg %p9243_p6 }
  0x9a   : > { %p9249_p12 = pnand %p9247_p11, %p9244_p5 }
  0x9c   : > { %9252 = shalt.err (!%p9249_p12)
}
  0x9d   : > { %s9253_s3 = scalar_lea.vmem %s10007_s26, 2048  ;;  %p9261_p8 = scmp.lt.s32.totalorder %s10007_s26, %s10007_s26 }
  0x9e   : > { %p9254_p13 = scmp.ne.s32.totalorder %s10007_s26, %s9253_s3  ;;  %p9262_p9 = scmp.lt.s32.totalorder %s9253_s3, %s9253_s3 }
  0xa0   : > { %p9256_p0 = pnand %p9254_p13, %p9950_p3  ;;  %p9263_p10 = por %p9262_p9, %p9261_p8 }
  0xa2   : > { %p9257_p7 = pneg %p9256_p0 }
  0xa4   : > { %p9264_p1 = pnand %p9263_p10, %p9257_p7 }
  0xa6   : > { %9267 = shalt.err (!%p9264_p1)
}
  0xa7   : > { %s10924_s18 = smov 64   ;;  %s9746_s21 = smov 4  }
  0xa8   : > { %8765 = dma.hbm_to_vmem [thread:$0]  (!%p9936_p2), %s10886_s9, 2048, %s10007_s26, [#allocation18], %s10924_s18, %s10924_s18, %s9746_s21  }
  0xa9   : > { %s9747_s30 = smov [#allocation20]   ;;  %s9748_s13 = smov [#allocation23]  }
  0xaa   : > { %s608_s20 = sshll.u32 %s9747_s30, 4  ;;  %s633_s1 = sshll.u32 %s9748_s13, 4  ;;  %s609_s20 = int_to_ptr.vmem [resolvable:$true] %s608_s20  ;;  %s10053_s1 = int_to_ptr.vmem [resolvable:$true] %s633_s1 }
  0xab   : > { %s9268_s25 = scalar_lea.hbm %s10888_s11, 16 }
  0xac   : > { %p9269_p4 = scmp.ne.s32.totalorder %s10888_s11, %s9268_s25  ;;  %p9275_p11 = scmp.lt.u32.totalorder %s9268_s25, %s10888_s11 }
  0xae   : > { %p9271_p6 = pnand %p9269_p4, %p9950_p3 }
  0xb0   : > { %p9272_p5 = pneg %p9271_p6 }
  0xb2   : > { %p9277_p12 = pnand %p9275_p11, %p9272_p5 }
  0xb4   : > { %9280 = shalt.err (!%p9277_p12)
}
  0xb5   : > { %s9281_s24 = scalar_lea.vmem %s609_s20, 16  ;;  %s9288_s30 = scalar_lea.vmem %s609_s20, 32 }
  0xb6   : > { %p9282_p13 = scmp.ne.s32.totalorder %s609_s20, %s9281_s24  ;;  %p9289_p8 = scmp.lt.s32.totalorder %s609_s20, %s609_s20 }
  0xb7   : > { %p9290_p9 = scmp.lt.s32.totalorder %s9288_s30, %s9281_s24 }
  0xb8   : > { %p9284_p0 = pnand %p9282_p13, %p9950_p3 }
  0xb9   : > { %p9291_p10 = por %p9290_p9, %p9289_p8 }
  0xba   : > { %p9285_p7 = pneg %p9284_p0 }
  0xbc   : > { %p9292_p1 = pnand %p9291_p10, %p9285_p7 }
  0xbe   : > { %9295 = shalt.err (!%p9292_p1)
}
  0xbf   : > { %8771 = dma.hbm_to_vmem [thread:$0]  (!%p9936_p2), %s10888_s11, 16, %s609_s20, [#allocation21]  }
  0xc0   : > { %s9296_s2 = scalar_lea.hbm %s10891_s14, 16 }
  0xc1   : > { %p9297_p4 = scmp.ne.s32.totalorder %s10891_s14, %s9296_s2  ;;  %p9303_p11 = scmp.lt.u32.totalorder %s9296_s2, %s10891_s14 }
  0xc3   : > { %p9299_p6 = pnand %p9297_p4, %p9950_p3 }
  0xc5   : > { %p9300_p5 = pneg %p9299_p6 }
  0xc7   : > { %p9305_p12 = pnand %p9303_p11, %p9300_p5 }
  0xc9   : > { %9308 = shalt.err (!%p9305_p12)
}
  0xca   : > { %s9309_s20 = scalar_lea.vmem %s10053_s1, 16  ;;  %s9316_s30 = scalar_lea.vmem %s10053_s1, 32 }
  0xcb   : > { %p9310_p13 = scmp.ne.s32.totalorder %s10053_s1, %s9309_s20  ;;  %p9317_p8 = scmp.lt.s32.totalorder %s10053_s1, %s10053_s1 }
  0xcc   : > { %p9318_p9 = scmp.lt.s32.totalorder %s9316_s30, %s9309_s20 }
  0xcd   : > { %p9312_p0 = pnand %p9310_p13, %p9950_p3 }
  0xce   : > { %p9319_p10 = por %p9318_p9, %p9317_p8 }
  0xcf   : > { %p9313_p7 = pneg %p9312_p0 }
  0xd1   : > { %p9320_p1 = pnand %p9319_p10, %p9313_p7 }
  0xd3   : > { %9323 = shalt.err (!%p9320_p1)
}
  0xd4   : > { %8777 = dma.hbm_to_vmem [thread:$0]  (!%p9936_p2), %s10891_s14, 16, %s10053_s1, [#allocation24]  }
  0xd5   : > { %s9749_s28 = smov [#allocation26]   ;;  %s9750_s2 = smov [#allocation7]  }
  0xd6   : > { %s655_s25 = sshll.u32 %s9749_s28, 4  ;;  %s505_s3 = sshll.u32 %s9750_s2, 4  ;;  %s656_s25 = int_to_ptr.vmem [resolvable:$true] %s655_s25  ;;  %s10097_s3 = int_to_ptr.vmem [resolvable:$true] %s505_s3 }
  0xd7   : > { %s9324_s24 = scalar_lea.hbm %s10893_s16, 16 }
  0xd8   : > { %p9325_p4 = scmp.ne.s32.totalorder %s10893_s16, %s9324_s24  ;;  %p9331_p11 = scmp.lt.u32.totalorder %s9324_s24, %s10893_s16 }
  0xda   : > { %p9327_p6 = pnand %p9325_p4, %p9950_p3 }
  0xdc   : > { %p9328_p5 = pneg %p9327_p6 }
  0xde   : > { %p9333_p12 = pnand %p9331_p11, %p9328_p5 }
  0xe0   : > { %9336 = shalt.err (!%p9333_p12)
}
  0xe1   : > { %s9337_s27 = scalar_lea.vmem %s656_s25, 16  ;;  %s9344_s28 = scalar_lea.vmem %s656_s25, 32 }
  0xe2   : > { %p9338_p13 = scmp.ne.s32.totalorder %s656_s25, %s9337_s27  ;;  %p9345_p8 = scmp.lt.s32.totalorder %s656_s25, %s656_s25 }
  0xe3   : > { %p9346_p9 = scmp.lt.s32.totalorder %s9344_s28, %s9337_s27 }
  0xe4   : > { %p9340_p0 = pnand %p9338_p13, %p9950_p3 }
  0xe5   : > { %p9347_p10 = por %p9346_p9, %p9345_p8 }
  0xe6   : > { %p9341_p7 = pneg %p9340_p0 }
  0xe8   : > { %p9348_p1 = pnand %p9347_p10, %p9341_p7 }
  0xea   : > { %9351 = shalt.err (!%p9348_p1)
}
  0xeb   : > { %8783 = dma.hbm_to_vmem [thread:$0]  (!%p9936_p2), %s10893_s16, 16, %s656_s25, [#allocation27]  }
  0xec   : > { %s10956_s20 = sld [smem:[#allocation57_spill]] }
  0xf2   : > { %s10957_s13 = smov %s10956_s20  ;;  %s9352_s30 = scalar_lea.hbm %s10956_s20, 128 }
  0xf3   : > { %p9353_p4 = scmp.ne.s32.totalorder %s10957_s13, %s9352_s30  ;;  %p9359_p11 = scmp.lt.u32.totalorder %s9352_s30, %s10957_s13 }
  0xf5   : > { %p9355_p6 = pnand %p9353_p4, %p9950_p3 }
  0xf7   : > { %p9356_p5 = pneg %p9355_p6 }
  0xf9   : > { %p9361_p12 = pnand %p9359_p11, %p9356_p5 }
  0xfb   : > { %9364 = shalt.err (!%p9361_p12)
}
  0xfc   : > { %s9365_s25 = scalar_lea.vmem %s10097_s3, 128  ;;  %p9373_p8 = scmp.lt.s32.totalorder %s10097_s3, %s10097_s3 }
  0xfd   : > { %p9366_p13 = scmp.ne.s32.totalorder %s10097_s3, %s9365_s25  ;;  %p9374_p9 = scmp.lt.s32.totalorder %s9365_s25, %s9365_s25 }
  0xff   : > { %p9368_p0 = pnand %p9366_p13, %p9950_p3  ;;  %p9375_p10 = por %p9374_p9, %p9373_p8 }
 0x101   : > { %p9369_p7 = pneg %p9368_p0 }
 0x103   : > { %p9376_p1 = pnand %p9375_p10, %p9369_p7 }
 0x105   : > { %9379 = shalt.err (!%p9376_p1)
}
 0x106   : > { %8744 = dma.hbm_to_vmem [thread:$0]  (!%p9936_p2), %s10957_s13, 128, %s10097_s3, [#allocation6]  }
 0x107   : > { %s9751_s0 = smov [#allocation10]   ;;  %s9752_s24 = smov [#allocation13]  }
 0x108   : > { %s527_s26 = sshll.u32 %s9751_s0, 4  ;;  %s551_s20 = sshll.u32 %s9752_s24, 4  ;;  %s528_s26 = int_to_ptr.vmem [resolvable:$true] %s527_s26  ;;  %s10140_s20 = int_to_ptr.vmem [resolvable:$true] %s551_s20 }
 0x109   : > { %s10958_s4 = sld [smem:[#allocation59_spill]] }
 0x10f   : > { %s9380_s27 = scalar_lea.hbm %s10958_s4, 128 }
 0x110   : > { %p9381_p4 = scmp.ne.s32.totalorder %s10958_s4, %s9380_s27  ;;  %p9387_p11 = scmp.lt.u32.totalorder %s9380_s27, %s10958_s4 }
 0x112   : > { %p9383_p6 = pnand %p9381_p4, %p9950_p3 }
 0x114   : > { %p9384_p5 = pneg %p9383_p6 }
 0x116   : > { %p9389_p12 = pnand %p9387_p11, %p9384_p5 }
 0x118   : > { %9392 = shalt.err (!%p9389_p12)
}
 0x119   : > { %s9393_s2 = scalar_lea.vmem %s528_s26, 128  ;;  %p9401_p8 = scmp.lt.s32.totalorder %s528_s26, %s528_s26 }
 0x11a   : > { %p9394_p13 = scmp.ne.s32.totalorder %s528_s26, %s9393_s2  ;;  %p9402_p9 = scmp.lt.s32.totalorder %s9393_s2, %s9393_s2 }
 0x11c   : > { %p9396_p0 = pnand %p9394_p13, %p9950_p3  ;;  %p9403_p10 = por %p9402_p9, %p9401_p8 }
 0x11e   : > { %p9397_p7 = pneg %p9396_p0 }
 0x120   : > { %p9404_p1 = pnand %p9403_p10, %p9397_p7 }
 0x122   : > { %9407 = shalt.err (!%p9404_p1)
}
 0x123   : > { %8750 = dma.hbm_to_vmem [thread:$0]  (!%p9936_p2), %s10958_s4, 128, %s528_s26, [#allocation9]  }
 0x124   : > { %s9408_s27 = scalar_lea.hbm %s10883_s6, 32 }
 0x125   : > { %p9409_p4 = scmp.ne.s32.totalorder %s10883_s6, %s9408_s27  ;;  %p9415_p11 = scmp.lt.u32.totalorder %s9408_s27, %s10883_s6 }
 0x127   : > { %p9411_p6 = pnand %p9409_p4, %p9950_p3 }
 0x129   : > { %p9412_p5 = pneg %p9411_p6 }
 0x12b   : > { %p9417_p12 = pnand %p9415_p11, %p9412_p5 }
 0x12d   : > { %9420 = shalt.err (!%p9417_p12)
}
 0x12e   : > { %s9421_s26 = scalar_lea.vmem %s10140_s20, 32  ;;  %p9429_p8 = scmp.lt.s32.totalorder %s10140_s20, %s10140_s20 }
 0x12f   : > { %p9422_p13 = scmp.ne.s32.totalorder %s10140_s20, %s9421_s26  ;;  %p9430_p9 = scmp.lt.s32.totalorder %s9421_s26, %s9421_s26 }
 0x131   : > { %p9424_p0 = pnand %p9422_p13, %p9950_p3  ;;  %p9431_p10 = por %p9430_p9, %p9429_p8 }
 0x133   : > { %p9425_p7 = pneg %p9424_p0 }
 0x135   : > { %p9432_p1 = pnand %p9431_p10, %p9425_p7 }
 0x137   : > { %9435 = shalt.err (!%p9432_p1)
}
 0x138   : > { %8756 = dma.hbm_to_vmem [thread:$0]  (!%p9936_p2), %s10883_s6, 32, %s10140_s20, [#allocation12]  }
 0x139   : > { %s9753_s24 = smov [#allocation16]   ;;  %s9754_s1 = smov [#allocation19]  }
 0x13a   : > { %s573_s30 = sshll.u32 %s9753_s24, 4  ;;  %s597_s27 = sshll.u32 %s9754_s1, 4  ;;  %s574_s30 = int_to_ptr.vmem [resolvable:$true] %s573_s30  ;;  %s10183_s27 = int_to_ptr.vmem [resolvable:$true] %s597_s27 }
 0x13b   : > { %s9436_s18 = scalar_lea.hbm %s10885_s8, 32 }
 0x13c   : > { %p9437_p4 = scmp.ne.s32.totalorder %s10885_s8, %s9436_s18  ;;  %p9443_p11 = scmp.lt.u32.totalorder %s9436_s18, %s10885_s8 }
 0x13e   : > { %p9439_p6 = pnand %p9437_p4, %p9950_p3 }
 0x140   : > { %p9440_p5 = pneg %p9439_p6 }
 0x142   : > { %p9445_p12 = pnand %p9443_p11, %p9440_p5 }
 0x144   : > { %9448 = shalt.err (!%p9445_p12)
}
 0x145   : > { %s9449_s0 = scalar_lea.vmem %s574_s30, 32  ;;  %p9457_p8 = scmp.lt.s32.totalorder %s574_s30, %s574_s30 }
 0x146   : > { %p9450_p13 = scmp.ne.s32.totalorder %s574_s30, %s9449_s0  ;;  %p9458_p9 = scmp.lt.s32.totalorder %s9449_s0, %s9449_s0 }
 0x148   : > { %p9452_p0 = pnand %p9450_p13, %p9950_p3  ;;  %p9459_p10 = por %p9458_p9, %p9457_p8 }
 0x14a   : > { %p9453_p7 = pneg %p9452_p0 }
 0x14c   : > { %p9460_p1 = pnand %p9459_p10, %p9453_p7 }
 0x14e   : > { %9463 = shalt.err (!%p9460_p1)
}
 0x14f   : > { %8762 = dma.hbm_to_vmem [thread:$0]  (!%p9936_p2), %s10885_s8, 32, %s574_s30, [#allocation15]  }
 0x150   : > { %s9464_s18 = scalar_lea.hbm %s10887_s10, 16 }
 0x151   : > { %p9465_p4 = scmp.ne.s32.totalorder %s10887_s10, %s9464_s18  ;;  %p9471_p11 = scmp.lt.u32.totalorder %s9464_s18, %s10887_s10 }
 0x153   : > { %p9467_p6 = pnand %p9465_p4, %p9950_p3 }
 0x155   : > { %p9468_p5 = pneg %p9467_p6 }
 0x157   : > { %p9473_p12 = pnand %p9471_p11, %p9468_p5 }
 0x159   : > { %9476 = shalt.err (!%p9473_p12)
}
 0x15a   : > { %s9477_s30 = scalar_lea.vmem %s10183_s27, 16  ;;  %s9484_s0 = scalar_lea.vmem %s10183_s27, 32 }
 0x15b   : > { %p9478_p13 = scmp.ne.s32.totalorder %s10183_s27, %s9477_s30  ;;  %p9485_p8 = scmp.lt.s32.totalorder %s10183_s27, %s10183_s27 }
 0x15c   : > { %p9486_p9 = scmp.lt.s32.totalorder %s9484_s0, %s9477_s30 }
 0x15d   : > { %p9480_p0 = pnand %p9478_p13, %p9950_p3 }
 0x15e   : > { %p9487_p10 = por %p9486_p9, %p9485_p8 }
 0x15f   : > { %p9481_p7 = pneg %p9480_p0 }
 0x161   : > { %p9488_p1 = pnand %p9487_p10, %p9481_p7 }
 0x163   : > { %9491 = shalt.err (!%p9488_p1)
}
 0x164   : > { %8768 = dma.hbm_to_vmem [thread:$0]  (!%p9936_p2), %s10887_s10, 16, %s10183_s27, [#allocation18]  }
 0x165   : > { %s9755_s28 = smov [#allocation22]   ;;  %s9756_s18 = smov [#allocation25]  }
 0x166   : > { %s619_s25 = sshll.u32 %s9755_s28, 4  ;;  %s644_s3 = sshll.u32 %s9756_s18, 4  ;;  %s620_s25 = int_to_ptr.vmem [resolvable:$true] %s619_s25  ;;  %s10227_s3 = int_to_ptr.vmem [resolvable:$true] %s644_s3 }
 0x167   : > { %s9492_s20 = scalar_lea.hbm %s10889_s12, 16 }
 0x168   : > { %p9493_p4 = scmp.ne.s32.totalorder %s10889_s12, %s9492_s20  ;;  %p9499_p11 = scmp.lt.u32.totalorder %s9492_s20, %s10889_s12 }
 0x16a   : > { %p9495_p6 = pnand %p9493_p4, %p9950_p3 }
 0x16c   : > { %p9496_p5 = pneg %p9495_p6 }
 0x16e   : > { %p9501_p12 = pnand %p9499_p11, %p9496_p5 }
 0x170   : > { %9504 = shalt.err (!%p9501_p12)
}
 0x171   : > { %s9505_s1 = scalar_lea.vmem %s620_s25, 16  ;;  %s9512_s28 = scalar_lea.vmem %s620_s25, 32 }
 0x172   : > { %p9506_p13 = scmp.ne.s32.totalorder %s620_s25, %s9505_s1  ;;  %p9513_p8 = scmp.lt.s32.totalorder %s620_s25, %s620_s25 }
 0x173   : > { %p9514_p9 = scmp.lt.s32.totalorder %s9512_s28, %s9505_s1 }
 0x174   : > { %p9508_p0 = pnand %p9506_p13, %p9950_p3 }
 0x175   : > { %p9515_p10 = por %p9514_p9, %p9513_p8 }
 0x176   : > { %p9509_p7 = pneg %p9508_p0 }
 0x178   : > { %p9516_p1 = pnand %p9515_p10, %p9509_p7 }
 0x17a   : > { %9519 = shalt.err (!%p9516_p1)
}
 0x17b   : > { %8774 = dma.hbm_to_vmem [thread:$0]  (!%p9936_p2), %s10889_s12, 16, %s620_s25, [#allocation21]  }
 0x17c   : > { %s9520_s30 = scalar_lea.hbm %s10892_s15, 16 }
 0x17d   : > { %p9521_p4 = scmp.ne.s32.totalorder %s10892_s15, %s9520_s30  ;;  %p9527_p11 = scmp.lt.u32.totalorder %s9520_s30, %s10892_s15 }
 0x17f   : > { %p9523_p6 = pnand %p9521_p4, %p9950_p3 }
 0x181   : > { %p9524_p5 = pneg %p9523_p6 }
 0x183   : > { %p9529_p12 = pnand %p9527_p11, %p9524_p5 }
 0x185   : > { %9532 = shalt.err (!%p9529_p12)
}
 0x186   : > { %s9533_s25 = scalar_lea.vmem %s10227_s3, 16  ;;  %s9540_s28 = scalar_lea.vmem %s10227_s3, 32 }
 0x187   : > { %p9534_p13 = scmp.ne.s32.totalorder %s10227_s3, %s9533_s25  ;;  %p9541_p8 = scmp.lt.s32.totalorder %s10227_s3, %s10227_s3 }
 0x188   : > { %p9542_p9 = scmp.lt.s32.totalorder %s9540_s28, %s9533_s25 }
 0x189   : > { %p9536_p0 = pnand %p9534_p13, %p9950_p3 }
 0x18a   : > { %p9543_p10 = por %p9542_p9, %p9541_p8 }
 0x18b   : > { %p9537_p7 = pneg %p9536_p0 }
 0x18d   : > { %p9544_p1 = pnand %p9543_p10, %p9537_p7 }
 0x18f   : > { %9547 = shalt.err (!%p9544_p1)
}
 0x190   : > { %8780 = dma.hbm_to_vmem [thread:$0]  (!%p9936_p2), %s10892_s15, 16, %s10227_s3, [#allocation24]  }
 0x191   : > { %s9757_s2 = smov [#allocation28]   ;;  %s9758_s30 = smov [#allocation29]  }
 0x192   : > { %s665_s20 = sshll.u32 %s9757_s2, 4  ;;  %s679_s0 = sshll.u32 %s9758_s30, 4  ;;  %s666_s20 = int_to_ptr.vmem [resolvable:$true] %s665_s20  ;;  %s10271_s0 = int_to_ptr.vmem [resolvable:$true] %s679_s0 }
 0x193   : > { %s9548_s1 = scalar_lea.hbm %s10894_s17, 512 }
 0x194   : > { %p9549_p4 = scmp.ne.s32.totalorder %s10894_s17, %s9548_s1  ;;  %p9555_p11 = scmp.lt.u32.totalorder %s9548_s1, %s10894_s17 }
 0x196   : > { %p9551_p6 = pnand %p9549_p4, %p9950_p3 }
 0x198   : > { %p9552_p5 = pneg %p9551_p6 }
 0x19a   : > { %p9557_p12 = pnand %p9555_p11, %p9552_p5 }
 0x19c   : > { %9560 = shalt.err (!%p9557_p12)
}
 0x19d   : > { %s9561_s26 = scalar_lea.vmem %s666_s20, 512  ;;  %p9569_p8 = scmp.lt.s32.totalorder %s666_s20, %s666_s20 }
 0x19e   : > { %p9562_p13 = scmp.ne.s32.totalorder %s666_s20, %s9561_s26  ;;  %p9570_p9 = scmp.lt.s32.totalorder %s9561_s26, %s9561_s26 }
 0x1a0   : > { %p9564_p0 = pnand %p9562_p13, %p9950_p3  ;;  %p9571_p10 = por %p9570_p9, %p9569_p8 }
 0x1a2   : > { %p9565_p7 = pneg %p9564_p0 }
 0x1a4   : > { %p9572_p1 = pnand %p9571_p10, %p9565_p7 }
 0x1a6   : > { %9575 = shalt.err (!%p9572_p1)
}
 0x1a7   : > { %s10959_s2 = smov 64   ;;  %s10960_s25 = sld [smem:[#allocation61_spill]] }
 0x1a8   : > { %8786 = dma.hbm_to_vmem [thread:$0]  (!%p9936_p2), %s10894_s17, 512, %s666_s20, [#allocation27], %s10959_s2, %s10959_s2, %s9746_s21  }
 0x1ad   : > { %s9576_s28 = scalar_lea.hbm %s10960_s25, 16 }
 0x1ae   : > { %p9577_p4 = scmp.ne.s32.totalorder %s10960_s25, %s9576_s28  ;;  %p9583_p11 = scmp.lt.u32.totalorder %s9576_s28, %s10960_s25 }
 0x1b0   : > { %p9579_p6 = pnand %p9577_p4, %p9950_p3 }
 0x1b2   : > { %p9580_p5 = pneg %p9579_p6 }
 0x1b4   : > { %p9585_p12 = pnand %p9583_p11, %p9580_p5 }
 0x1b6   : > { %9588 = shalt.err (!%p9585_p12)
}
 0x1b7   : > { %s9589_s21 = scalar_lea.vmem %s10271_s0, 16  ;;  %s9596_s20 = scalar_lea.vmem %s10271_s0, 32 }
 0x1b8   : > { %p9590_p13 = scmp.ne.s32.totalorder %s10271_s0, %s9589_s21  ;;  %p9597_p8 = scmp.lt.s32.totalorder %s10271_s0, %s10271_s0 }
 0x1b9   : > { %p9598_p9 = scmp.lt.s32.totalorder %s9596_s20, %s9589_s21 }
 0x1ba   : > { %p9592_p0 = pnand %p9590_p13, %p9950_p3 }
 0x1bb   : > { %p9599_p10 = por %p9598_p9, %p9597_p8 }
 0x1bc   : > { %p9593_p7 = pneg %p9592_p0 }
 0x1be   : > { %p9600_p1 = pnand %p9599_p10, %p9593_p7 }
 0x1c0   : > { %9603 = shalt.err (!%p9600_p1)
}
 0x1c1   : > { %8789 = dma.hbm_to_vmem [thread:$0]  (!%p9936_p2), %s10960_s25, 16, %s10271_s0, [#allocation30]  }
 0x1c2   : > { %s10961_s30 = sld [smem:[#allocation46_spill]] }
 0x1c8   : > { %p7660_p4 = scmp.ge.s32.totalorder %s10961_s30, 2 }
 0x1c9   : > { %s10962_s23 = sld [smem:[#allocation50_spill]] (!%p7660_p4) }
 0x1ca   : > { %686 = sbr.rel (%p7660_p4) target bundleno = 510 (0x1fe), region = 88 }
 0x1cf   : > { %p10963_p3 = scmp.ne.s32.totalorder (!%p7660_p4), %s10962_s23, 0 }
 0x1d1   : > { %689 = sbr.rel (!%p10963_p3) target bundleno = 510 (0x1fe), region = 92  ;;  %s10964_s24 = sld [smem:[#allocation45_spill]] (%p10963_p3) }
 0x1d2   : > { %s10965_s27 = sld [smem:[#allocation46_spill]] (%p10963_p3) }
 0x1d7   : > { %s690_s1 = sand.u32 (%p10963_p3), 1, %s10964_s24  }
 0x1d8   : > { %s7661_s28 = sshll.u32 %s10965_s27, 1  ;;  %s8665_s18 = smul.u32 160, %s690_s1 }
 0x1d9   : > { %s696_s3 = ssub.s32 3, %s7661_s28  ;;  %s10328_s26 = scalar_lea.sflag [#allocation3], %s690_s1 }
 0x1da   : > { %p697_p6 = scmp.lt.s32.totalorder %s696_s3, 2  ;;  %s694_s21 = scalar_lea.vmem [#allocation2], %s8665_s18 }
 0x1dc   : > { %s11006_s3 = smov (!%p697_p6, %s696_s3), 2 }
 0x1dd   : > { %s10325_s22 = smul.u32 1280, %s11006_s3 }
 0x1df   : > { %s702_s0 = ssub.s32 2560, %s10325_s22 }
 0x1e0   : > { %703 = vsyncadd %s10328_s26, %s702_s0  ;;  %p7664_p2 = scmp.ne.s32.totalorder %s10325_s22, 0  ;;  %s8666_s20 = smul.u32 2560, %s10965_s27 }
 0x1e1   : > { %s709_s4 = sshll.u32 %s694_s21, 4  ;;  %s10966_s23 = sld [smem:[#allocation55_spill]]  ;;  %s10338_s4 = int_to_ptr.vmem [resolvable:$true] %s709_s4 }
 0x1e7   : > { %s10336_s24 = scalar_lea.hbm %s10966_s23, %s8666_s20  ;;  %s9608_s27 = scalar_lea.hbm %s10966_s23, 3840 }
 0x1e8   : > { %s9604_s1 = scalar_lea.hbm %s10336_s24, %s10325_s22  ;;  %p9609_p13 = scmp.lt.u32.totalorder %s10336_s24, %s10966_s23 }
 0x1e9   : > { %p9605_p5 = scmp.ne.s32.totalorder %s10336_s24, %s9604_s1  ;;  %p9610_p0 = scmp.lt.u32.totalorder %s9608_s27, %s9604_s1 }
 0x1ea   : > { %p9612_p8 = scmp.lt.u32.totalorder %s9604_s1, %s10336_s24 }
 0x1eb   : > { %p9606_p11 = pnand %p9605_p5, %p7664_p2  ;;  %p9611_p7 = por %p9610_p0, %p9609_p13 }
 0x1ed   : > { %p9607_p12 = pneg %p9606_p11  ;;  %p9613_p9 = por %p9612_p8, %p9611_p7 }
 0x1ef   : > { %p9614_p10 = pnand %p9613_p9, %p9607_p12 }
 0x1f1   : > { %9617 = shalt.err (!%p9614_p10)
}
 0x1f2   : > { %s9618_s21 = scalar_lea.vmem %s10338_s4, %s10325_s22  ;;  %s9759_s20 = smov [#allocation2]  }
 0x1f3   : > { %p9619_p1 = scmp.ne.s32.totalorder %s10338_s4, %s9618_s21  ;;  %s9622_s2 = sshll.u32 %s9759_s20, 4  ;;  %s9623_s2 = int_to_ptr.vmem [resolvable:$false] %s9622_s2 }
 0x1f4   : > { %s9624_s30 = scalar_lea.vmem %s9623_s2, 5120  ;;  %p9625_p5 = scmp.lt.s32.totalorder %s10338_s4, %s9623_s2 }
 0x1f5   : > { %p9620_p3 = pnand %p9619_p1, %p7664_p2  ;;  %p9626_p11 = scmp.lt.s32.totalorder %s9624_s30, %s9618_s21 }
 0x1f7   : > { %p9621_p6 = pneg %p9620_p3  ;;  %p9627_p13 = por %p9626_p11, %p9625_p5 }
 0x1f9   : > { %p9628_p0 = pnand %p9627_p13, %p9621_p6 }
 0x1fb   : > { %9631 = shalt.err (!%p9628_p0)
}
 0x1fc   : > { %s9760_s1 = smov 1280   ;;  %s9761_s28 = smov 80  }
 0x1fd   : > { %715 = dma.hbm_to_vmem [thread:$0]  (%p7664_p2), %s10336_s24, %s10325_s22, %s10338_s4, %s10328_s26, %s9760_s1, %s9760_s1, %s9761_s28  }
 0x1fe PF: > { %s10967_s18 = sld [smem:[#allocation54_spill]] }
 0x204   : > { %p10968_p12 = scmp.ne.s32.totalorder %s10967_s18, 0 }
 0x205   : > { %s10969_s27 = sld [smem:[#allocation44_spill]] (!%p10968_p12) }
 0x206   : > { %721 = sbr.rel (%p10968_p12) target bundleno = 3287 (0xcd7), region = 96  ;;  %s10970_s3 = sld [smem:[#allocation51_spill]] (!%p10968_p12) }
 0x20b   : > { %s10368_s0 = sand.u32 (!%p10968_p12), 1, %s10969_s27  }
 0x20c   : > { %s8667_s21 = smul.u32 (!%p10968_p12), 160, %s10368_s0  ;;  %s724_s20 = scalar_lea.sflag (!%p10968_p12), [#allocation3], %s10368_s0 }
 0x20d   : > { %p10971_p7 = scmp.ne.s32.totalorder %s10970_s3, 0 }
 0x20e   : > { %s10372_s2 = scalar_lea.vmem [#allocation2], %s8667_s21 }
 0x20f   : > { %9677 = dma.done.wait (%p10971_p7), %s724_s20, 2560  }
 0x210   : > { %9679 = vsyncadd (%p10971_p7), %s724_s20, 4294964736  ;;  %s10972_s22 = sld [smem:[#allocation47_spill]] }
 0x216   : > { %p10973_p2 = scmp.eq.s32.totalorder %s10972_s22, 0 }
 0x218   : > { %9681 = dma.done.wait (%p10973_p2), [#allocation6], 82048   ;;  %p10974_p8 = pmov %p10973_p2 }
 0x219   : > { %p10975_p9 = pmov %p10973_p2 }
 0x21a   : > { %9683 = vsyncadd (%p10974_p8), [#allocation6], 4294885248 }
 0x21b   : > { %9685 = dma.done.wait (%p10975_p9), [#allocation9], 256   ;;  %p10976_p10 = pmov %p10973_p2 }
 0x21c   : > { %p10977_p1 = pmov %p10973_p2 }
 0x21d   : > { %9687 = vsyncadd (%p10976_p10), [#allocation9], 4294967040 }
 0x21e   : > { %9689 = dma.done.wait (%p10977_p1), [#allocation12], 16416   ;;  %p10978_p3 = pmov %p10977_p1 }
 0x21f   : > { %p10979_p6 = pmov %p10977_p1 }
 0x220   : > { %9691 = vsyncadd (%p10978_p3), [#allocation12], 4294950880 }
 0x221   : > { %9693 = dma.done.wait (%p10979_p6), [#allocation15], 64   ;;  %p10980_p5 = pmov %p10977_p1 }
 0x222   : > { %p10981_p11 = pmov %p10977_p1 }
 0x223   : > { %9695 = vsyncadd (%p10980_p5), [#allocation15], 4294967232 }
 0x224   : > { %9697 = dma.done.wait (%p10981_p11), [#allocation18], 2064   ;;  %p10982_p13 = pmov %p10977_p1 }
 0x225   : > { %p10983_p0 = pmov %p10977_p1 }
 0x226   : > { %9699 = vsyncadd (%p10982_p13), [#allocation18], 4294965232 }
 0x227   : > { %9701 = dma.done.wait (%p10983_p0), [#allocation21], 32   ;;  %p10984_p12 = pmov %p10983_p0 }
 0x228   : > { %p10985_p7 = pmov %p10983_p0 }
 0x229   : > { %9703 = vsyncadd (%p10984_p12), [#allocation21], 4294967264 }
 0x22a   : > { %9705 = dma.done.wait (%p10985_p7), [#allocation24], 32   ;;  %p10986_p2 = pmov %p10983_p0 }
 0x22b   : > { %p10987_p8 = pmov %p10983_p0 }
 0x22c   : > { %9707 = vsyncadd (%p10986_p2), [#allocation24], 4294967264 }
 0x22d   : > { %9709 = dma.done.wait (%p10987_p8), [#allocation27], 528   ;;  %p10988_p9 = pmov %p10983_p0 }
 0x22e   : > { %p10989_p10 = pmov %p10983_p0 }
 0x22f   : > { %9711 = vsyncadd (%p10988_p9), [#allocation27], 4294966768 }
 0x230   : > { %9713 = dma.done.wait (%p10989_p10), [#allocation30], 16   ;;  %p10990_p1 = pmov %p10983_p0 }
 0x231   : > { %v892_v0 = vld [vmem:[#allocation5] sm:$0xff]  ;;  %v863_v53 = vld [vmem:[%s10372_s2 + $0x8] sm:$0xff]  ;;  %v873_v54 = vld [vmem:[%s10372_s2 + $0x58] sm:$0xff]  ;;  %s10991_s24 = sld [smem:[#allocation60_spill]]  ;;  %vm9763_vm0 = vmmov 0   ;;  %vm7237_vm1 = vcmask 523264  }
 0x232   : > { %9715 = vsyncadd (%p10990_p1), [#allocation30], 4294967280  ;;  %v896_v1 = vld [vmem:[#allocation5 + $0x20] sm:$0xff]  ;;  %v10416_v58 = vpack.c.bf16 %v873_v54, %v863_v53  ;;  %v865_v59 = vld [vmem:[%s10372_s2 + $0x18] sm:$0xff]  ;;  %s9764_s28 = smov 64   ;;  %s7686_s18 = sshll.u32 %s10368_s0, 4 }
 0x233   : > { %v1020_v2 = vld [vmem:[#allocation5 + $0x400] sm:$0xff]  ;;  %v7688_v3 = vcombine.high %v892_v0, %v896_v1  ;;  %v7687_v5 = vcombine.low %v892_v0, %v896_v1  ;;  %v875_v62 = vld [vmem:[%s10372_s2 + $0x68] sm:$0xff]  ;;  %s849_s27 = scalar_lea.vmem [#allocation31], %s7686_s18  ;;  %s10925_s3 = scalar_lea.sflag [#allocation4], %s10368_s0 }
 0x234   : > { %v1024_v4 = vld [vmem:[#allocation5 + $0x420] sm:$0xff]  ;;  %4806 = vmatprep.mubr.bf16.mxu1 %v10416_v58  ;;  %v10421_v0 = vpack.c.bf16 %v875_v62, %v865_v59  ;;  %s10992_s21 = sld [smem:[#allocation52_spill]] }
 0x235   : > { %v900_v6 = vld [vmem:[#allocation5 + $0x40] sm:$0xff]  ;;  %v7816_v8 = vcombine.high %v1020_v2, %v1024_v4  ;;  %v7815_v9 = vcombine.low %v1020_v2, %v1024_v4  ;;  %4774 = vmatprep.subr.bf16.mxu1 %v7688_v3 }
 0x236   : > { %v904_v7 = vld [vmem:[#allocation5 + $0x60] sm:$0xff]  ;;  %4775 = vmatpush1.bf16.msra.mxu1 %v7687_v5  ;;  %4849 = vmatprep.mubr.bf16.mxu0 %v10421_v0 }
 0x237   : > { %v7696_v10 = vcombine.high %v900_v6, %v904_v7  ;;  %v1028_v11 = vld [vmem:[#allocation5 + $0x440] sm:$0xff]  ;;  %4817 = vmatprep.subr.bf16.mxu0 %v7816_v8  ;;  %v7695_v18 = vcombine.low %v900_v6, %v904_v7 }
 0x238   : > { %v1032_v12 = vld [vmem:[#allocation5 + $0x460] sm:$0xff]  ;;  %4818 = vmatpush1.bf16.msra.mxu0 %v7815_v9 }
 0x239   : > { %v908_v13 = vld [vmem:[#allocation5 + $0x80] sm:$0xff]  ;;  %v7824_v14 = vcombine.high %v1028_v11, %v1032_v12  ;;  %4776 = vmatprep.subr.bf16.mxu1 %v7696_v10  ;;  %v7823_v19 = vcombine.low %v1028_v11, %v1032_v12 }
 0x23a   : > { %v912_v15 = vld [vmem:[#allocation5 + $0xa0] sm:$0xff]  ;;  %4777 = vmatpush1.bf16.msra.mxu1 %v7695_v18  ;;  %p10993_p3 = scmp.ne.s32.totalorder %s10992_s21, 0 }
 0x23b   : > { %v1036_v16 = vld [vmem:[#allocation5 + $0x480] sm:$0xff]  ;;  %v7704_v20 = vcombine.high %v908_v13, %v912_v15  ;;  %4819 = vmatprep.subr.bf16.mxu0 %v7824_v14  ;;  %v7703_v26 = vcombine.low %v908_v13, %v912_v15  ;;  %s10994_s20 = sld [smem:[#allocation47_spill]] (%p10993_p3) }
 0x23c   : > { %v1040_v17 = vld [vmem:[#allocation5 + $0x4a0] sm:$0xff]  ;;  %4820 = vmatpush1.bf16.msra.mxu0 %v7823_v19 }
 0x23d   : > { %v7832_v21 = vcombine.high %v1036_v16, %v1040_v17  ;;  %v916_v22 = vld [vmem:[#allocation5 + $0xc0] sm:$0xff]  ;;  %4778 = vmatprep.subr.bf16.mxu1 %v7704_v20  ;;  %v7831_v27 = vcombine.low %v1036_v16, %v1040_v17 }
 0x23e   : > { %v920_v23 = vld [vmem:[#allocation5 + $0xe0] sm:$0xff]  ;;  %4779 = vmatpush1.bf16.msra.mxu1 %v7703_v26 }
 0x23f   : > { %v1044_v24 = vld [vmem:[#allocation5 + $0x4c0] sm:$0xff]  ;;  %v7712_v28 = vcombine.high %v916_v22, %v920_v23  ;;  %4821 = vmatprep.subr.bf16.mxu0 %v7832_v21  ;;  %v7711_v34 = vcombine.low %v916_v22, %v920_v23 }
 0x240   : > { %v1048_v25 = vld [vmem:[#allocation5 + $0x4e0] sm:$0xff]  ;;  %4822 = vmatpush1.bf16.msra.mxu0 %v7831_v27 }
 0x241   : > { %v7840_v29 = vcombine.high %v1044_v24, %v1048_v25  ;;  %v924_v30 = vld [vmem:[#allocation5 + $0x100] sm:$0xff]  ;;  %4780 = vmatprep.subr.bf16.mxu1 %v7712_v28  ;;  %v7839_v35 = vcombine.low %v1044_v24, %v1048_v25 }
 0x242   : > { %v928_v31 = vld [vmem:[#allocation5 + $0x120] sm:$0xff]  ;;  %4781 = vmatpush1.bf16.msra.mxu1 %v7711_v34 }
 0x243   : > { %v1052_v32 = vld [vmem:[#allocation5 + $0x500] sm:$0xff]  ;;  %v7720_v36 = vcombine.high %v924_v30, %v928_v31  ;;  %4823 = vmatprep.subr.bf16.mxu0 %v7840_v29  ;;  %v7719_v42 = vcombine.low %v924_v30, %v928_v31 }
 0x244   : > { %v1056_v33 = vld [vmem:[#allocation5 + $0x520] sm:$0xff]  ;;  %4824 = vmatpush1.bf16.msra.mxu0 %v7839_v35 }
 0x245   : > { %v7848_v37 = vcombine.high %v1052_v32, %v1056_v33  ;;  %v932_v38 = vld [vmem:[#allocation5 + $0x140] sm:$0xff]  ;;  %4782 = vmatprep.subr.bf16.mxu1 %v7720_v36  ;;  %v7847_v43 = vcombine.low %v1052_v32, %v1056_v33 }
 0x246   : > { %v936_v39 = vld [vmem:[#allocation5 + $0x160] sm:$0xff]  ;;  %4783 = vmatpush1.bf16.msra.mxu1 %v7719_v42 }
 0x247   : > { %v1060_v40 = vld [vmem:[#allocation5 + $0x540] sm:$0xff]  ;;  %v7728_v44 = vcombine.high %v932_v38, %v936_v39  ;;  %4825 = vmatprep.subr.bf16.mxu0 %v7848_v37  ;;  %v7727_v50 = vcombine.low %v932_v38, %v936_v39 }
 0x248   : > { %v1064_v41 = vld [vmem:[#allocation5 + $0x560] sm:$0xff]  ;;  %4826 = vmatpush1.bf16.msra.mxu0 %v7847_v43 }
 0x249   : > { %v7856_v45 = vcombine.high %v1060_v40, %v1064_v41  ;;  %v940_v46 = vld [vmem:[#allocation5 + $0x180] sm:$0xff]  ;;  %4784 = vmatprep.subr.bf16.mxu1 %v7728_v44  ;;  %v7855_v51 = vcombine.low %v1060_v40, %v1064_v41 }
 0x24a   : > { %v944_v47 = vld [vmem:[#allocation5 + $0x1a0] sm:$0xff]  ;;  %4785 = vmatpush1.bf16.msra.mxu1 %v7727_v50 }
 0x24b   : > { %v1068_v48 = vld [vmem:[#allocation5 + $0x580] sm:$0xff]  ;;  %v7736_v52 = vcombine.high %v940_v46, %v944_v47  ;;  %4827 = vmatprep.subr.bf16.mxu0 %v7856_v45  ;;  %v7735_v63 = vcombine.low %v940_v46, %v944_v47 }
 0x24c   : > { %v1072_v49 = vld [vmem:[#allocation5 + $0x5a0] sm:$0xff]  ;;  %4828 = vmatpush1.bf16.msra.mxu0 %v7855_v51 }
 0x24d   : > { %v7864_v55 = vcombine.high %v1068_v48, %v1072_v49  ;;  %v948_v56 = vld [vmem:[#allocation5 + $0x1c0] sm:$0xff]  ;;  %4786 = vmatprep.subr.bf16.mxu1 %v7736_v52  ;;  %v7863_v1 = vcombine.low %v1068_v48, %v1072_v49 }
 0x24e   : > { %v952_v57 = vld [vmem:[#allocation5 + $0x1e0] sm:$0xff]  ;;  %4787 = vmatpush1.bf16.msra.mxu1 %v7735_v63 }
 0x24f   : > { %v1076_v60 = vld [vmem:[#allocation5 + $0x5c0] sm:$0xff]  ;;  %v7744_v2 = vcombine.high %v948_v56, %v952_v57  ;;  %4829 = vmatprep.subr.bf16.mxu0 %v7864_v55  ;;  %v7743_v8 = vcombine.low %v948_v56, %v952_v57 }
 0x250   : > { %v1080_v61 = vld [vmem:[#allocation5 + $0x5e0] sm:$0xff]  ;;  %4830 = vmatpush1.bf16.msra.mxu0 %v7863_v1 }
 0x251   : > { %v7872_v3 = vcombine.high %v1076_v60, %v1080_v61  ;;  %v956_v4 = vld [vmem:[#allocation5 + $0x200] sm:$0xff]  ;;  %4788 = vmatprep.subr.bf16.mxu1 %v7744_v2  ;;  %v7871_v9 = vcombine.low %v1076_v60, %v1080_v61 }
 0x252   : > { %v960_v5 = vld [vmem:[#allocation5 + $0x220] sm:$0xff]  ;;  %4789 = vmatpush1.bf16.msra.mxu1 %v7743_v8 }
 0x253   : > { %v1084_v6 = vld [vmem:[#allocation5 + $0x600] sm:$0xff]  ;;  %v7752_v10 = vcombine.high %v956_v4, %v960_v5  ;;  %4831 = vmatprep.subr.bf16.mxu0 %v7872_v3  ;;  %v7751_v16 = vcombine.low %v956_v4, %v960_v5 }
 0x254   : > { %v1088_v7 = vld [vmem:[#allocation5 + $0x620] sm:$0xff]  ;;  %4832 = vmatpush1.bf16.msra.mxu0 %v7871_v9 }
 0x255   : > { %v7880_v11 = vcombine.high %v1084_v6, %v1088_v7  ;;  %v964_v12 = vld [vmem:[#allocation5 + $0x240] sm:$0xff]  ;;  %4790 = vmatprep.subr.bf16.mxu1 %v7752_v10  ;;  %v7879_v17 = vcombine.low %v1084_v6, %v1088_v7  ;;  %v893_v6 = vld [vmem:[#allocation5 + $0x8] sm:$0xff] }
 0x256   : > { %v968_v13 = vld [vmem:[#allocation5 + $0x260] sm:$0xff]  ;;  %4791 = vmatpush1.bf16.msra.mxu1 %v7751_v16  ;;  %v897_v7 = vld [vmem:[#allocation5 + $0x28] sm:$0xff] }
 0x257   : > { %v1092_v14 = vld [vmem:[#allocation5 + $0x640] sm:$0xff]  ;;  %v7760_v18 = vcombine.high %v964_v12, %v968_v13  ;;  %4833 = vmatprep.subr.bf16.mxu0 %v7880_v11  ;;  %v7759_v24 = vcombine.low %v964_v12, %v968_v13  ;;  %v872_v12 = vld [vmem:[%s10372_s2 + $0x50] sm:$0xff] }
 0x258   : > { %v1096_v15 = vld [vmem:[#allocation5 + $0x660] sm:$0xff]  ;;  %4834 = vmatpush1.bf16.msra.mxu0 %v7879_v17 }
 0x259   : > { %v7888_v19 = vcombine.high %v1092_v14, %v1096_v15  ;;  %v972_v20 = vld [vmem:[#allocation5 + $0x280] sm:$0xff]  ;;  %4792 = vmatprep.subr.bf16.mxu1 %v7760_v18  ;;  %v7887_v25 = vcombine.low %v1092_v14, %v1096_v15  ;;  %v7690_v14 = vcombine.high %v893_v6, %v897_v7  ;;  %v864_v15 = vld [vmem:[%s10372_s2 + $0x10] sm:$0xff] }
 0x25a   : > { %v976_v21 = vld [vmem:[#allocation5 + $0x2a0] sm:$0xff]  ;;  %4793 = vmatpush1.bf16.msra.mxu1 %v7759_v24  ;;  %v877_v24 = vld [vmem:[%s10372_s2 + $0x78] sm:$0xff] }
 0x25b   : > { %v1100_v22 = vld [vmem:[#allocation5 + $0x680] sm:$0xff]  ;;  %v7768_v26 = vcombine.high %v972_v20, %v976_v21  ;;  %4835 = vmatprep.subr.bf16.mxu0 %v7888_v19  ;;  %v7767_v32 = vcombine.low %v972_v20, %v976_v21  ;;  %v901_v19 = vld [vmem:[#allocation5 + $0x48] sm:$0xff] }
 0x25c   : > { %v1104_v23 = vld [vmem:[#allocation5 + $0x6a0] sm:$0xff]  ;;  %4836 = vmatpush1.bf16.msra.mxu0 %v7887_v25  ;;  %v905_v20 = vld [vmem:[#allocation5 + $0x68] sm:$0xff]  ;;  %v7689_v25 = vcombine.low %v893_v6, %v897_v7 }
 0x25d   : > { %v7896_v27 = vcombine.high %v1100_v22, %v1104_v23  ;;  %v980_v28 = vld [vmem:[#allocation5 + $0x2c0] sm:$0xff]  ;;  %4794 = vmatprep.subr.bf16.mxu1 %v7768_v26  ;;  %v7895_v33 = vcombine.low %v1100_v22, %v1104_v23  ;;  %v867_v23 = vld [vmem:[%s10372_s2 + $0x28] sm:$0xff] }
 0x25e   : > { %v984_v29 = vld [vmem:[#allocation5 + $0x2e0] sm:$0xff]  ;;  %4795 = vmatpush1.bf16.msra.mxu1 %v7767_v32  ;;  %v10434_v32 = vpack.c.bf16 %v877_v24, %v867_v23 }
 0x25f   : > { %v1108_v30 = vld [vmem:[#allocation5 + $0x6c0] sm:$0xff]  ;;  %v7776_v34 = vcombine.high %v980_v28, %v984_v29  ;;  %4837 = vmatprep.subr.bf16.mxu0 %v7896_v27  ;;  %v7775_v40 = vcombine.low %v980_v28, %v984_v29  ;;  %v7698_v28 = vcombine.high %v901_v19, %v905_v20 }
 0x260   : > { %v1112_v31 = vld [vmem:[#allocation5 + $0x6e0] sm:$0xff]  ;;  %4838 = vmatpush1.bf16.msra.mxu0 %v7895_v33 }
 0x261   : > { %v7904_v35 = vcombine.high %v1108_v30, %v1112_v31  ;;  %v988_v36 = vld [vmem:[#allocation5 + $0x300] sm:$0xff]  ;;  %4796 = vmatprep.subr.bf16.mxu1 %v7776_v34  ;;  %v7903_v41 = vcombine.low %v1108_v30, %v1112_v31  ;;  %v909_v30 = vld [vmem:[#allocation5 + $0x88] sm:$0xff] }
 0x262   : > { %v992_v37 = vld [vmem:[#allocation5 + $0x320] sm:$0xff]  ;;  %4797 = vmatpush1.bf16.msra.mxu1 %v7775_v40  ;;  %v913_v31 = vld [vmem:[#allocation5 + $0xa8] sm:$0xff] }
 0x263   : > { %v1116_v38 = vld [vmem:[#allocation5 + $0x700] sm:$0xff]  ;;  %v7784_v42 = vcombine.high %v988_v36, %v992_v37  ;;  %4839 = vmatprep.subr.bf16.mxu0 %v7904_v35  ;;  %v7783_v48 = vcombine.low %v988_v36, %v992_v37  ;;  %v7697_v35 = vcombine.low %v901_v19, %v905_v20  ;;  %v7706_v37 = vcombine.high %v909_v30, %v913_v31  ;;  %v921_v40 = vld [vmem:[#allocation5 + $0xe8] sm:$0xff] }
 0x264   : > { %v1120_v39 = vld [vmem:[#allocation5 + $0x720] sm:$0xff]  ;;  %4840 = vmatpush1.bf16.msra.mxu0 %v7903_v41  ;;  %v961_v20 = vld [vmem:[#allocation5 + $0x228] sm:$0xff] }
 0x265   : > { %v7912_v43 = vcombine.high %v1116_v38, %v1120_v39  ;;  %v996_v44 = vld [vmem:[#allocation5 + $0x340] sm:$0xff]  ;;  %4798 = vmatprep.subr.bf16.mxu1 %v7784_v42  ;;  %v7911_v49 = vcombine.low %v1116_v38, %v1120_v39  ;;  %v917_v39 = vld [vmem:[#allocation5 + $0xc8] sm:$0xff] }
 0x266   : > { %v1000_v45 = vld [vmem:[#allocation5 + $0x360] sm:$0xff]  ;;  %4799 = vmatpush1.bf16.msra.mxu1 %v7783_v48  ;;  %v925_v48 = vld [vmem:[#allocation5 + $0x108] sm:$0xff] }
 0x267   : > { %v1124_v46 = vld [vmem:[#allocation5 + $0x740] sm:$0xff]  ;;  %v7792_v50 = vcombine.high %v996_v44, %v1000_v45  ;;  %4841 = vmatprep.subr.bf16.mxu0 %v7912_v43  ;;  %v7791_v56 = vcombine.low %v996_v44, %v1000_v45  ;;  %v7705_v43 = vcombine.low %v909_v30, %v913_v31  ;;  %v7714_v45 = vcombine.high %v917_v39, %v921_v40  ;;  %v969_v30 = vld [vmem:[#allocation5 + $0x268] sm:$0xff] }
 0x268   : > { %v1128_v47 = vld [vmem:[#allocation5 + $0x760] sm:$0xff]  ;;  %4842 = vmatpush1.bf16.msra.mxu0 %v7911_v49 }
 0x269   : > { %v7920_v51 = vcombine.high %v1124_v46, %v1128_v47  ;;  %v1004_v52 = vld [vmem:[#allocation5 + $0x380] sm:$0xff]  ;;  %4800 = vmatprep.subr.bf16.mxu1 %v7792_v50  ;;  %v7919_v57 = vcombine.low %v1124_v46, %v1128_v47  ;;  %v929_v50 = vld [vmem:[#allocation5 + $0x128] sm:$0xff] }
 0x26a   : > { %v1008_v53 = vld [vmem:[#allocation5 + $0x3a0] sm:$0xff]  ;;  %4801 = vmatpush1.bf16.msra.mxu1 %v7791_v56  ;;  %v933_v56 = vld [vmem:[#allocation5 + $0x148] sm:$0xff] }
 0x26b   : > { %v1132_v54 = vld [vmem:[#allocation5 + $0x780] sm:$0xff]  ;;  %v7800_v59 = vcombine.high %v1004_v52, %v1008_v53  ;;  %4843 = vmatprep.subr.bf16.mxu0 %v7920_v51  ;;  %v7799_v2 = vcombine.low %v1004_v52, %v1008_v53  ;;  %v7713_v51 = vcombine.low %v917_v39, %v921_v40  ;;  %v7722_v53 = vcombine.high %v925_v48, %v929_v50  ;;  %v977_v39 = vld [vmem:[#allocation5 + $0x2a8] sm:$0xff] }
 0x26c   : > { %v1136_v55 = vld [vmem:[#allocation5 + $0x7a0] sm:$0xff]  ;;  %4844 = vmatpush1.bf16.msra.mxu0 %v7919_v57 }
 0x26d   : > { %v7928_v60 = vcombine.high %v1132_v54, %v1136_v55  ;;  %v1012_v61 = vld [vmem:[#allocation5 + $0x3c0] sm:$0xff]  ;;  %4802 = vmatprep.subr.bf16.mxu1 %v7800_v59  ;;  %v7927_v3 = vcombine.low %v1132_v54, %v1136_v55  ;;  %v937_v59 = vld [vmem:[#allocation5 + $0x168] sm:$0xff] }
 0x26e   : > { %v1016_v62 = vld [vmem:[#allocation5 + $0x3e0] sm:$0xff]  ;;  %4803 = vmatpush1.bf16.msra.mxu1 %v7799_v2  ;;  %v941_v2 = vld [vmem:[#allocation5 + $0x188] sm:$0xff] }
 0x26f   : > { %v1140_v63 = vld [vmem:[#allocation5 + $0x7c0] sm:$0xff]  ;;  %v7808_v4 = vcombine.high %v1012_v61, %v1016_v62  ;;  %4845 = vmatprep.subr.bf16.mxu0 %v7928_v60  ;;  %v7807_v10 = vcombine.low %v1012_v61, %v1016_v62  ;;  %v7721_v60 = vcombine.low %v925_v48, %v929_v50  ;;  %v7730_v62 = vcombine.high %v933_v56, %v937_v59 }
 0x270   : > { %v1144_v1 = vld [vmem:[#allocation5 + $0x7e0] sm:$0xff]  ;;  %4846 = vmatpush1.bf16.msra.mxu0 %v7927_v3 }
 0x271   : > { %v7936_v5 = vcombine.high %v1140_v63, %v1144_v1  ;;  %v1148_v8 = vld [vmem:[#allocation5 + $0x800] sm:$0xff]  ;;  %4804 = vmatprep.subr.bf16.mxu1 %v7808_v4  ;;  %v7935_v13 = vcombine.low %v1140_v63, %v1144_v1  ;;  %v945_v4 = vld [vmem:[#allocation5 + $0x1a8] sm:$0xff] }
 0x272   : > { %v1152_v9 = vld [vmem:[#allocation5 + $0x820] sm:$0xff]  ;;  %4805 = vmatpush1.bf16.msra.mxu1 %v7807_v10  ;;  %v7738_v7 = vcombine.high %v941_v2, %v945_v4  ;;  %v949_v10 = vld [vmem:[#allocation5 + $0x1c8] sm:$0xff] }
 0x273   : > { %v862_v11 = vld [vmem:[%s10372_s2] sm:$0xff]  ;;  %4847 = vmatprep.subr.bf16.mxu0 %v7936_v5  ;;  %v7944_v17 = vcombine.high %v1148_v8, %v1152_v9  ;;  %v7943_v27 = vcombine.low %v1148_v8, %v1152_v9  ;;  %4989 = vmatprep.subr.bf16.mxu1 %v7690_v14  ;;  %v7729_v5 = vcombine.low %v933_v56, %v937_v59 }
 0x274   : > { %v874_v16 = vld [vmem:[%s10372_s2 + $0x60] sm:$0xff]  ;;  %v10428_v21 = vpack.c.bf16 %v872_v12, %v862_v11  ;;  %4848 = vmatpush1.bf16.msra.mxu0 %v7935_v13  ;;  %v953_v12 = vld [vmem:[#allocation5 + $0x1e8] sm:$0xff]  ;;  %v7737_v13 = vcombine.low %v941_v2, %v945_v4 }
 0x275   : > { %v1156_v18 = vld [vmem:[#allocation5 + $0x840] sm:$0xff]  ;;  %v10432_v26 = vpack.c.bf16 %v874_v16, %v864_v15  ;;  %4860 = vmatprep.subr.bf16.mxu0 %v7944_v17  ;;  %v7746_v15 = vcombine.high %v949_v10, %v953_v12 }
 0x276   : > { %v1160_v22 = vld [vmem:[#allocation5 + $0x860] sm:$0xff]  ;;  %4807 = vmatmul.mubr.bf16.vlgmr.msra.gmra.mrb[0].mxu1 %v10428_v21 }
 0x277   : > { %v7952_v29 = vcombine.high %v1156_v18, %v1160_v22  ;;  %v1164_v33 = vld [vmem:[#allocation5 + $0x880] sm:$0xff]  ;;  %4850 = vmatmul.mubr.bf16.vlgmr.msra.gmra.mrb[0].mxu0 %v10432_v26  ;;  %4990 = vmatpush1.bf16.msra.mxu1 %v7689_v25  ;;  %v7951_v36 = vcombine.low %v1156_v18, %v1160_v22  ;;  %v957_v18 = vld [vmem:[#allocation5 + $0x208] sm:$0xff]  ;;  %v7745_v22 = vcombine.low %v949_v10, %v953_v12 }
 0x278   : > { %v1168_v34 = vld [vmem:[#allocation5 + $0x8a0] sm:$0xff]  ;;  %4861 = vmatpush1.bf16.msra.mxu0 %v7943_v27  ;;  %4991 = vmatprep.subr.bf16.mxu1 %v7698_v28  ;;  %v7754_v24 = vcombine.high %v957_v18, %v961_v20  ;;  %v965_v28 = vld [vmem:[#allocation5 + $0x248] sm:$0xff]  ;;  %v7753_v31 = vcombine.low %v957_v18, %v961_v20 }
 0x279   : > { %4862 = vmatprep.subr.bf16.mxu0 %v7952_v29  ;;  %v7960_v38 = vcombine.high %v1164_v33, %v1168_v34  ;;  %4892 = vmatprep.mubr.bf16.mxu0 %v10434_v32  ;;  %v1172_v41 = vld [vmem:[#allocation5 + $0x8c0] sm:$0xff]  ;;  %v7959_v44 = vcombine.low %v1164_v33, %v1168_v34  ;;  %v7762_v34 = vcombine.high %v965_v28, %v969_v30 }
 0x27a   : > { %v1176_v42 = vld [vmem:[#allocation5 + $0x8e0] sm:$0xff]  ;;  %5021 = vmatprep.mubr.bf16.mxu1 %v10416_v58  ;;  %v7761_v40 = vcombine.low %v965_v28, %v969_v30 }
 0x27b   : > { %4992 = vmatpush1.bf16.msra.mxu1 %v7697_v35  ;;  %v1180_v46 = vld [vmem:[#allocation5 + $0x900] sm:$0xff]  ;;  %v7968_v49 = vcombine.high %v1172_v41, %v1176_v42  ;;  %v7967_v52 = vcombine.low %v1172_v41, %v1176_v42 }
 0x27c   : > { %4863 = vmatpush1.bf16.msra.mxu0 %v7951_v36  ;;  %4993 = vmatprep.subr.bf16.mxu1 %v7706_v37  ;;  %v1184_v47 = vld [vmem:[#allocation5 + $0x920] sm:$0xff]  ;;  %v973_v37 = vld [vmem:[#allocation5 + $0x288] sm:$0xff] }
 0x27d   : > { %4864 = vmatprep.subr.bf16.mxu0 %v7960_v38  ;;  %v1188_v54 = vld [vmem:[#allocation5 + $0x940] sm:$0xff]  ;;  %v7976_v57 = vcombine.high %v1180_v46, %v1184_v47  ;;  %v7975_v61 = vcombine.low %v1180_v46, %v1184_v47  ;;  %v7770_v42 = vcombine.high %v973_v37, %v977_v39  ;;  %v985_v47 = vld [vmem:[#allocation5 + $0x2e8] sm:$0xff]  ;;  %v7769_v48 = vcombine.low %v973_v37, %v977_v39 }
 0x27e   : > { %v1192_v55 = vld [vmem:[#allocation5 + $0x960] sm:$0xff]  ;;  %v1033_v37 = vld [vmem:[#allocation5 + $0x468] sm:$0xff] }
 0x27f   : > { %4994 = vmatpush1.bf16.msra.mxu1 %v7705_v43  ;;  %v1196_v63 = vld [vmem:[#allocation5 + $0x980] sm:$0xff]  ;;  %v7984_v3 = vcombine.high %v1188_v54, %v1192_v55  ;;  %v7983_v6 = vcombine.low %v1188_v54, %v1192_v55  ;;  %v993_v55 = vld [vmem:[#allocation5 + $0x328] sm:$0xff] }
 0x280   : > { %4865 = vmatpush1.bf16.msra.mxu0 %v7959_v44  ;;  %4995 = vmatprep.subr.bf16.mxu1 %v7714_v45  ;;  %v1200_v1 = vld [vmem:[#allocation5 + $0x9a0] sm:$0xff]  ;;  %v981_v45 = vld [vmem:[#allocation5 + $0x2c8] sm:$0xff] }
 0x281   : > { %4866 = vmatprep.subr.bf16.mxu0 %v7968_v49  ;;  %v1204_v8 = vld [vmem:[#allocation5 + $0x9c0] sm:$0xff]  ;;  %v7992_v11 = vcombine.high %v1196_v63, %v1200_v1  ;;  %v7991_v14 = vcombine.low %v1196_v63, %v1200_v1  ;;  %v7778_v50 = vcombine.high %v981_v45, %v985_v47  ;;  %v7777_v56 = vcombine.low %v981_v45, %v985_v47  ;;  %v1001_v1 = vld [vmem:[#allocation5 + $0x368] sm:$0xff] }
 0x282   : > { %v1208_v9 = vld [vmem:[#allocation5 + $0x9e0] sm:$0xff] }
 0x283   : > { %4996 = vmatpush1.bf16.msra.mxu1 %v7713_v51  ;;  %v1212_v16 = vld [vmem:[#allocation5 + $0xa00] sm:$0xff]  ;;  %v8000_v19 = vcombine.high %v1204_v8, %v1208_v9  ;;  %v7999_v23 = vcombine.low %v1204_v8, %v1208_v9  ;;  %v1009_v9 = vld [vmem:[#allocation5 + $0x3a8] sm:$0xff] }
 0x284   : > { %4867 = vmatpush1.bf16.msra.mxu0 %v7967_v52  ;;  %4997 = vmatprep.subr.bf16.mxu1 %v7722_v53  ;;  %v1216_v17 = vld [vmem:[#allocation5 + $0xa20] sm:$0xff]  ;;  %v989_v53 = vld [vmem:[#allocation5 + $0x308] sm:$0xff] }
 0x285   : > { %4868 = vmatprep.subr.bf16.mxu0 %v7976_v57  ;;  %v1220_v25 = vld [vmem:[#allocation5 + $0xa40] sm:$0xff]  ;;  %v8008_v29 = vcombine.high %v1212_v16, %v1216_v17  ;;  %v8007_v33 = vcombine.low %v1212_v16, %v1216_v17  ;;  %v7786_v59 = vcombine.high %v989_v53, %v993_v55  ;;  %v7785_v2 = vcombine.low %v989_v53, %v993_v55  ;;  %v1017_v17 = vld [vmem:[#allocation5 + $0x3e8] sm:$0xff] }
 0x286   : > { %v1224_v27 = vld [vmem:[#allocation5 + $0xa60] sm:$0xff] }
 0x287   : > { %4998 = vmatpush1.bf16.msra.mxu1 %v7721_v60  ;;  %v1228_v35 = vld [vmem:[#allocation5 + $0xa80] sm:$0xff]  ;;  %v8016_v38 = vcombine.high %v1220_v25, %v1224_v27  ;;  %v8015_v41 = vcombine.low %v1220_v25, %v1224_v27  ;;  %v1025_v27 = vld [vmem:[#allocation5 + $0x428] sm:$0xff] }
 0x288   : > { %4869 = vmatpush1.bf16.msra.mxu0 %v7975_v61  ;;  %4999 = vmatprep.subr.bf16.mxu1 %v7730_v62  ;;  %v1232_v36 = vld [vmem:[#allocation5 + $0xaa0] sm:$0xff]  ;;  %v997_v62 = vld [vmem:[#allocation5 + $0x348] sm:$0xff] }
 0x289   : > { %4870 = vmatprep.subr.bf16.mxu0 %v7984_v3  ;;  %v1236_v43 = vld [vmem:[#allocation5 + $0xac0] sm:$0xff]  ;;  %v8024_v46 = vcombine.high %v1228_v35, %v1232_v36  ;;  %v8023_v49 = vcombine.low %v1228_v35, %v1232_v36  ;;  %v7794_v4 = vcombine.high %v997_v62, %v1001_v1  ;;  %v7793_v10 = vcombine.low %v997_v62, %v1001_v1  ;;  %v1029_v36 = vld [vmem:[#allocation5 + $0x448] sm:$0xff] }
 0x28a   : > { %v1240_v44 = vld [vmem:[#allocation5 + $0xae0] sm:$0xff] }
 0x28b   : > { %5000 = vmatpush1.bf16.msra.mxu1 %v7729_v5  ;;  %v1244_v51 = vld [vmem:[#allocation5 + $0xb00] sm:$0xff]  ;;  %v8032_v54 = vcombine.high %v1236_v43, %v1240_v44  ;;  %v8031_v57 = vcombine.low %v1236_v43, %v1240_v44  ;;  %v7826_v44 = vcombine.high %v1029_v36, %v1033_v37 }
 0x28c   : > { %4871 = vmatpush1.bf16.msra.mxu0 %v7983_v6  ;;  %5001 = vmatprep.subr.bf16.mxu1 %v7738_v7  ;;  %v1248_v52 = vld [vmem:[#allocation5 + $0xb20] sm:$0xff]  ;;  %v1005_v7 = vld [vmem:[#allocation5 + $0x388] sm:$0xff] }
 0x28d   : > { %4872 = vmatprep.subr.bf16.mxu0 %v7992_v11  ;;  %v1252_v60 = vld [vmem:[#allocation5 + $0xb40] sm:$0xff]  ;;  %v8040_v63 = vcombine.high %v1244_v51, %v1248_v52  ;;  %v8039_v3 = vcombine.low %v1244_v51, %v1248_v52  ;;  %v7802_v12 = vcombine.high %v1005_v7, %v1009_v9  ;;  %v7801_v18 = vcombine.low %v1005_v7, %v1009_v9 }
 0x28e   : > { %v1256_v61 = vld [vmem:[#allocation5 + $0xb60] sm:$0xff]  ;;  %v7825_v51 = vcombine.low %v1029_v36, %v1033_v37  ;;  %v1085_v37 = vld [vmem:[#allocation5 + $0x608] sm:$0xff] }
 0x28f   : > { %5002 = vmatpush1.bf16.msra.mxu1 %v7737_v13  ;;  %v1260_v5 = vld [vmem:[#allocation5 + $0xb80] sm:$0xff]  ;;  %v8048_v8 = vcombine.high %v1252_v60, %v1256_v61  ;;  %v8047_v11 = vcombine.low %v1252_v60, %v1256_v61 }
 0x290   : > { %4873 = vmatpush1.bf16.msra.mxu0 %v7991_v14  ;;  %5003 = vmatprep.subr.bf16.mxu1 %v7746_v15  ;;  %v1264_v6 = vld [vmem:[#allocation5 + $0xba0] sm:$0xff]  ;;  %v1013_v15 = vld [vmem:[#allocation5 + $0x3c8] sm:$0xff] }
 0x291   : > { %4874 = vmatprep.subr.bf16.mxu0 %v8000_v19  ;;  %v1268_v13 = vld [vmem:[#allocation5 + $0xbc0] sm:$0xff]  ;;  %v8056_v16 = vcombine.high %v1260_v5, %v1264_v6  ;;  %v8055_v19 = vcombine.low %v1260_v5, %v1264_v6  ;;  %v7810_v20 = vcombine.high %v1013_v15, %v1017_v17  ;;  %v7809_v30 = vcombine.low %v1013_v15, %v1017_v17  ;;  %v1069_v17 = vld [vmem:[#allocation5 + $0x588] sm:$0xff] }
 0x292   : > { %v1272_v14 = vld [vmem:[#allocation5 + $0xbe0] sm:$0xff] }
 0x293   : > { %5004 = vmatpush1.bf16.msra.mxu1 %v7745_v22  ;;  %v1276_v22 = vld [vmem:[#allocation5 + $0xc00] sm:$0xff]  ;;  %v8064_v25 = vcombine.high %v1268_v13, %v1272_v14 }
 0x294   : > { %4875 = vmatpush1.bf16.msra.mxu0 %v7999_v23  ;;  %5005 = vmatprep.subr.bf16.mxu1 %v7754_v24  ;;  %v1280_v23 = vld [vmem:[#allocation5 + $0xc20] sm:$0xff]  ;;  %v1021_v24 = vld [vmem:[#allocation5 + $0x408] sm:$0xff] }
 0x295   : > { %4876 = vmatprep.subr.bf16.mxu0 %v8008_v29  ;;  %v866_v28 = vld [vmem:[%s10372_s2 + $0x20] sm:$0xff]  ;;  %v876_v29 = vld [vmem:[%s10372_s2 + $0x70] sm:$0xff]  ;;  %v8072_v39 = vcombine.high %v1276_v22, %v1280_v23  ;;  %v8071_v43 = vcombine.low %v1276_v22, %v1280_v23 }
 0x296   : > { %v1288_v35 = vld [vmem:[#allocation5 + $0xc60] sm:$0xff] }
 0x297   : > { %5006 = vmatpush1.bf16.msra.mxu1 %v7753_v31  ;;  %v8063_v31 = vcombine.low %v1268_v13, %v1272_v14  ;;  %v1292_v45 = vld [vmem:[#allocation5 + $0xc80] sm:$0xff] }
 0x298   : > { %4877 = vmatpush1.bf16.msra.mxu0 %v8007_v33  ;;  %5007 = vmatprep.subr.bf16.mxu1 %v7762_v34  ;;  %v7818_v33 = vcombine.high %v1021_v24, %v1025_v27  ;;  %v1284_v34 = vld [vmem:[#allocation5 + $0xc40] sm:$0xff] }
 0x299   : > { %4878 = vmatprep.subr.bf16.mxu0 %v8016_v38  ;;  %v869_v38 = vld [vmem:[%s10372_s2 + $0x38] sm:$0xff]  ;;  %v1296_v47 = vld [vmem:[#allocation5 + $0xca0] sm:$0xff]  ;;  %v8079_v52 = vcombine.low %v1284_v34, %v1288_v35 }
 0x29a   : > { %v1304_v55 = vld [vmem:[#allocation5 + $0xce0] sm:$0xff]  ;;  %v8087_v61 = vcombine.low %v1292_v45, %v1296_v47 }
 0x29b   : > { %5008 = vmatpush1.bf16.msra.mxu1 %v7761_v40  ;;  %v879_v40 = vld [vmem:[%s10372_s2 + $0x88] sm:$0xff]  ;;  %v1312_v1 = vld [vmem:[#allocation5 + $0xd20] sm:$0xff] }
 0x29c   : > { %4879 = vmatpush1.bf16.msra.mxu0 %v8015_v41  ;;  %5009 = vmatprep.subr.bf16.mxu1 %v7770_v42  ;;  %v7817_v41 = vcombine.low %v1021_v24, %v1025_v27  ;;  %v10444_v42 = vpack.c.bf16 %v876_v29, %v866_v28  ;;  %v1320_v9 = vld [vmem:[#allocation5 + $0xd60] sm:$0xff]  ;;  %v1077_v29 = vld [vmem:[#allocation5 + $0x5c8] sm:$0xff] }
 0x29d   : > { %4880 = vmatprep.subr.bf16.mxu0 %v8024_v46  ;;  %v8080_v46 = vcombine.high %v1284_v34, %v1288_v35  ;;  %v1336_v27 = vld [vmem:[#allocation5 + $0xde0] sm:$0xff] }
 0x29e   : > { %v1340_v35 = vld [vmem:[#allocation5 + $0xe00] sm:$0xff] }
 0x29f   : > { %5010 = vmatpush1.bf16.msra.mxu1 %v7769_v48  ;;  %v1037_v48 = vld [vmem:[#allocation5 + $0x488] sm:$0xff]  ;;  %v1344_v36 = vld [vmem:[#allocation5 + $0xe20] sm:$0xff] }
 0x2a0   : > { %4881 = vmatpush1.bf16.msra.mxu0 %v8023_v49  ;;  %5011 = vmatprep.subr.bf16.mxu1 %v7778_v50  ;;  %v1041_v49 = vld [vmem:[#allocation5 + $0x4a8] sm:$0xff]  ;;  %v10446_v50 = vpack.c.bf16 %v879_v40, %v869_v38 }
 0x2a1   : > { %4882 = vmatprep.subr.bf16.mxu0 %v8032_v54  ;;  %v7834_v53 = vcombine.high %v1037_v48, %v1041_v49  ;;  %v1300_v54 = vld [vmem:[#allocation5 + $0xcc0] sm:$0xff]  ;;  %v7833_v60 = vcombine.low %v1037_v48, %v1041_v49  ;;  %v1097_v48 = vld [vmem:[#allocation5 + $0x668] sm:$0xff] }
 0x2a2   : > { %v8095_v6 = vcombine.low %v1300_v54, %v1304_v55 }
 0x2a3   : > { %5012 = vmatpush1.bf16.msra.mxu1 %v7777_v56  ;;  %v1045_v56 = vld [vmem:[#allocation5 + $0x4c8] sm:$0xff] }
 0x2a4   : > { %4883 = vmatpush1.bf16.msra.mxu0 %v8031_v57  ;;  %5013 = vmatprep.subr.bf16.mxu1 %v7786_v59  ;;  %v8088_v57 = vcombine.high %v1292_v45, %v1296_v47  ;;  %v1049_v59 = vld [vmem:[#allocation5 + $0x4e8] sm:$0xff]  ;;  %v1352_v45 = vld [vmem:[#allocation5 + $0xe60] sm:$0xff]  ;;  %v8136_v47 = vcombine.high %v1340_v35, %v1344_v36 }
 0x2a5   : > { %4884 = vmatprep.subr.bf16.mxu0 %v8040_v63  ;;  %v7842_v62 = vcombine.high %v1045_v56, %v1049_v59  ;;  %v1308_v63 = vld [vmem:[#allocation5 + $0xd00] sm:$0xff]  ;;  %v7841_v5 = vcombine.low %v1045_v56, %v1049_v59 }
 0x2a6   : > { %v8103_v14 = vcombine.low %v1308_v63, %v1312_v1 }
 0x2a7   : > { %5014 = vmatpush1.bf16.msra.mxu1 %v7785_v2  ;;  %v1053_v2 = vld [vmem:[#allocation5 + $0x508] sm:$0xff] }
 0x2a8   : > { %4885 = vmatpush1.bf16.msra.mxu0 %v8039_v3  ;;  %5015 = vmatprep.subr.bf16.mxu1 %v7794_v4  ;;  %v8096_v3 = vcombine.high %v1300_v54, %v1304_v55  ;;  %v1057_v4 = vld [vmem:[#allocation5 + $0x528] sm:$0xff]  ;;  %v1360_v54 = vld [vmem:[#allocation5 + $0xea0] sm:$0xff] }
 0x2a9   : > { %4886 = vmatprep.subr.bf16.mxu0 %v8048_v8  ;;  %v7850_v7 = vcombine.high %v1053_v2, %v1057_v4  ;;  %v1316_v8 = vld [vmem:[#allocation5 + $0xd40] sm:$0xff]  ;;  %v7849_v13 = vcombine.low %v1053_v2, %v1057_v4  ;;  %v1101_v55 = vld [vmem:[#allocation5 + $0x688] sm:$0xff] }
 0x2aa   : > { %v8111_v23 = vcombine.low %v1316_v8, %v1320_v9  ;;  %v1364_v2 = vld [vmem:[#allocation5 + $0xec0] sm:$0xff] }
 0x2ab   : > { %5016 = vmatpush1.bf16.msra.mxu1 %v7793_v10  ;;  %v1061_v10 = vld [vmem:[#allocation5 + $0x548] sm:$0xff] }
 0x2ac   : > { %4887 = vmatpush1.bf16.msra.mxu0 %v8047_v11  ;;  %5017 = vmatprep.subr.bf16.mxu1 %v7802_v12  ;;  %v8104_v11 = vcombine.high %v1308_v63, %v1312_v1  ;;  %v1065_v12 = vld [vmem:[#allocation5 + $0x568] sm:$0xff] }
 0x2ad   : > { %4888 = vmatprep.subr.bf16.mxu0 %v8056_v16  ;;  %v7858_v15 = vcombine.high %v1061_v10, %v1065_v12  ;;  %v1324_v16 = vld [vmem:[#allocation5 + $0xd80] sm:$0xff]  ;;  %v7857_v22 = vcombine.low %v1061_v10, %v1065_v12  ;;  %v1113_v1 = vld [vmem:[#allocation5 + $0x6e8] sm:$0xff] }
 0x2ae   : > { %v1372_v10 = vld [vmem:[#allocation5 + $0xf00] sm:$0xff] }
 0x2af   : > { %5018 = vmatpush1.bf16.msra.mxu1 %v7801_v18  ;;  %v8112_v18 = vcombine.high %v1316_v8, %v1320_v9  ;;  %v1117_v8 = vld [vmem:[#allocation5 + $0x708] sm:$0xff] }
 0x2b0   : > { %4889 = vmatpush1.bf16.msra.mxu0 %v8055_v19  ;;  %5019 = vmatprep.subr.bf16.mxu1 %v7810_v20  ;;  %v1073_v19 = vld [vmem:[#allocation5 + $0x5a8] sm:$0xff]  ;;  %v1328_v20 = vld [vmem:[#allocation5 + $0xda0] sm:$0xff] }
 0x2b1   : > { %4890 = vmatprep.subr.bf16.mxu0 %v8064_v25  ;;  %v7866_v24 = vcombine.high %v1069_v17, %v1073_v19  ;;  %v1332_v25 = vld [vmem:[#allocation5 + $0xdc0] sm:$0xff]  ;;  %v8120_v28 = vcombine.high %v1324_v16, %v1328_v20  ;;  %v1121_v9 = vld [vmem:[#allocation5 + $0x728] sm:$0xff] }
 0x2b2   : > { %v8128_v38 = vcombine.high %v1332_v25, %v1336_v27 }
 0x2b3   : > { %5020 = vmatpush1.bf16.msra.mxu1 %v7809_v30  ;;  %v1081_v30 = vld [vmem:[#allocation5 + $0x5e8] sm:$0xff] }
 0x2b4   : > { %4891 = vmatpush1.bf16.msra.mxu0 %v8063_v31  ;;  %5032 = vmatprep.subr.bf16.mxu1 %v7818_v33  ;;  %v7865_v31 = vcombine.low %v1069_v17, %v1073_v19  ;;  %v8119_v33 = vcombine.low %v1324_v16, %v1328_v20  ;;  %v7874_v34 = vcombine.high %v1077_v29, %v1081_v30  ;;  %v1125_v16 = vld [vmem:[#allocation5 + $0x748] sm:$0xff]  ;;  %v1384_v19 = vld [vmem:[#allocation5 + $0xf60] sm:$0xff] }
 0x2b5   : > { %4903 = vmatprep.subr.bf16.mxu0 %v8072_v39  ;;  %v1089_v39 = vld [vmem:[#allocation5 + $0x628] sm:$0xff]  ;;  %v7873_v40 = vcombine.low %v1077_v29, %v1081_v30  ;;  %v7913_v20 = vcombine.low %v1117_v8, %v1121_v9  ;;  %v1392_v29 = vld [vmem:[#allocation5 + $0xfa0] sm:$0xff] }
 0x2b6   : > { %5022 = vmatmul.mubr.bf16.vlgmr.msra.gmra.mrb[4].mxu1 %v10428_v21  ;;  %v7881_v49 = vcombine.low %v1085_v37, %v1089_v39  ;;  %v1129_v17 = vld [vmem:[#allocation5 + $0x768] sm:$0xff] }
 0x2b7   : > { %4893 = vmatmul.mubr.bf16.vlgmr.msra.gmra.mrb[0].mxu0 %v10444_v42  ;;  %5033 = vmatpush1.bf16.msra.mxu1 %v7817_v41  ;;  %v8127_v41 = vcombine.low %v1332_v25, %v1336_v27  ;;  %v1133_v25 = vld [vmem:[#allocation5 + $0x788] sm:$0xff]  ;;  %v7921_v30 = vcombine.low %v1125_v16, %v1129_v17 }
 0x2b8   : > { %4904 = vmatpush1.bf16.msra.mxu0 %v8071_v43  ;;  %5034 = vmatprep.subr.bf16.mxu1 %v7826_v44  ;;  %v7882_v43 = vcombine.high %v1085_v37, %v1089_v39  ;;  %v1348_v44 = vld [vmem:[#allocation5 + $0xe40] sm:$0xff]  ;;  %v1137_v27 = vld [vmem:[#allocation5 + $0x7a8] sm:$0xff] }
 0x2b9   : > { %4905 = vmatprep.subr.bf16.mxu0 %v8080_v46  ;;  %4935 = vmatprep.mubr.bf16.mxu0 %v10446_v50  ;;  %v1093_v46 = vld [vmem:[#allocation5 + $0x648] sm:$0xff]  ;;  %v8144_v56 = vcombine.high %v1348_v44, %v1352_v45  ;;  %v1396_v37 = vld [vmem:[#allocation5 + $0xfc0] sm:$0xff]  ;;  %v7929_v39 = vcombine.low %v1133_v25, %v1137_v27 }
 0x2ba   : > { %5064 = vmatprep.mubr.bf16.mxu1 %v10421_v0  ;;  %v7889_v59 = vcombine.low %v1093_v46, %v1097_v48 }
 0x2bb   : > { %5035 = vmatpush1.bf16.msra.mxu1 %v7825_v51  ;;  %v8135_v51 = vcombine.low %v1340_v35, %v1344_v36  ;;  %v1141_v35 = vld [vmem:[#allocation5 + $0x7c8] sm:$0xff] }
 0x2bc   : > { %4906 = vmatpush1.bf16.msra.mxu0 %v8079_v52  ;;  %5036 = vmatprep.subr.bf16.mxu1 %v7834_v53  ;;  %v7890_v52 = vcombine.high %v1093_v46, %v1097_v48  ;;  %v1356_v53 = vld [vmem:[#allocation5 + $0xe80] sm:$0xff]  ;;  %v1145_v36 = vld [vmem:[#allocation5 + $0x7e8] sm:$0xff] }
 0x2bd   : > { %4907 = vmatprep.subr.bf16.mxu0 %v8088_v57  ;;  %v1105_v57 = vld [vmem:[#allocation5 + $0x6a8] sm:$0xff]  ;;  %v8152_v63 = vcombine.high %v1356_v53, %v1360_v54  ;;  %v1404_v46 = vld [vmem:[#allocation5 + $0x1000] sm:$0xff]  ;;  %v7937_v48 = vcombine.low %v1141_v35, %v1145_v36 }
 0x2be   : > { %v7897_v4 = vcombine.low %v1101_v55, %v1105_v57 }
 0x2bf   : > { %5037 = vmatpush1.bf16.msra.mxu1 %v7833_v60  ;;  %v8143_v60 = vcombine.low %v1348_v44, %v1352_v45  ;;  %v1149_v44 = vld [vmem:[#allocation5 + $0x808] sm:$0xff] }
 0x2c0   : > { %4908 = vmatpush1.bf16.msra.mxu0 %v8087_v61  ;;  %5038 = vmatprep.subr.bf16.mxu1 %v7842_v62  ;;  %v7898_v61 = vcombine.high %v1101_v55, %v1105_v57  ;;  %v1109_v62 = vld [vmem:[#allocation5 + $0x6c8] sm:$0xff]  ;;  %v1412_v55 = vld [vmem:[#allocation5 + $0x1040] sm:$0xff] }
 0x2c1   : > { %4909 = vmatprep.subr.bf16.mxu0 %v8096_v3  ;;  %v1368_v3 = vld [vmem:[#allocation5 + $0xee0] sm:$0xff]  ;;  %v7905_v12 = vcombine.low %v1109_v62, %v1113_v1  ;;  %v1153_v45 = vld [vmem:[#allocation5 + $0x828] sm:$0xff] }
 0x2c2   : > { %v1161_v57 = vld [vmem:[#allocation5 + $0x868] sm:$0xff] }
 0x2c3   : > { %5039 = vmatpush1.bf16.msra.mxu1 %v7841_v5  ;;  %v8151_v5 = vcombine.low %v1356_v53, %v1360_v54  ;;  %v878_v53 = vld [vmem:[%s10372_s2 + $0x80] sm:$0xff] }
 0x2c4   : > { %4910 = vmatpush1.bf16.msra.mxu0 %v8095_v6  ;;  %5040 = vmatprep.subr.bf16.mxu1 %v7850_v7  ;;  %v7906_v6 = vcombine.high %v1109_v62, %v1113_v1  ;;  %v8160_v7 = vcombine.high %v1364_v2, %v1368_v3  ;;  %v7945_v62 = vcombine.low %v1149_v44, %v1153_v45 }
 0x2c5   : > { %4911 = vmatprep.subr.bf16.mxu0 %v8104_v11  ;;  %v1376_v11 = vld [vmem:[#allocation5 + $0xf20] sm:$0xff] }
 0x2c7   : > { %5041 = vmatpush1.bf16.msra.mxu1 %v7849_v13  ;;  %v8159_v13 = vcombine.low %v1364_v2, %v1368_v3 }
 0x2c8   : > { %4912 = vmatpush1.bf16.msra.mxu0 %v8103_v14  ;;  %5042 = vmatprep.subr.bf16.mxu1 %v7858_v15  ;;  %v7914_v14 = vcombine.high %v1117_v8, %v1121_v9  ;;  %v8168_v15 = vcombine.high %v1372_v10, %v1376_v11  ;;  %v1424_v8 = vld [vmem:[#allocation5 + $0x10a0] sm:$0xff] }
 0x2c9   : > { %4913 = vmatprep.subr.bf16.mxu0 %v8112_v18  ;;  %v1380_v18 = vld [vmem:[#allocation5 + $0xf40] sm:$0xff] }
 0x2cb   : > { %5043 = vmatpush1.bf16.msra.mxu1 %v7857_v22  ;;  %v8167_v22 = vcombine.low %v1372_v10, %v1376_v11 }
 0x2cc   : > { %4914 = vmatpush1.bf16.msra.mxu0 %v8111_v23  ;;  %5044 = vmatprep.subr.bf16.mxu1 %v7866_v24  ;;  %v7922_v23 = vcombine.high %v1125_v16, %v1129_v17  ;;  %v8176_v24 = vcombine.high %v1380_v18, %v1384_v19  ;;  %v1432_v16 = vld [vmem:[#allocation5 + $0x10e0] sm:$0xff] }
 0x2cd   : > { %4915 = vmatprep.subr.bf16.mxu0 %v8120_v28  ;;  %v1388_v28 = vld [vmem:[#allocation5 + $0xf80] sm:$0xff] }
 0x2cf   : > { %5045 = vmatpush1.bf16.msra.mxu1 %v7865_v31  ;;  %v8175_v31 = vcombine.low %v1380_v18, %v1384_v19 }
 0x2d0   : > { %4916 = vmatpush1.bf16.msra.mxu0 %v8119_v33  ;;  %5046 = vmatprep.subr.bf16.mxu1 %v7874_v34  ;;  %v7930_v33 = vcombine.high %v1133_v25, %v1137_v27  ;;  %v8184_v34 = vcombine.high %v1388_v28, %v1392_v29  ;;  %v1440_v25 = vld [vmem:[#allocation5 + $0x1120] sm:$0xff] }
 0x2d1   : > { %4917 = vmatprep.subr.bf16.mxu0 %v8128_v38  ;;  %v1400_v38 = vld [vmem:[#allocation5 + $0xfe0] sm:$0xff] }
 0x2d3   : > { %5047 = vmatpush1.bf16.msra.mxu1 %v7873_v40  ;;  %v8183_v40 = vcombine.low %v1388_v28, %v1392_v29 }
 0x2d4   : > { %4918 = vmatpush1.bf16.msra.mxu0 %v8127_v41  ;;  %5048 = vmatprep.subr.bf16.mxu1 %v7882_v43  ;;  %v7938_v41 = vcombine.high %v1141_v35, %v1145_v36  ;;  %v8192_v43 = vcombine.high %v1396_v37, %v1400_v38  ;;  %v1448_v35 = vld [vmem:[#allocation5 + $0x1160] sm:$0xff] }
 0x2d5   : > { %4919 = vmatprep.subr.bf16.mxu0 %v8136_v47  ;;  %v1408_v47 = vld [vmem:[#allocation5 + $0x1020] sm:$0xff] }
 0x2d6   : > { %v8200_v54 = vcombine.high %v1404_v46, %v1408_v47  ;;  %v8199_v1 = vcombine.low %v1404_v46, %v1408_v47 }
 0x2d7   : > { %5049 = vmatpush1.bf16.msra.mxu1 %v7881_v49  ;;  %v8191_v49 = vcombine.low %v1396_v37, %v1400_v38 }
 0x2d8   : > { %4920 = vmatpush1.bf16.msra.mxu0 %v8135_v51  ;;  %5050 = vmatprep.subr.bf16.mxu1 %v7890_v52  ;;  %v7946_v51 = vcombine.high %v1149_v44, %v1153_v45  ;;  %v868_v52 = vld [vmem:[%s10372_s2 + $0x30] sm:$0xff]  ;;  %v1456_v44 = vld [vmem:[#allocation5 + $0x11a0] sm:$0xff] }
 0x2d9   : > { %4921 = vmatprep.subr.bf16.mxu0 %v8144_v56  ;;  %v1157_v56 = vld [vmem:[#allocation5 + $0x848] sm:$0xff] }
 0x2da   : > { %v7954_v2 = vcombine.high %v1157_v56, %v1161_v57  ;;  %v7953_v9 = vcombine.low %v1157_v56, %v1161_v57 }
 0x2db   : > { %5051 = vmatpush1.bf16.msra.mxu1 %v7889_v59  ;;  %v1416_v59 = vld [vmem:[#allocation5 + $0x1060] sm:$0xff] }
 0x2dc   : > { %4922 = vmatpush1.bf16.msra.mxu0 %v8143_v60  ;;  %5052 = vmatprep.subr.bf16.mxu1 %v7898_v61  ;;  %v871_v60 = vld [vmem:[%s10372_s2 + $0x48] sm:$0xff]  ;;  %v881_v61 = vld [vmem:[%s10372_s2 + $0x98] sm:$0xff]  ;;  %v8208_v3 = vcombine.high %v1412_v55, %v1416_v59  ;;  %v8207_v10 = vcombine.low %v1412_v55, %v1416_v59 }
 0x2dd   : > { %4923 = vmatprep.subr.bf16.mxu0 %v8152_v63  ;;  %v10456_v63 = vpack.c.bf16 %v878_v53, %v868_v52  ;;  %v1460_v52 = vld [vmem:[#allocation5 + $0x11c0] sm:$0xff]  ;;  %v1213_v59 = vld [vmem:[#allocation5 + $0xa08] sm:$0xff] }
 0x2de   : > { %v1464_v53 = vld [vmem:[#allocation5 + $0x11e0] sm:$0xff] }
 0x2df   : > { %5053 = vmatpush1.bf16.msra.mxu1 %v7897_v4  ;;  %v1165_v4 = vld [vmem:[#allocation5 + $0x888] sm:$0xff]  ;;  %v8256_v57 = vcombine.high %v1460_v52, %v1464_v53 }
 0x2e0   : > { %4924 = vmatpush1.bf16.msra.mxu0 %v8151_v5  ;;  %5054 = vmatprep.subr.bf16.mxu1 %v7906_v6  ;;  %v1169_v5 = vld [vmem:[#allocation5 + $0x8a8] sm:$0xff]  ;;  %v10458_v6 = vpack.c.bf16 %v881_v61, %v871_v60  ;;  %v1468_v61 = vld [vmem:[#allocation5 + $0x1200] sm:$0xff] }
 0x2e1   : > { %4925 = vmatprep.subr.bf16.mxu0 %v8160_v7  ;;  %v1420_v7 = vld [vmem:[#allocation5 + $0x1080] sm:$0xff]  ;;  %v7962_v11 = vcombine.high %v1165_v4, %v1169_v5  ;;  %v7961_v17 = vcombine.low %v1165_v4, %v1169_v5  ;;  %v1217_v60 = vld [vmem:[#allocation5 + $0xa28] sm:$0xff] }
 0x2e2   : > { %v8215_v18 = vcombine.low %v1420_v7, %v1424_v8  ;;  %v1221_v5 = vld [vmem:[#allocation5 + $0xa48] sm:$0xff] }
 0x2e3   : > { %5055 = vmatpush1.bf16.msra.mxu1 %v7905_v12  ;;  %v8216_v12 = vcombine.high %v1420_v7, %v1424_v8  ;;  %v1225_v7 = vld [vmem:[#allocation5 + $0xa68] sm:$0xff]  ;;  %v1476_v8 = vld [vmem:[#allocation5 + $0x1240] sm:$0xff] }
 0x2e4   : > { %4926 = vmatpush1.bf16.msra.mxu0 %v8159_v13  ;;  %5056 = vmatprep.subr.bf16.mxu1 %v7914_v14  ;;  %v1173_v13 = vld [vmem:[#allocation5 + $0x8c8] sm:$0xff] }
 0x2e5   : > { %4927 = vmatprep.subr.bf16.mxu0 %v8168_v15  ;;  %v1177_v14 = vld [vmem:[#allocation5 + $0x8e8] sm:$0xff]  ;;  %v1428_v15 = vld [vmem:[#allocation5 + $0x10c0] sm:$0xff] }
 0x2e6   : > { %v7970_v19 = vcombine.high %v1173_v13, %v1177_v14  ;;  %v7969_v27 = vcombine.low %v1173_v13, %v1177_v14  ;;  %v8223_v28 = vcombine.low %v1428_v15, %v1432_v16  ;;  %v1229_v14 = vld [vmem:[#allocation5 + $0xa88] sm:$0xff] }
 0x2e7   : > { %5057 = vmatpush1.bf16.msra.mxu1 %v7913_v20  ;;  %v8224_v20 = vcombine.high %v1428_v15, %v1432_v16  ;;  %v1233_v15 = vld [vmem:[#allocation5 + $0xaa8] sm:$0xff]  ;;  %v1484_v16 = vld [vmem:[#allocation5 + $0x1280] sm:$0xff] }
 0x2e8   : > { %4928 = vmatpush1.bf16.msra.mxu0 %v8167_v22  ;;  %5058 = vmatprep.subr.bf16.mxu1 %v7922_v23  ;;  %v1181_v22 = vld [vmem:[#allocation5 + $0x908] sm:$0xff] }
 0x2e9   : > { %4929 = vmatprep.subr.bf16.mxu0 %v8176_v24  ;;  %v1185_v23 = vld [vmem:[#allocation5 + $0x928] sm:$0xff]  ;;  %v1436_v24 = vld [vmem:[#allocation5 + $0x1100] sm:$0xff] }
 0x2ea   : > { %v7978_v29 = vcombine.high %v1181_v22, %v1185_v23  ;;  %v7977_v36 = vcombine.low %v1181_v22, %v1185_v23  ;;  %v8231_v37 = vcombine.low %v1436_v24, %v1440_v25  ;;  %v1237_v23 = vld [vmem:[#allocation5 + $0xac8] sm:$0xff] }
 0x2eb   : > { %5059 = vmatpush1.bf16.msra.mxu1 %v7921_v30  ;;  %v8232_v30 = vcombine.high %v1436_v24, %v1440_v25  ;;  %v1241_v24 = vld [vmem:[#allocation5 + $0xae8] sm:$0xff]  ;;  %v1492_v25 = vld [vmem:[#allocation5 + $0x12c0] sm:$0xff] }
 0x2ec   : > { %4930 = vmatpush1.bf16.msra.mxu0 %v8175_v31  ;;  %5060 = vmatprep.subr.bf16.mxu1 %v7930_v33  ;;  %v1189_v31 = vld [vmem:[#allocation5 + $0x948] sm:$0xff] }
 0x2ed   : > { %4931 = vmatprep.subr.bf16.mxu0 %v8184_v34  ;;  %v1193_v33 = vld [vmem:[#allocation5 + $0x968] sm:$0xff]  ;;  %v1444_v34 = vld [vmem:[#allocation5 + $0x1140] sm:$0xff] }
 0x2ee   : > { %v7986_v38 = vcombine.high %v1189_v31, %v1193_v33  ;;  %v7985_v45 = vcombine.low %v1189_v31, %v1193_v33  ;;  %v8239_v46 = vcombine.low %v1444_v34, %v1448_v35  ;;  %v1245_v33 = vld [vmem:[#allocation5 + $0xb08] sm:$0xff] }
 0x2ef   : > { %5061 = vmatpush1.bf16.msra.mxu1 %v7929_v39  ;;  %v8240_v39 = vcombine.high %v1444_v34, %v1448_v35  ;;  %v1249_v34 = vld [vmem:[#allocation5 + $0xb28] sm:$0xff]  ;;  %v1500_v35 = vld [vmem:[#allocation5 + $0x1300] sm:$0xff] }
 0x2f0   : > { %4932 = vmatpush1.bf16.msra.mxu0 %v8183_v40  ;;  %5062 = vmatprep.subr.bf16.mxu1 %v7938_v41  ;;  %v1197_v40 = vld [vmem:[#allocation5 + $0x988] sm:$0xff] }
 0x2f1   : > { %4933 = vmatprep.subr.bf16.mxu0 %v8192_v43  ;;  %v1201_v41 = vld [vmem:[#allocation5 + $0x9a8] sm:$0xff]  ;;  %v1452_v43 = vld [vmem:[#allocation5 + $0x1180] sm:$0xff] }
 0x2f2   : > { %v7994_v47 = vcombine.high %v1197_v40, %v1201_v41  ;;  %v8247_v55 = vcombine.low %v1452_v43, %v1456_v44 }
 0x2f3   : > { %5063 = vmatpush1.bf16.msra.mxu1 %v7937_v48  ;;  %v8248_v48 = vcombine.high %v1452_v43, %v1456_v44  ;;  %v1257_v43 = vld [vmem:[#allocation5 + $0xb68] sm:$0xff]  ;;  %v1508_v44 = vld [vmem:[#allocation5 + $0x1340] sm:$0xff] }
 0x2f4   : > { %4934 = vmatpush1.bf16.msra.mxu0 %v8191_v49  ;;  %5075 = vmatprep.subr.bf16.mxu1 %v7946_v51  ;;  %v1205_v49 = vld [vmem:[#allocation5 + $0x9c8] sm:$0xff] }
 0x2f5   : > { %4946 = vmatprep.subr.bf16.mxu0 %v8200_v54  ;;  %v1209_v51 = vld [vmem:[#allocation5 + $0x9e8] sm:$0xff]  ;;  %v7993_v54 = vcombine.low %v1197_v40, %v1201_v41 }
 0x2f6   : > { %5065 = vmatmul.mubr.bf16.vlgmr.msra.gmra.mrb[4].mxu1 %v10432_v26  ;;  %v8002_v56 = vcombine.high %v1205_v49, %v1209_v51  ;;  %v1253_v41 = vld [vmem:[#allocation5 + $0xb48] sm:$0xff] }
 0x2f7   : > { %4936 = vmatmul.mubr.bf16.vlgmr.msra.gmra.mrb[0].mxu0 %v10456_v63  ;;  %5076 = vmatpush1.bf16.msra.mxu1 %v7945_v62  ;;  %v1472_v62 = vld [vmem:[#allocation5 + $0x1220] sm:$0xff] }
 0x2f8   : > { %4947 = vmatpush1.bf16.msra.mxu0 %v8199_v1  ;;  %5077 = vmatprep.subr.bf16.mxu1 %v7954_v2  ;;  %v8001_v1 = vcombine.low %v1205_v49, %v1209_v51  ;;  %v8255_v2 = vcombine.low %v1460_v52, %v1464_v53  ;;  %v8264_v4 = vcombine.high %v1468_v61, %v1472_v62  ;;  %v1261_v51 = vld [vmem:[#allocation5 + $0xb88] sm:$0xff]  ;;  %v1516_v53 = vld [vmem:[#allocation5 + $0x1380] sm:$0xff] }
 0x2f9   : > { %4948 = vmatprep.subr.bf16.mxu0 %v8208_v3  ;;  %4978 = vmatprep.mubr.bf16.mxu0 %v10458_v6  ;;  %v8010_v3 = vcombine.high %v1213_v59, %v1217_v60  ;;  %v1265_v52 = vld [vmem:[#allocation5 + $0xba8] sm:$0xff] }
 0x2fa   : > { %5107 = vmatprep.mubr.bf16.mxu1 %v10434_v32 }
 0x2fb   : > { %5078 = vmatpush1.bf16.msra.mxu1 %v7953_v9  ;;  %v1480_v9 = vld [vmem:[#allocation5 + $0x1260] sm:$0xff] }
 0x2fc   : > { %4949 = vmatpush1.bf16.msra.mxu0 %v8207_v10  ;;  %5079 = vmatprep.subr.bf16.mxu1 %v7962_v11  ;;  %v8009_v10 = vcombine.low %v1213_v59, %v1217_v60  ;;  %v8263_v11 = vcombine.low %v1468_v61, %v1472_v62  ;;  %v8272_v13 = vcombine.high %v1476_v8, %v1480_v9  ;;  %v1269_v60 = vld [vmem:[#allocation5 + $0xbc8] sm:$0xff]  ;;  %v1524_v62 = vld [vmem:[#allocation5 + $0x13c0] sm:$0xff] }
 0x2fd   : > { %4950 = vmatprep.subr.bf16.mxu0 %v8216_v12  ;;  %v8018_v12 = vcombine.high %v1221_v5, %v1225_v7  ;;  %v1273_v61 = vld [vmem:[#allocation5 + $0xbe8] sm:$0xff] }
 0x2ff   : > { %5080 = vmatpush1.bf16.msra.mxu1 %v7961_v17  ;;  %v1488_v17 = vld [vmem:[#allocation5 + $0x12a0] sm:$0xff] }
 0x300   : > { %4951 = vmatpush1.bf16.msra.mxu0 %v8215_v18  ;;  %5081 = vmatprep.subr.bf16.mxu1 %v7970_v19  ;;  %v8017_v18 = vcombine.low %v1221_v5, %v1225_v7  ;;  %v8271_v19 = vcombine.low %v1476_v8, %v1480_v9  ;;  %v8280_v22 = vcombine.high %v1484_v16, %v1488_v17  ;;  %v1277_v7 = vld [vmem:[#allocation5 + $0xc08] sm:$0xff]  ;;  %v894_v9 = vld [vmem:[#allocation5 + $0x10] sm:$0xff] }
 0x301   : > { %4952 = vmatprep.subr.bf16.mxu0 %v8224_v20  ;;  %v8026_v20 = vcombine.high %v1229_v14, %v1233_v15  ;;  %v1281_v8 = vld [vmem:[#allocation5 + $0xc28] sm:$0xff] }
 0x303   : > { %5082 = vmatpush1.bf16.msra.mxu1 %v7969_v27  ;;  %v1496_v27 = vld [vmem:[#allocation5 + $0x12e0] sm:$0xff] }
 0x304   : > { %4953 = vmatpush1.bf16.msra.mxu0 %v8223_v28  ;;  %5083 = vmatprep.subr.bf16.mxu1 %v7978_v29  ;;  %v8025_v28 = vcombine.low %v1229_v14, %v1233_v15  ;;  %v8279_v29 = vcombine.low %v1484_v16, %v1488_v17  ;;  %v8288_v31 = vcombine.high %v1492_v25, %v1496_v27  ;;  %v880_v14 = vld [vmem:[%s10372_s2 + $0x90] sm:$0xff]  ;;  %v1285_v17 = vld [vmem:[#allocation5 + $0xc48] sm:$0xff] }
 0x305   : > { %4954 = vmatprep.subr.bf16.mxu0 %v8232_v30  ;;  %v8034_v30 = vcombine.high %v1237_v23, %v1241_v24  ;;  %v8074_v15 = vcombine.high %v1277_v7, %v1281_v8 }
 0x307   : > { %5084 = vmatpush1.bf16.msra.mxu1 %v7977_v36  ;;  %v1504_v36 = vld [vmem:[#allocation5 + $0x1320] sm:$0xff] }
 0x308   : > { %4955 = vmatpush1.bf16.msra.mxu0 %v8231_v37  ;;  %5085 = vmatprep.subr.bf16.mxu1 %v7986_v38  ;;  %v8033_v37 = vcombine.low %v1237_v23, %v1241_v24  ;;  %v8287_v38 = vcombine.low %v1492_v25, %v1496_v27  ;;  %v8296_v40 = vcombine.high %v1500_v35, %v1504_v36 }
 0x309   : > { %4956 = vmatprep.subr.bf16.mxu0 %v8240_v39  ;;  %v8042_v39 = vcombine.high %v1245_v33, %v1249_v34  ;;  %v8073_v23 = vcombine.low %v1277_v7, %v1281_v8 }
 0x30b   : > { %5086 = vmatpush1.bf16.msra.mxu1 %v7985_v45  ;;  %v1512_v45 = vld [vmem:[#allocation5 + $0x1360] sm:$0xff] }
 0x30c   : > { %4957 = vmatpush1.bf16.msra.mxu0 %v8239_v46  ;;  %5087 = vmatprep.subr.bf16.mxu1 %v7994_v47  ;;  %v8041_v46 = vcombine.low %v1245_v33, %v1249_v34  ;;  %v8295_v47 = vcombine.low %v1500_v35, %v1504_v36  ;;  %v8304_v49 = vcombine.high %v1508_v44, %v1512_v45 }
 0x30d   : > { %4958 = vmatprep.subr.bf16.mxu0 %v8248_v48  ;;  %v8050_v48 = vcombine.high %v1253_v41, %v1257_v43 }
 0x30f   : > { %5088 = vmatpush1.bf16.msra.mxu1 %v7993_v54  ;;  %v1520_v54 = vld [vmem:[#allocation5 + $0x13a0] sm:$0xff] }
 0x310   : > { %4959 = vmatpush1.bf16.msra.mxu0 %v8247_v55  ;;  %5089 = vmatprep.subr.bf16.mxu1 %v8002_v56  ;;  %v8049_v55 = vcombine.low %v1253_v41, %v1257_v43  ;;  %v8303_v56 = vcombine.low %v1508_v44, %v1512_v45  ;;  %v8312_v59 = vcombine.high %v1516_v53, %v1520_v54 }
 0x311   : > { %4960 = vmatprep.subr.bf16.mxu0 %v8256_v57  ;;  %v8058_v57 = vcombine.high %v1261_v51, %v1265_v52 }
 0x313   : > { %5090 = vmatpush1.bf16.msra.mxu1 %v8001_v1  ;;  %v1528_v1 = vld [vmem:[#allocation5 + $0x13e0] sm:$0xff] }
 0x314   : > { %4961 = vmatpush1.bf16.msra.mxu0 %v8255_v2  ;;  %5091 = vmatprep.subr.bf16.mxu1 %v8010_v3  ;;  %v8057_v2 = vcombine.low %v1261_v51, %v1265_v52  ;;  %v8311_v3 = vcombine.low %v1516_v53, %v1520_v54  ;;  %v8320_v5 = vcombine.high %v1524_v62, %v1528_v1 }
 0x315   : > { %4962 = vmatprep.subr.bf16.mxu0 %v8264_v4  ;;  %v8066_v4 = vcombine.high %v1269_v60, %v1273_v61 }
 0x317   : > { %5092 = vmatpush1.bf16.msra.mxu1 %v8009_v10  ;;  %v898_v10 = vld [vmem:[#allocation5 + $0x30] sm:$0xff] }
 0x318   : > { %4963 = vmatpush1.bf16.msra.mxu0 %v8263_v11  ;;  %5093 = vmatprep.subr.bf16.mxu1 %v8018_v12  ;;  %v8065_v11 = vcombine.low %v1269_v60, %v1273_v61  ;;  %v8319_v12 = vcombine.low %v1524_v62, %v1528_v1  ;;  %v7692_v16 = vcombine.high %v894_v9, %v898_v10 }
 0x319   : > { %4964 = vmatprep.subr.bf16.mxu0 %v8272_v13  ;;  %v870_v13 = vld [vmem:[%s10372_s2 + $0x40] sm:$0xff]  ;;  %v7691_v24 = vcombine.low %v894_v9, %v898_v10  ;;  %s8492_s2 = sshll.u32 (%p10993_p3), %s10994_s20, 1 }
 0x31a   : > { %s7395_s22 = ssub.s32 (%p10993_p3), 3, %s8492_s2 }
 0x31b   : > { %5094 = vmatpush1.bf16.msra.mxu1 %v8017_v18  ;;  %v1289_v18 = vld [vmem:[#allocation5 + $0xc68] sm:$0xff]  ;;  %p7396_p6 = scmp.lt.s32.totalorder (%p10993_p3), %s7395_s22, 2 }
 0x31c   : > { %4965 = vmatpush1.bf16.msra.mxu0 %v8271_v19  ;;  %5095 = vmatprep.subr.bf16.mxu1 %v8026_v20  ;;  %v902_v19 = vld [vmem:[#allocation5 + $0x50] sm:$0xff]  ;;  %v8082_v25 = vcombine.high %v1285_v17, %v1289_v18  ;;  %v8081_v33 = vcombine.low %v1285_v17, %v1289_v18 }
 0x31d   : > { %4966 = vmatprep.subr.bf16.mxu0 %v8280_v22  ;;  %v906_v20 = vld [vmem:[#allocation5 + $0x70] sm:$0xff]  ;;  %v10466_v22 = vpack.c.bf16 %v880_v14, %v870_v13  ;;  %v1337_v13 = vld [vmem:[#allocation5 + $0xde8] sm:$0xff] }
 0x31e   : > { %v7700_v27 = vcombine.high %v902_v19, %v906_v20  ;;  %v7699_v34 = vcombine.low %v902_v19, %v906_v20 }
 0x31f   : > { %5096 = vmatpush1.bf16.msra.mxu1 %v8025_v28  ;;  %v1293_v28 = vld [vmem:[#allocation5 + $0xc88] sm:$0xff] }
 0x320   : > { %4967 = vmatpush1.bf16.msra.mxu0 %v8279_v29  ;;  %5097 = vmatprep.subr.bf16.mxu1 %v8034_v30  ;;  %v1297_v29 = vld [vmem:[#allocation5 + $0xca8] sm:$0xff]  ;;  %v910_v30 = vld [vmem:[#allocation5 + $0x90] sm:$0xff] }
 0x321   : > { %4968 = vmatprep.subr.bf16.mxu0 %v8288_v31  ;;  %v914_v31 = vld [vmem:[#allocation5 + $0xb0] sm:$0xff]  ;;  %v8090_v35 = vcombine.high %v1293_v28, %v1297_v29  ;;  %v8089_v41 = vcombine.low %v1293_v28, %v1297_v29 }
 0x322   : > { %v7708_v36 = vcombine.high %v910_v30, %v914_v31  ;;  %v7707_v43 = vcombine.low %v910_v30, %v914_v31  ;;  %v958_v28 = vld [vmem:[#allocation5 + $0x210] sm:$0xff] }
 0x323   : > { %5098 = vmatpush1.bf16.msra.mxu1 %v8033_v37  ;;  %v1301_v37 = vld [vmem:[#allocation5 + $0xcc8] sm:$0xff]  ;;  %v962_v29 = vld [vmem:[#allocation5 + $0x230] sm:$0xff] }
 0x324   : > { %4969 = vmatpush1.bf16.msra.mxu0 %v8287_v38  ;;  %5099 = vmatprep.subr.bf16.mxu1 %v8042_v39  ;;  %v1305_v38 = vld [vmem:[#allocation5 + $0xce8] sm:$0xff]  ;;  %v918_v39 = vld [vmem:[#allocation5 + $0xd0] sm:$0xff] }
 0x325   : > { %4970 = vmatprep.subr.bf16.mxu0 %v8296_v40  ;;  %v922_v40 = vld [vmem:[#allocation5 + $0xf0] sm:$0xff]  ;;  %v8098_v44 = vcombine.high %v1301_v37, %v1305_v38  ;;  %v8097_v51 = vcombine.low %v1301_v37, %v1305_v38 }
 0x326   : > { %v7716_v45 = vcombine.high %v918_v39, %v922_v40  ;;  %v7715_v52 = vcombine.low %v918_v39, %v922_v40  ;;  %v966_v37 = vld [vmem:[#allocation5 + $0x250] sm:$0xff]  ;;  %v7755_v40 = vcombine.low %v958_v28, %v962_v29 }
 0x327   : > { %5100 = vmatpush1.bf16.msra.mxu1 %v8041_v46  ;;  %v1309_v46 = vld [vmem:[#allocation5 + $0xd08] sm:$0xff]  ;;  %v970_v38 = vld [vmem:[#allocation5 + $0x270] sm:$0xff] }
 0x328   : > { %4971 = vmatpush1.bf16.msra.mxu0 %v8295_v47  ;;  %5101 = vmatprep.subr.bf16.mxu1 %v8050_v48  ;;  %v1313_v47 = vld [vmem:[#allocation5 + $0xd28] sm:$0xff]  ;;  %v926_v48 = vld [vmem:[#allocation5 + $0x110] sm:$0xff] }
 0x329   : > { %4972 = vmatprep.subr.bf16.mxu0 %v8304_v49  ;;  %v930_v49 = vld [vmem:[#allocation5 + $0x130] sm:$0xff]  ;;  %v8106_v53 = vcombine.high %v1309_v46, %v1313_v47  ;;  %v8105_v60 = vcombine.low %v1309_v46, %v1313_v47 }
 0x32a   : > { %v7724_v54 = vcombine.high %v926_v48, %v930_v49  ;;  %v7723_v61 = vcombine.low %v926_v48, %v930_v49  ;;  %v974_v46 = vld [vmem:[#allocation5 + $0x290] sm:$0xff]  ;;  %v7763_v49 = vcombine.low %v966_v37, %v970_v38 }
 0x32b   : > { %5102 = vmatpush1.bf16.msra.mxu1 %v8049_v55  ;;  %v1317_v55 = vld [vmem:[#allocation5 + $0xd48] sm:$0xff]  ;;  %v978_v47 = vld [vmem:[#allocation5 + $0x2b0] sm:$0xff] }
 0x32c   : > { %4973 = vmatpush1.bf16.msra.mxu0 %v8303_v56  ;;  %5103 = vmatprep.subr.bf16.mxu1 %v8058_v57  ;;  %v1321_v56 = vld [vmem:[#allocation5 + $0xd68] sm:$0xff]  ;;  %v934_v57 = vld [vmem:[#allocation5 + $0x150] sm:$0xff] }
 0x32d   : > { %4974 = vmatprep.subr.bf16.mxu0 %v8312_v59  ;;  %v938_v59 = vld [vmem:[#allocation5 + $0x170] sm:$0xff]  ;;  %v8114_v62 = vcombine.high %v1317_v55, %v1321_v56  ;;  %v8113_v7 = vcombine.low %v1317_v55, %v1321_v56 }
 0x32e   : > { %v7732_v1 = vcombine.high %v934_v57, %v938_v59  ;;  %v7731_v8 = vcombine.low %v934_v57, %v938_v59  ;;  %v982_v55 = vld [vmem:[#allocation5 + $0x2d0] sm:$0xff]  ;;  %v7771_v59 = vcombine.low %v974_v46, %v978_v47 }
 0x32f   : > { %5104 = vmatpush1.bf16.msra.mxu1 %v8057_v2  ;;  %v1325_v2 = vld [vmem:[#allocation5 + $0xd88] sm:$0xff]  ;;  %v986_v56 = vld [vmem:[#allocation5 + $0x2f0] sm:$0xff] }
 0x330   : > { %4975 = vmatpush1.bf16.msra.mxu0 %v8311_v3  ;;  %5105 = vmatprep.subr.bf16.mxu1 %v8066_v4  ;;  %v1329_v3 = vld [vmem:[#allocation5 + $0xda8] sm:$0xff]  ;;  %v942_v4 = vld [vmem:[#allocation5 + $0x190] sm:$0xff] }
 0x331   : > { %4976 = vmatprep.subr.bf16.mxu0 %v8320_v5  ;;  %v946_v5 = vld [vmem:[#allocation5 + $0x1b0] sm:$0xff]  ;;  %v8122_v9 = vcombine.high %v1325_v2, %v1329_v3  ;;  %v8121_v18 = vcombine.low %v1325_v2, %v1329_v3 }
 0x332   : > { %v7739_v20 = vcombine.low %v942_v4, %v946_v5  ;;  %v990_v2 = vld [vmem:[#allocation5 + $0x310] sm:$0xff] }
 0x333   : > { %5106 = vmatpush1.bf16.msra.mxu1 %v8065_v11  ;;  %v7740_v11 = vcombine.high %v942_v4, %v946_v5  ;;  %v994_v3 = vld [vmem:[#allocation5 + $0x330] sm:$0xff]  ;;  %v7779_v5 = vcombine.low %v982_v55, %v986_v56 }
 0x334   : > { %4977 = vmatpush1.bf16.msra.mxu0 %v8319_v12  ;;  %5118 = vmatprep.subr.bf16.mxu1 %v8074_v15  ;;  %v1333_v12 = vld [vmem:[#allocation5 + $0xdc8] sm:$0xff]  ;;  %v950_v15 = vld [vmem:[#allocation5 + $0x1d0] sm:$0xff] }
 0x335   : > { %5204 = vmatprep.subr.bf16.mxu0 %v7692_v16  ;;  %v954_v16 = vld [vmem:[#allocation5 + $0x1f0] sm:$0xff]  ;;  %v8129_v30 = vcombine.low %v1333_v12, %v1337_v13 }
 0x336   : > { %5108 = vmatmul.mubr.bf16.vlgmr.msra.gmra.mrb[4].mxu1 %v10444_v42  ;;  %v7747_v31 = vcombine.low %v950_v15, %v954_v16 }
 0x337   : > { %4979 = vmatmul.mubr.bf16.vlgmr.msra.gmra.mrb[0].mxu0 %v10466_v22  ;;  %5119 = vmatpush1.bf16.msra.mxu1 %v8073_v23  ;;  %v8130_v23 = vcombine.high %v1333_v12, %v1337_v13  ;;  %v998_v12 = vld [vmem:[#allocation5 + $0x350] sm:$0xff] }
 0x338   : > { %5205 = vmatpush1.bf16.msra.mxu0 %v7691_v24  ;;  %5120 = vmatprep.subr.bf16.mxu1 %v8082_v25  ;;  %v7748_v24 = vcombine.high %v950_v15, %v954_v16  ;;  %v1341_v25 = vld [vmem:[#allocation5 + $0xe08] sm:$0xff]  ;;  %v1002_v13 = vld [vmem:[#allocation5 + $0x370] sm:$0xff]  ;;  %v7787_v16 = vcombine.low %v990_v2, %v994_v3 }
 0x339   : > { %5206 = vmatprep.subr.bf16.mxu0 %v7700_v27  ;;  %5150 = vmatprep.mubr.bf16.mxu1 %v10446_v50  ;;  %v1345_v27 = vld [vmem:[#allocation5 + $0xe28] sm:$0xff] }
 0x33a   : > { %5236 = vmatprep.mubr.bf16.mxu0 %v10416_v58  ;;  %v8137_v39 = vcombine.low %v1341_v25, %v1345_v27 }
 0x33b   : > { %5121 = vmatpush1.bf16.msra.mxu1 %v8081_v33  ;;  %v8138_v33 = vcombine.high %v1341_v25, %v1345_v27  ;;  %v1006_v25 = vld [vmem:[#allocation5 + $0x390] sm:$0xff] }
 0x33c   : > { %5207 = vmatpush1.bf16.msra.mxu0 %v7699_v34  ;;  %5122 = vmatprep.subr.bf16.mxu1 %v8090_v35  ;;  %v7756_v34 = vcombine.high %v958_v28, %v962_v29  ;;  %v1349_v35 = vld [vmem:[#allocation5 + $0xe48] sm:$0xff]  ;;  %v1010_v27 = vld [vmem:[#allocation5 + $0x3b0] sm:$0xff]  ;;  %v7795_v29 = vcombine.low %v998_v12, %v1002_v13 }
 0x33d   : > { %5208 = vmatprep.subr.bf16.mxu0 %v7708_v36  ;;  %v1353_v36 = vld [vmem:[#allocation5 + $0xe68] sm:$0xff] }
 0x33e   : > { %v8145_v48 = vcombine.low %v1349_v35, %v1353_v36 }
 0x33f   : > { %5123 = vmatpush1.bf16.msra.mxu1 %v8089_v41  ;;  %v8146_v41 = vcombine.high %v1349_v35, %v1353_v36  ;;  %v1014_v35 = vld [vmem:[#allocation5 + $0x3d0] sm:$0xff] }
 0x340   : > { %5209 = vmatpush1.bf16.msra.mxu0 %v7707_v43  ;;  %5124 = vmatprep.subr.bf16.mxu1 %v8098_v44  ;;  %v7764_v43 = vcombine.high %v966_v37, %v970_v38  ;;  %v1357_v44 = vld [vmem:[#allocation5 + $0xe88] sm:$0xff]  ;;  %v1018_v36 = vld [vmem:[#allocation5 + $0x3f0] sm:$0xff]  ;;  %v7803_v38 = vcombine.low %v1006_v25, %v1010_v27 }
 0x341   : > { %5210 = vmatprep.subr.bf16.mxu0 %v7716_v45  ;;  %v1361_v45 = vld [vmem:[#allocation5 + $0xea8] sm:$0xff] }
 0x342   : > { %v8153_v57 = vcombine.low %v1357_v44, %v1361_v45 }
 0x343   : > { %5125 = vmatpush1.bf16.msra.mxu1 %v8097_v51  ;;  %v8154_v51 = vcombine.high %v1357_v44, %v1361_v45  ;;  %v1022_v44 = vld [vmem:[#allocation5 + $0x410] sm:$0xff] }
 0x344   : > { %5211 = vmatpush1.bf16.msra.mxu0 %v7715_v52  ;;  %5126 = vmatprep.subr.bf16.mxu1 %v8106_v53  ;;  %v7772_v52 = vcombine.high %v974_v46, %v978_v47  ;;  %v1365_v53 = vld [vmem:[#allocation5 + $0xec8] sm:$0xff]  ;;  %v1026_v45 = vld [vmem:[#allocation5 + $0x430] sm:$0xff]  ;;  %v7811_v47 = vcombine.low %v1014_v35, %v1018_v36 }
 0x345   : > { %5212 = vmatprep.subr.bf16.mxu0 %v7724_v54  ;;  %v1369_v54 = vld [vmem:[#allocation5 + $0xee8] sm:$0xff] }
 0x346   : > { %v8161_v4 = vcombine.low %v1365_v53, %v1369_v54 }
 0x347   : > { %5127 = vmatpush1.bf16.msra.mxu1 %v8105_v60  ;;  %v8162_v60 = vcombine.high %v1365_v53, %v1369_v54  ;;  %v1030_v53 = vld [vmem:[#allocation5 + $0x450] sm:$0xff] }
 0x348   : > { %5213 = vmatpush1.bf16.msra.mxu0 %v7723_v61  ;;  %5128 = vmatprep.subr.bf16.mxu1 %v8114_v62  ;;  %v7780_v61 = vcombine.high %v982_v55, %v986_v56  ;;  %v1373_v62 = vld [vmem:[#allocation5 + $0xf08] sm:$0xff]  ;;  %v1034_v54 = vld [vmem:[#allocation5 + $0x470] sm:$0xff]  ;;  %v7819_v56 = vcombine.low %v1022_v44, %v1026_v45 }
 0x349   : > { %v10472_v10 = vpop.f32.mrb[0].mxu1  ;;  %5214 = vmatprep.subr.bf16.mxu0 %v7732_v1  ;;  %v1377_v1 = vld [vmem:[#allocation5 + $0xf28] sm:$0xff] }
 0x34a   : > { %v10474_v14 = vpop.f32.mrb[1].mxu1  ;;  %v8169_v15 = vcombine.low %v1373_v62, %v1377_v1 }
 0x34b   : > { %v10476_v17 = vpop.f32.mrb[2].mxu1  ;;  %5129 = vmatpush1.bf16.msra.mxu1 %v8113_v7  ;;  %v8170_v7 = vcombine.high %v1373_v62, %v1377_v1  ;;  %v1038_v62 = vld [vmem:[#allocation5 + $0x490] sm:$0xff] }
 0x34c   : > { %5215 = vmatpush1.bf16.msra.mxu0 %v7731_v8  ;;  %v10478_v19 = vpop.f32.mrb[3].mxu1  ;;  %5130 = vmatprep.subr.bf16.mxu1 %v8122_v9  ;;  %v7788_v8 = vcombine.high %v990_v2, %v994_v3  ;;  %v1381_v9 = vld [vmem:[#allocation5 + $0xf48] sm:$0xff]  ;;  %v1042_v1 = vld [vmem:[#allocation5 + $0x4b0] sm:$0xff]  ;;  %v7827_v3 = vcombine.low %v1030_v53, %v1034_v54 }
 0x34d   : > { %5216 = vmatprep.subr.bf16.mxu0 %v7740_v11  ;;  %v1385_v11 = vld [vmem:[#allocation5 + $0xf68] sm:$0xff] }
 0x34e   : > { %v8177_v28 = vcombine.low %v1381_v9, %v1385_v11 }
 0x34f   : > { %5131 = vmatpush1.bf16.msra.mxu1 %v8121_v18  ;;  %v8178_v18 = vcombine.high %v1381_v9, %v1385_v11  ;;  %v1046_v9 = vld [vmem:[#allocation5 + $0x4d0] sm:$0xff] }
 0x350   : > { %5217 = vmatpush1.bf16.msra.mxu0 %v7739_v20  ;;  %5132 = vmatprep.subr.bf16.mxu1 %v8130_v23  ;;  %v7796_v20 = vcombine.high %v998_v12, %v1002_v13  ;;  %v1389_v23 = vld [vmem:[#allocation5 + $0xf88] sm:$0xff]  ;;  %v1050_v11 = vld [vmem:[#allocation5 + $0x4f0] sm:$0xff]  ;;  %v7835_v13 = vcombine.low %v1038_v62, %v1042_v1 }
 0x351   : > { %5218 = vmatprep.subr.bf16.mxu0 %v7748_v24  ;;  %v1393_v24 = vld [vmem:[#allocation5 + $0xfa8] sm:$0xff] }
 0x352   : > { %v8185_v37 = vcombine.low %v1389_v23, %v1393_v24 }
 0x353   : > { %5133 = vmatpush1.bf16.msra.mxu1 %v8129_v30  ;;  %v8186_v30 = vcombine.high %v1389_v23, %v1393_v24  ;;  %v1054_v23 = vld [vmem:[#allocation5 + $0x510] sm:$0xff] }
 0x354   : > { %5219 = vmatpush1.bf16.msra.mxu0 %v7747_v31  ;;  %5134 = vmatprep.subr.bf16.mxu1 %v8138_v33  ;;  %v7804_v31 = vcombine.high %v1006_v25, %v1010_v27  ;;  %v1397_v33 = vld [vmem:[#allocation5 + $0xfc8] sm:$0xff]  ;;  %v1058_v24 = vld [vmem:[#allocation5 + $0x530] sm:$0xff]  ;;  %v7843_v27 = vcombine.low %v1046_v9, %v1050_v11 }
 0x355   : > { %5220 = vmatprep.subr.bf16.mxu0 %v7756_v34  ;;  %v1401_v34 = vld [vmem:[#allocation5 + $0xfe8] sm:$0xff] }
 0x356   : > { %v8193_v46 = vcombine.low %v1397_v33, %v1401_v34 }
 0x357   : > { %5135 = vmatpush1.bf16.msra.mxu1 %v8137_v39  ;;  %v8194_v39 = vcombine.high %v1397_v33, %v1401_v34  ;;  %v1062_v33 = vld [vmem:[#allocation5 + $0x550] sm:$0xff] }
 0x358   : > { %5221 = vmatpush1.bf16.msra.mxu0 %v7755_v40  ;;  %5136 = vmatprep.subr.bf16.mxu1 %v8146_v41  ;;  %v7812_v40 = vcombine.high %v1014_v35, %v1018_v36  ;;  %v1405_v41 = vld [vmem:[#allocation5 + $0x1008] sm:$0xff]  ;;  %v1066_v34 = vld [vmem:[#allocation5 + $0x570] sm:$0xff]  ;;  %v7851_v36 = vcombine.low %v1054_v23, %v1058_v24 }
 0x359   : > { %5222 = vmatprep.subr.bf16.mxu0 %v7764_v43  ;;  %v1409_v43 = vld [vmem:[#allocation5 + $0x1028] sm:$0xff] }
 0x35a   : > { %v8201_v55 = vcombine.low %v1405_v41, %v1409_v43 }
 0x35b   : > { %5137 = vmatpush1.bf16.msra.mxu1 %v8145_v48  ;;  %v8202_v48 = vcombine.high %v1405_v41, %v1409_v43  ;;  %v1070_v41 = vld [vmem:[#allocation5 + $0x590] sm:$0xff] }
 0x35c   : > { %5223 = vmatpush1.bf16.msra.mxu0 %v7763_v49  ;;  %5138 = vmatprep.subr.bf16.mxu1 %v8154_v51  ;;  %v7820_v49 = vcombine.high %v1022_v44, %v1026_v45  ;;  %v1413_v51 = vld [vmem:[#allocation5 + $0x1048] sm:$0xff]  ;;  %v1074_v43 = vld [vmem:[#allocation5 + $0x5b0] sm:$0xff]  ;;  %v7859_v45 = vcombine.low %v1062_v33, %v1066_v34 }
 0x35d   : > { %5224 = vmatprep.subr.bf16.mxu0 %v7772_v52  ;;  %v1417_v52 = vld [vmem:[#allocation5 + $0x1068] sm:$0xff] }
 0x35e   : > { %v8209_v2 = vcombine.low %v1413_v51, %v1417_v52 }
 0x35f   : > { %5139 = vmatpush1.bf16.msra.mxu1 %v8153_v57  ;;  %v8210_v57 = vcombine.high %v1413_v51, %v1417_v52  ;;  %v1078_v51 = vld [vmem:[#allocation5 + $0x5d0] sm:$0xff] }
 0x360   : > { %5225 = vmatpush1.bf16.msra.mxu0 %v7771_v59  ;;  %5140 = vmatprep.subr.bf16.mxu1 %v8162_v60  ;;  %v7828_v59 = vcombine.high %v1030_v53, %v1034_v54  ;;  %v1421_v60 = vld [vmem:[#allocation5 + $0x1088] sm:$0xff]  ;;  %v1082_v52 = vld [vmem:[#allocation5 + $0x5f0] sm:$0xff]  ;;  %v7867_v54 = vcombine.low %v1070_v41, %v1074_v43 }
 0x361   : > { %5226 = vmatprep.subr.bf16.mxu0 %v7780_v61  ;;  %v1425_v61 = vld [vmem:[#allocation5 + $0x10a8] sm:$0xff] }
 0x362   : > { %v8217_v12 = vcombine.low %v1421_v60, %v1425_v61 }
 0x363   : > { %5141 = vmatpush1.bf16.msra.mxu1 %v8161_v4  ;;  %v8218_v4 = vcombine.high %v1421_v60, %v1425_v61  ;;  %v1086_v60 = vld [vmem:[#allocation5 + $0x610] sm:$0xff] }
 0x364   : > { %5227 = vmatpush1.bf16.msra.mxu0 %v7779_v5  ;;  %5142 = vmatprep.subr.bf16.mxu1 %v8170_v7  ;;  %v7836_v5 = vcombine.high %v1038_v62, %v1042_v1  ;;  %v1429_v7 = vld [vmem:[#allocation5 + $0x10c8] sm:$0xff]  ;;  %v1090_v61 = vld [vmem:[#allocation5 + $0x630] sm:$0xff]  ;;  %v7875_v1 = vcombine.low %v1078_v51, %v1082_v52 }
 0x365   : > { %5228 = vmatprep.subr.bf16.mxu0 %v7788_v8  ;;  %v1433_v8 = vld [vmem:[#allocation5 + $0x10e8] sm:$0xff] }
 0x366   : > { %v8225_v25 = vcombine.low %v1429_v7, %v1433_v8 }
 0x367   : > { %5143 = vmatpush1.bf16.msra.mxu1 %v8169_v15  ;;  %v8226_v15 = vcombine.high %v1429_v7, %v1433_v8  ;;  %v1094_v7 = vld [vmem:[#allocation5 + $0x650] sm:$0xff] }
 0x368   : > { %5229 = vmatpush1.bf16.msra.mxu0 %v7787_v16  ;;  %5144 = vmatprep.subr.bf16.mxu1 %v8178_v18  ;;  %v7844_v16 = vcombine.high %v1046_v9, %v1050_v11  ;;  %v1437_v18 = vld [vmem:[#allocation5 + $0x1108] sm:$0xff]  ;;  %v1098_v8 = vld [vmem:[#allocation5 + $0x670] sm:$0xff]  ;;  %v7883_v11 = vcombine.low %v1086_v60, %v1090_v61 }
 0x369   : > { %5230 = vmatprep.subr.bf16.mxu0 %v7796_v20  ;;  %v1441_v20 = vld [vmem:[#allocation5 + $0x1128] sm:$0xff] }
 0x36a   : > { %v8233_v35 = vcombine.low %v1437_v18, %v1441_v20 }
 0x36b   : > { %5145 = vmatpush1.bf16.msra.mxu1 %v8177_v28  ;;  %v8234_v28 = vcombine.high %v1437_v18, %v1441_v20  ;;  %v1102_v18 = vld [vmem:[#allocation5 + $0x690] sm:$0xff] }
 0x36c   : > { %5231 = vmatpush1.bf16.msra.mxu0 %v7795_v29  ;;  %5146 = vmatprep.subr.bf16.mxu1 %v8186_v30  ;;  %v7852_v29 = vcombine.high %v1054_v23, %v1058_v24  ;;  %v1445_v30 = vld [vmem:[#allocation5 + $0x1148] sm:$0xff]  ;;  %v1106_v20 = vld [vmem:[#allocation5 + $0x6b0] sm:$0xff]  ;;  %v7891_v24 = vcombine.low %v1094_v7, %v1098_v8 }
 0x36d   : > { %5232 = vmatprep.subr.bf16.mxu0 %v7804_v31  ;;  %v1449_v31 = vld [vmem:[#allocation5 + $0x1168] sm:$0xff] }
 0x36e   : > { %v8241_v44 = vcombine.low %v1445_v30, %v1449_v31 }
 0x36f   : > { %5147 = vmatpush1.bf16.msra.mxu1 %v8185_v37  ;;  %v8242_v37 = vcombine.high %v1445_v30, %v1449_v31  ;;  %v1110_v30 = vld [vmem:[#allocation5 + $0x6d0] sm:$0xff] }
 0x370   : > { %5233 = vmatpush1.bf16.msra.mxu0 %v7803_v38  ;;  %5148 = vmatprep.subr.bf16.mxu1 %v8194_v39  ;;  %v7860_v38 = vcombine.high %v1062_v33, %v1066_v34  ;;  %v1453_v39 = vld [vmem:[#allocation5 + $0x1188] sm:$0xff]  ;;  %v1114_v31 = vld [vmem:[#allocation5 + $0x6f0] sm:$0xff]  ;;  %v7899_v34 = vcombine.low %v1102_v18, %v1106_v20 }
 0x371   : > { %5234 = vmatprep.subr.bf16.mxu0 %v7812_v40  ;;  %v1457_v40 = vld [vmem:[#allocation5 + $0x11a8] sm:$0xff] }
 0x372   : > { %v8249_v53 = vcombine.low %v1453_v39, %v1457_v40 }
 0x373   : > { %5149 = vmatpush1.bf16.msra.mxu1 %v8193_v46  ;;  %v8250_v46 = vcombine.high %v1453_v39, %v1457_v40  ;;  %v1118_v39 = vld [vmem:[#allocation5 + $0x710] sm:$0xff] }
 0x374   : > { %5235 = vmatpush1.bf16.msra.mxu0 %v7811_v47  ;;  %5161 = vmatprep.subr.bf16.mxu1 %v8202_v48  ;;  %v7868_v47 = vcombine.high %v1070_v41, %v1074_v43  ;;  %v1461_v48 = vld [vmem:[#allocation5 + $0x11c8] sm:$0xff]  ;;  %v1122_v40 = vld [vmem:[#allocation5 + $0x730] sm:$0xff]  ;;  %v7907_v43 = vcombine.low %v1110_v30, %v1114_v31 }
 0x375   : > { %5247 = vmatprep.subr.bf16.mxu0 %v7820_v49  ;;  %v1465_v49 = vld [vmem:[#allocation5 + $0x11e8] sm:$0xff] }
 0x376   : > { %5151 = vmatmul.mubr.bf16.vlgmr.msra.gmra.mrb[4].mxu1 %v10456_v63  ;;  %v8257_v62 = vcombine.low %v1461_v48, %v1465_v49 }
 0x377   : > { %5162 = vmatpush1.bf16.msra.mxu1 %v8201_v55  ;;  %5237 = vmatmul.mubr.bf16.vlgmr.msra.gmra.mrb[4].mxu0 %v10428_v21  ;;  %v8258_v55 = vcombine.high %v1461_v48, %v1465_v49  ;;  %v1126_v48 = vld [vmem:[#allocation5 + $0x750] sm:$0xff] }
 0x378   : > { %5248 = vmatpush1.bf16.msra.mxu0 %v7819_v56  ;;  %5163 = vmatprep.subr.bf16.mxu1 %v8210_v57  ;;  %v7876_v56 = vcombine.high %v1078_v51, %v1082_v52  ;;  %v1469_v57 = vld [vmem:[#allocation5 + $0x1208] sm:$0xff]  ;;  %v1130_v49 = vld [vmem:[#allocation5 + $0x770] sm:$0xff]  ;;  %v7915_v52 = vcombine.low %v1118_v39, %v1122_v40 }
 0x379   : > { %5249 = vmatprep.subr.bf16.mxu0 %v7828_v59  ;;  %5193 = vmatprep.mubr.bf16.mxu1 %v10458_v6  ;;  %v1473_v59 = vld [vmem:[#allocation5 + $0x1228] sm:$0xff] }
 0x37a   : > { %5279 = vmatprep.mubr.bf16.mxu0 %v10421_v0  ;;  %v8265_v9 = vcombine.low %v1469_v57, %v1473_v59 }
 0x37b   : > { %5164 = vmatpush1.bf16.msra.mxu1 %v8209_v2  ;;  %v8266_v2 = vcombine.high %v1469_v57, %v1473_v59  ;;  %v1134_v57 = vld [vmem:[#allocation5 + $0x790] sm:$0xff] }
 0x37c   : > { %5250 = vmatpush1.bf16.msra.mxu0 %v7827_v3  ;;  %5165 = vmatprep.subr.bf16.mxu1 %v8218_v4  ;;  %v7884_v3 = vcombine.high %v1086_v60, %v1090_v61  ;;  %v1477_v4 = vld [vmem:[#allocation5 + $0x1248] sm:$0xff]  ;;  %v1138_v59 = vld [vmem:[#allocation5 + $0x7b0] sm:$0xff]  ;;  %v7923_v61 = vcombine.low %v1126_v48, %v1130_v49 }
 0x37d   : > { %5251 = vmatprep.subr.bf16.mxu0 %v7836_v5  ;;  %v1481_v5 = vld [vmem:[#allocation5 + $0x1268] sm:$0xff] }
 0x37e   : > { %v8273_v23 = vcombine.low %v1477_v4, %v1481_v5 }
 0x37f   : > { %5166 = vmatpush1.bf16.msra.mxu1 %v8217_v12  ;;  %v8274_v12 = vcombine.high %v1477_v4, %v1481_v5  ;;  %v1142_v4 = vld [vmem:[#allocation5 + $0x7d0] sm:$0xff] }
 0x380   : > { %5252 = vmatpush1.bf16.msra.mxu0 %v7835_v13  ;;  %5167 = vmatprep.subr.bf16.mxu1 %v8226_v15  ;;  %v7892_v13 = vcombine.high %v1094_v7, %v1098_v8  ;;  %v1485_v15 = vld [vmem:[#allocation5 + $0x1288] sm:$0xff]  ;;  %v1146_v5 = vld [vmem:[#allocation5 + $0x7f0] sm:$0xff]  ;;  %v7931_v8 = vcombine.low %v1134_v57, %v1138_v59 }
 0x381   : > { %5253 = vmatprep.subr.bf16.mxu0 %v7844_v16  ;;  %v1489_v16 = vld [vmem:[#allocation5 + $0x12a8] sm:$0xff] }
 0x382   : > { %v8281_v33 = vcombine.low %v1485_v15, %v1489_v16 }
 0x383   : > { %5168 = vmatpush1.bf16.msra.mxu1 %v8225_v25  ;;  %v8282_v25 = vcombine.high %v1485_v15, %v1489_v16  ;;  %v1150_v15 = vld [vmem:[#allocation5 + $0x810] sm:$0xff] }
 0x384   : > { %5254 = vmatpush1.bf16.msra.mxu0 %v7843_v27  ;;  %5169 = vmatprep.subr.bf16.mxu1 %v8234_v28  ;;  %v7900_v27 = vcombine.high %v1102_v18, %v1106_v20  ;;  %v1493_v28 = vld [vmem:[#allocation5 + $0x12c8] sm:$0xff]  ;;  %v1154_v16 = vld [vmem:[#allocation5 + $0x830] sm:$0xff]  ;;  %v7939_v20 = vcombine.low %v1142_v4, %v1146_v5 }
 0x385   : > { %5255 = vmatprep.subr.bf16.mxu0 %v7852_v29  ;;  %v1497_v29 = vld [vmem:[#allocation5 + $0x12e8] sm:$0xff] }
 0x386   : > { %v8289_v41 = vcombine.low %v1493_v28, %v1497_v29 }
 0x387   : > { %5170 = vmatpush1.bf16.msra.mxu1 %v8233_v35  ;;  %v8290_v35 = vcombine.high %v1493_v28, %v1497_v29  ;;  %v1158_v28 = vld [vmem:[#allocation5 + $0x850] sm:$0xff] }
 0x388   : > { %5256 = vmatpush1.bf16.msra.mxu0 %v7851_v36  ;;  %5171 = vmatprep.subr.bf16.mxu1 %v8242_v37  ;;  %v7908_v36 = vcombine.high %v1110_v30, %v1114_v31  ;;  %v1501_v37 = vld [vmem:[#allocation5 + $0x1308] sm:$0xff]  ;;  %v1162_v29 = vld [vmem:[#allocation5 + $0x870] sm:$0xff]  ;;  %v7947_v31 = vcombine.low %v1150_v15, %v1154_v16 }
 0x389   : > { %5257 = vmatprep.subr.bf16.mxu0 %v7860_v38  ;;  %v1505_v38 = vld [vmem:[#allocation5 + $0x1328] sm:$0xff] }
 0x38a   : > { %v8297_v51 = vcombine.low %v1501_v37, %v1505_v38 }
 0x38b   : > { %5172 = vmatpush1.bf16.msra.mxu1 %v8241_v44  ;;  %v8298_v44 = vcombine.high %v1501_v37, %v1505_v38  ;;  %v1166_v37 = vld [vmem:[#allocation5 + $0x890] sm:$0xff] }
 0x38c   : > { %5258 = vmatpush1.bf16.msra.mxu0 %v7859_v45  ;;  %5173 = vmatprep.subr.bf16.mxu1 %v8250_v46  ;;  %v7916_v45 = vcombine.high %v1118_v39, %v1122_v40  ;;  %v1509_v46 = vld [vmem:[#allocation5 + $0x1348] sm:$0xff]  ;;  %v1170_v38 = vld [vmem:[#allocation5 + $0x8b0] sm:$0xff]  ;;  %v7955_v40 = vcombine.low %v1158_v28, %v1162_v29 }
 0x38d   : > { %5259 = vmatprep.subr.bf16.mxu0 %v7868_v47  ;;  %v1513_v47 = vld [vmem:[#allocation5 + $0x1368] sm:$0xff] }
 0x38e   : > { %v8305_v60 = vcombine.low %v1509_v46, %v1513_v47 }
 0x38f   : > { %5174 = vmatpush1.bf16.msra.mxu1 %v8249_v53  ;;  %v8306_v53 = vcombine.high %v1509_v46, %v1513_v47  ;;  %v1174_v46 = vld [vmem:[#allocation5 + $0x8d0] sm:$0xff] }
 0x390   : > { %5260 = vmatpush1.bf16.msra.mxu0 %v7867_v54  ;;  %5175 = vmatprep.subr.bf16.mxu1 %v8258_v55  ;;  %v7924_v54 = vcombine.high %v1126_v48, %v1130_v49  ;;  %v1517_v55 = vld [vmem:[#allocation5 + $0x1388] sm:$0xff]  ;;  %v1178_v47 = vld [vmem:[#allocation5 + $0x8f0] sm:$0xff]  ;;  %v7963_v49 = vcombine.low %v1166_v37, %v1170_v38 }
 0x391   : > { %5261 = vmatprep.subr.bf16.mxu0 %v7876_v56  ;;  %v1521_v56 = vld [vmem:[#allocation5 + $0x13a8] sm:$0xff] }
 0x392   : > { %v8313_v7 = vcombine.low %v1517_v55, %v1521_v56 }
 0x393   : > { %5176 = vmatpush1.bf16.msra.mxu1 %v8257_v62  ;;  %v8314_v62 = vcombine.high %v1517_v55, %v1521_v56  ;;  %v1182_v55 = vld [vmem:[#allocation5 + $0x910] sm:$0xff] }
 0x394   : > { %5262 = vmatpush1.bf16.msra.mxu0 %v7875_v1  ;;  %5177 = vmatprep.subr.bf16.mxu1 %v8266_v2  ;;  %v7932_v1 = vcombine.high %v1134_v57, %v1138_v59  ;;  %v1525_v2 = vld [vmem:[#allocation5 + $0x13c8] sm:$0xff]  ;;  %v1186_v56 = vld [vmem:[#allocation5 + $0x930] sm:$0xff]  ;;  %v7971_v59 = vcombine.low %v1174_v46, %v1178_v47 }
 0x395   : > { %5263 = vmatprep.subr.bf16.mxu0 %v7884_v3  ;;  %v1529_v3 = vld [vmem:[#allocation5 + $0x13e8] sm:$0xff] }
 0x396   : > { %v8321_v18 = vcombine.low %v1525_v2, %v1529_v3 }
 0x397   : > { %5178 = vmatpush1.bf16.msra.mxu1 %v8265_v9  ;;  %v8322_v9 = vcombine.high %v1525_v2, %v1529_v3  ;;  %v1194_v2 = vld [vmem:[#allocation5 + $0x970] sm:$0xff] }
 0x398   : > { %5264 = vmatpush1.bf16.msra.mxu0 %v7883_v11  ;;  %5179 = vmatprep.subr.bf16.mxu1 %v8274_v12  ;;  %v7940_v11 = vcombine.high %v1142_v4, %v1146_v5  ;;  %v895_v12 = vld [vmem:[#allocation5 + $0x18] sm:$0xff]  ;;  %v7979_v4 = vcombine.low %v1182_v55, %v1186_v56 }
 0x399   : > { %5265 = vmatprep.subr.bf16.mxu0 %v7892_v13  ;;  %v899_v13 = vld [vmem:[#allocation5 + $0x38] sm:$0xff] }
 0x39a   : > { %v7693_v30 = vcombine.low %v895_v12, %v899_v13 }
 0x39b   : > { %5180 = vmatpush1.bf16.msra.mxu1 %v8273_v23  ;;  %v7694_v23 = vcombine.high %v895_v12, %v899_v13  ;;  %v1202_v12 = vld [vmem:[#allocation5 + $0x9b0] sm:$0xff] }
 0x39c   : > { %5266 = vmatpush1.bf16.msra.mxu0 %v7891_v24  ;;  %5181 = vmatprep.subr.bf16.mxu1 %v8282_v25  ;;  %v7948_v24 = vcombine.high %v1150_v15, %v1154_v16  ;;  %v903_v25 = vld [vmem:[#allocation5 + $0x58] sm:$0xff] }
 0x39d   : > { %5267 = vmatprep.subr.bf16.mxu0 %v7900_v27  ;;  %v907_v27 = vld [vmem:[#allocation5 + $0x78] sm:$0xff] }
 0x39e   : > { %v7701_v39 = vcombine.low %v903_v25, %v907_v27 }
 0x39f   : > { %5182 = vmatpush1.bf16.msra.mxu1 %v8281_v33  ;;  %v7702_v33 = vcombine.high %v903_v25, %v907_v27  ;;  %v1210_v25 = vld [vmem:[#allocation5 + $0x9f0] sm:$0xff] }
 0x3a0   : > { %5268 = vmatpush1.bf16.msra.mxu0 %v7899_v34  ;;  %5183 = vmatprep.subr.bf16.mxu1 %v8290_v35  ;;  %v7956_v34 = vcombine.high %v1158_v28, %v1162_v29  ;;  %v911_v35 = vld [vmem:[#allocation5 + $0x98] sm:$0xff] }
 0x3a1   : > { %5269 = vmatprep.subr.bf16.mxu0 %v7908_v36  ;;  %v915_v36 = vld [vmem:[#allocation5 + $0xb8] sm:$0xff] }
 0x3a2   : > { %v7709_v48 = vcombine.low %v911_v35, %v915_v36 }
 0x3a3   : > { %5184 = vmatpush1.bf16.msra.mxu1 %v8289_v41  ;;  %v7710_v41 = vcombine.high %v911_v35, %v915_v36  ;;  %v1218_v35 = vld [vmem:[#allocation5 + $0xa30] sm:$0xff] }
 0x3a4   : > { %5270 = vmatpush1.bf16.msra.mxu0 %v7907_v43  ;;  %5185 = vmatprep.subr.bf16.mxu1 %v8298_v44  ;;  %v7964_v43 = vcombine.high %v1166_v37, %v1170_v38  ;;  %v919_v44 = vld [vmem:[#allocation5 + $0xd8] sm:$0xff] }
 0x3a5   : > { %5271 = vmatprep.subr.bf16.mxu0 %v7916_v45  ;;  %v923_v45 = vld [vmem:[#allocation5 + $0xf8] sm:$0xff] }
 0x3a6   : > { %v7717_v57 = vcombine.low %v919_v44, %v923_v45 }
 0x3a7   : > { %5186 = vmatpush1.bf16.msra.mxu1 %v8297_v51  ;;  %v7718_v51 = vcombine.high %v919_v44, %v923_v45  ;;  %v1226_v44 = vld [vmem:[#allocation5 + $0xa70] sm:$0xff] }
 0x3a8   : > { %5272 = vmatpush1.bf16.msra.mxu0 %v7915_v52  ;;  %5187 = vmatprep.subr.bf16.mxu1 %v8306_v53  ;;  %v7972_v52 = vcombine.high %v1174_v46, %v1178_v47  ;;  %v927_v53 = vld [vmem:[#allocation5 + $0x118] sm:$0xff] }
 0x3a9   : > { %5273 = vmatprep.subr.bf16.mxu0 %v7924_v54  ;;  %v931_v54 = vld [vmem:[#allocation5 + $0x138] sm:$0xff] }
 0x3aa   : > { %v7725_v3 = vcombine.low %v927_v53, %v931_v54 }
 0x3ab   : > { %5188 = vmatpush1.bf16.msra.mxu1 %v8305_v60  ;;  %v7726_v60 = vcombine.high %v927_v53, %v931_v54  ;;  %v1234_v53 = vld [vmem:[#allocation5 + $0xab0] sm:$0xff] }
 0x3ac   : > { %5274 = vmatpush1.bf16.msra.mxu0 %v7923_v61  ;;  %5189 = vmatprep.subr.bf16.mxu1 %v8314_v62  ;;  %v935_v61 = vld [vmem:[#allocation5 + $0x158] sm:$0xff] }
 0x3ad   : > { %5275 = vmatprep.subr.bf16.mxu0 %v7932_v1  ;;  %v939_v62 = vld [vmem:[#allocation5 + $0x178] sm:$0xff]  ;;  %v1190_v1 = vld [vmem:[#allocation5 + $0x950] sm:$0xff] }
 0x3ae   : > { %v7734_v5 = vcombine.high %v935_v61, %v939_v62  ;;  %v7733_v13 = vcombine.low %v935_v61, %v939_v62  ;;  %v7987_v15 = vcombine.low %v1190_v1, %v1194_v2  ;;  %v1242_v61 = vld [vmem:[#allocation5 + $0xaf0] sm:$0xff] }
 0x3af   : > { %5190 = vmatpush1.bf16.msra.mxu1 %v8313_v7  ;;  %v7988_v7 = vcombine.high %v1190_v1, %v1194_v2 }
 0x3b0   : > { %5276 = vmatpush1.bf16.msra.mxu0 %v7931_v8  ;;  %5191 = vmatprep.subr.bf16.mxu1 %v8322_v9  ;;  %v943_v8 = vld [vmem:[#allocation5 + $0x198] sm:$0xff] }
 0x3b1   : > { %5277 = vmatprep.subr.bf16.mxu0 %v7940_v11  ;;  %v947_v9 = vld [vmem:[#allocation5 + $0x1b8] sm:$0xff]  ;;  %v1198_v11 = vld [vmem:[#allocation5 + $0x990] sm:$0xff] }
 0x3b2   : > { %v7742_v16 = vcombine.high %v943_v8, %v947_v9  ;;  %v7741_v27 = vcombine.low %v943_v8, %v947_v9  ;;  %v7995_v28 = vcombine.low %v1198_v11, %v1202_v12  ;;  %v1250_v8 = vld [vmem:[#allocation5 + $0xb30] sm:$0xff] }
 0x3b3   : > { %5192 = vmatpush1.bf16.msra.mxu1 %v8321_v18  ;;  %v7996_v18 = vcombine.high %v1198_v11, %v1202_v12 }
 0x3b4   : > { %5278 = vmatpush1.bf16.msra.mxu0 %v7939_v20  ;;  %5419 = vmatprep.subr.bf16.mxu1 %v7694_v23  ;;  %v951_v20 = vld [vmem:[#allocation5 + $0x1d8] sm:$0xff] }
 0x3b5   : > { %5290 = vmatprep.subr.bf16.mxu0 %v7948_v24  ;;  %v955_v23 = vld [vmem:[#allocation5 + $0x1f8] sm:$0xff]  ;;  %v1206_v24 = vld [vmem:[#allocation5 + $0x9d0] sm:$0xff] }
 0x3b6   : > { %5194 = vmatmul.mubr.bf16.vlgmr.msra.gmra.mrb[4].mxu1 %v10466_v22  ;;  %v7750_v29 = vcombine.high %v951_v20, %v955_v23  ;;  %v7749_v36 = vcombine.low %v951_v20, %v955_v23  ;;  %v8003_v37 = vcombine.low %v1206_v24, %v1210_v25  ;;  %v1258_v20 = vld [vmem:[#allocation5 + $0xb70] sm:$0xff] }
 0x3b7   : > { %5280 = vmatmul.mubr.bf16.vlgmr.msra.gmra.mrb[4].mxu0 %v10432_v26  ;;  %5420 = vmatpush1.bf16.msra.mxu1 %v7693_v30  ;;  %v8004_v30 = vcombine.high %v1206_v24, %v1210_v25 }
 0x3b8   : > { %5291 = vmatpush1.bf16.msra.mxu0 %v7947_v31  ;;  %5421 = vmatprep.subr.bf16.mxu1 %v7702_v33  ;;  %v959_v31 = vld [vmem:[#allocation5 + $0x218] sm:$0xff] }
 0x3b9   : > { %5292 = vmatprep.subr.bf16.mxu0 %v7956_v34  ;;  %5322 = vmatprep.mubr.bf16.mxu0 %v10434_v32  ;;  %v963_v33 = vld [vmem:[#allocation5 + $0x238] sm:$0xff]  ;;  %v1214_v34 = vld [vmem:[#allocation5 + $0xa10] sm:$0xff] }
 0x3ba   : > { %5451 = vmatprep.mubr.bf16.mxu1 %v10416_v58  ;;  %v7980_v58 = vcombine.high %v1182_v55, %v1186_v56  ;;  %v7758_v38 = vcombine.high %v959_v31, %v963_v33  ;;  %v7757_v45 = vcombine.low %v959_v31, %v963_v33  ;;  %v8011_v46 = vcombine.low %v1214_v34, %v1218_v35  ;;  %v1266_v31 = vld [vmem:[#allocation5 + $0xbb0] sm:$0xff] }
 0x3bb   : > { %5422 = vmatpush1.bf16.msra.mxu1 %v7701_v39  ;;  %v8012_v39 = vcombine.high %v1214_v34, %v1218_v35 }
 0x3bc   : > { %5293 = vmatpush1.bf16.msra.mxu0 %v7955_v40  ;;  %5423 = vmatprep.subr.bf16.mxu1 %v7710_v41  ;;  %v967_v40 = vld [vmem:[#allocation5 + $0x258] sm:$0xff] }
 0x3bd   : > { %5294 = vmatprep.subr.bf16.mxu0 %v7964_v43  ;;  %v971_v41 = vld [vmem:[#allocation5 + $0x278] sm:$0xff]  ;;  %v1222_v43 = vld [vmem:[#allocation5 + $0xa50] sm:$0xff] }
 0x3be   : > { %v7766_v47 = vcombine.high %v967_v40, %v971_v41  ;;  %v7765_v54 = vcombine.low %v967_v40, %v971_v41  ;;  %v8019_v55 = vcombine.low %v1222_v43, %v1226_v44  ;;  %v1274_v40 = vld [vmem:[#allocation5 + $0xbf0] sm:$0xff] }
 0x3bf   : > { %5424 = vmatpush1.bf16.msra.mxu1 %v7709_v48  ;;  %v8020_v48 = vcombine.high %v1222_v43, %v1226_v44 }
 0x3c0   : > { %5295 = vmatpush1.bf16.msra.mxu0 %v7963_v49  ;;  %5425 = vmatprep.subr.bf16.mxu1 %v7718_v51  ;;  %v975_v49 = vld [vmem:[#allocation5 + $0x298] sm:$0xff] }
 0x3c1   : > { %5296 = vmatprep.subr.bf16.mxu0 %v7972_v52  ;;  %v979_v51 = vld [vmem:[#allocation5 + $0x2b8] sm:$0xff]  ;;  %v1230_v52 = vld [vmem:[#allocation5 + $0xa90] sm:$0xff] }
 0x3c2   : > { %v7774_v56 = vcombine.high %v975_v49, %v979_v51  ;;  %v7773_v62 = vcombine.low %v975_v49, %v979_v51  ;;  %v8027_v1 = vcombine.low %v1230_v52, %v1234_v53  ;;  %v1282_v49 = vld [vmem:[#allocation5 + $0xc30] sm:$0xff] }
 0x3c3   : > { %5426 = vmatpush1.bf16.msra.mxu1 %v7717_v57  ;;  %v8028_v57 = vcombine.high %v1230_v52, %v1234_v53 }
 0x3c4   : > { %5297 = vmatpush1.bf16.msra.mxu0 %v7971_v59  ;;  %5427 = vmatprep.subr.bf16.mxu1 %v7726_v60  ;;  %v983_v59 = vld [vmem:[#allocation5 + $0x2d8] sm:$0xff] }
 0x3c5   : > { %5298 = vmatprep.subr.bf16.mxu0 %v7980_v58  ;;  %v987_v60 = vld [vmem:[#allocation5 + $0x2f8] sm:$0xff]  ;;  %v1238_v58 = vld [vmem:[#allocation5 + $0xad0] sm:$0xff] }
 0x3c6   : > { %v7782_v2 = vcombine.high %v983_v59, %v987_v60  ;;  %v7781_v9 = vcombine.low %v983_v59, %v987_v60  ;;  %v8035_v11 = vcombine.low %v1238_v58, %v1242_v61  ;;  %v1290_v59 = vld [vmem:[#allocation5 + $0xc70] sm:$0xff] }
 0x3c7   : > { %5428 = vmatpush1.bf16.msra.mxu1 %v7725_v3  ;;  %v8036_v3 = vcombine.high %v1238_v58, %v1242_v61 }
 0x3c8   : > { %5299 = vmatpush1.bf16.msra.mxu0 %v7979_v4  ;;  %5429 = vmatprep.subr.bf16.mxu1 %v7734_v5  ;;  %v991_v4 = vld [vmem:[#allocation5 + $0x318] sm:$0xff] }
 0x3c9   : > { %5300 = vmatprep.subr.bf16.mxu0 %v7988_v7  ;;  %v995_v5 = vld [vmem:[#allocation5 + $0x338] sm:$0xff]  ;;  %v1246_v7 = vld [vmem:[#allocation5 + $0xb10] sm:$0xff] }
 0x3ca   : > { %v7790_v12 = vcombine.high %v991_v4, %v995_v5  ;;  %v7789_v23 = vcombine.low %v991_v4, %v995_v5  ;;  %v8043_v24 = vcombine.low %v1246_v7, %v1250_v8  ;;  %v1298_v4 = vld [vmem:[#allocation5 + $0xcb0] sm:$0xff] }
 0x3cb   : > { %5430 = vmatpush1.bf16.msra.mxu1 %v7733_v13  ;;  %v8044_v13 = vcombine.high %v1246_v7, %v1250_v8 }
 0x3cc   : > { %5301 = vmatpush1.bf16.msra.mxu0 %v7987_v15  ;;  %5431 = vmatprep.subr.bf16.mxu1 %v7742_v16  ;;  %v999_v15 = vld [vmem:[#allocation5 + $0x358] sm:$0xff] }
 0x3cd   : > { %5302 = vmatprep.subr.bf16.mxu0 %v7996_v18  ;;  %v1003_v16 = vld [vmem:[#allocation5 + $0x378] sm:$0xff]  ;;  %v1254_v18 = vld [vmem:[#allocation5 + $0xb50] sm:$0xff] }
 0x3ce   : > { %v7798_v25 = vcombine.high %v999_v15, %v1003_v16  ;;  %v7797_v33 = vcombine.low %v999_v15, %v1003_v16  ;;  %v8051_v34 = vcombine.low %v1254_v18, %v1258_v20  ;;  %v1302_v15 = vld [vmem:[#allocation5 + $0xcd0] sm:$0xff] }
 0x3cf   : > { %5432 = vmatpush1.bf16.msra.mxu1 %v7741_v27  ;;  %v8052_v27 = vcombine.high %v1254_v18, %v1258_v20  ;;  %v1306_v16 = vld [vmem:[#allocation5 + $0xcf0] sm:$0xff] }
 0x3d0   : > { %5303 = vmatpush1.bf16.msra.mxu0 %v7995_v28  ;;  %5433 = vmatprep.subr.bf16.mxu1 %v7750_v29  ;;  %v1007_v28 = vld [vmem:[#allocation5 + $0x398] sm:$0xff] }
 0x3d1   : > { %5304 = vmatprep.subr.bf16.mxu0 %v8004_v30  ;;  %v1011_v29 = vld [vmem:[#allocation5 + $0x3b8] sm:$0xff]  ;;  %v1262_v30 = vld [vmem:[#allocation5 + $0xb90] sm:$0xff] }
 0x3d2   : > { %v7806_v35 = vcombine.high %v1007_v28, %v1011_v29  ;;  %v7805_v41 = vcombine.low %v1007_v28, %v1011_v29  ;;  %v8059_v43 = vcombine.low %v1262_v30, %v1266_v31  ;;  %v1310_v28 = vld [vmem:[#allocation5 + $0xd10] sm:$0xff] }
 0x3d3   : > { %5434 = vmatpush1.bf16.msra.mxu1 %v7749_v36  ;;  %v8060_v36 = vcombine.high %v1262_v30, %v1266_v31  ;;  %v1314_v29 = vld [vmem:[#allocation5 + $0xd30] sm:$0xff]  ;;  %v8099_v31 = vcombine.low %v1302_v15, %v1306_v16 }
 0x3d4   : > { %5305 = vmatpush1.bf16.msra.mxu0 %v8003_v37  ;;  %5435 = vmatprep.subr.bf16.mxu1 %v7758_v38  ;;  %v1015_v37 = vld [vmem:[#allocation5 + $0x3d8] sm:$0xff] }
 0x3d5   : > { %5306 = vmatprep.subr.bf16.mxu0 %v8012_v39  ;;  %v1019_v38 = vld [vmem:[#allocation5 + $0x3f8] sm:$0xff]  ;;  %v1270_v39 = vld [vmem:[#allocation5 + $0xbd0] sm:$0xff] }
 0x3d6   : > { %v7814_v44 = vcombine.high %v1015_v37, %v1019_v38  ;;  %v7813_v51 = vcombine.low %v1015_v37, %v1019_v38  ;;  %v8067_v52 = vcombine.low %v1270_v39, %v1274_v40  ;;  %v1532_v37 = vld [vmem:[#allocation7] sm:$0xff] }
 0x3d7   : > { %5436 = vmatpush1.bf16.msra.mxu1 %v7757_v45  ;;  %v8068_v45 = vcombine.high %v1270_v39, %v1274_v40  ;;  %v1318_v39 = vld [vmem:[#allocation5 + $0xd50] sm:$0xff] }
 0x3d8   : > { %5307 = vmatpush1.bf16.msra.mxu0 %v8011_v46  ;;  %5437 = vmatprep.subr.bf16.mxu1 %v7766_v47  ;;  %v1023_v46 = vld [vmem:[#allocation5 + $0x418] sm:$0xff]  ;;  %v1322_v40 = vld [vmem:[#allocation5 + $0xd70] sm:$0xff] }
 0x3d9   : > { %5308 = vmatprep.subr.bf16.mxu0 %v8020_v48  ;;  %v1027_v47 = vld [vmem:[#allocation5 + $0x438] sm:$0xff]  ;;  %v1278_v48 = vld [vmem:[#allocation5 + $0xc10] sm:$0xff] }
 0x3da   : > { %v7822_v53 = vcombine.high %v1023_v46, %v1027_v47  ;;  %v7821_v60 = vcombine.low %v1023_v46, %v1027_v47  ;;  %v8075_v58 = vcombine.low %v1278_v48, %v1282_v49  ;;  %v8116_v46 = vcombine.high %v1318_v39, %v1322_v40  ;;  %v1071_v47 = vld [vmem:[#allocation5 + $0x598] sm:$0xff] }
 0x3db   : > { %5438 = vmatpush1.bf16.msra.mxu1 %v7765_v54  ;;  %v8076_v54 = vcombine.high %v1278_v48, %v1282_v49  ;;  %v1075_v48 = vld [vmem:[#allocation5 + $0x5b8] sm:$0xff] }
 0x3dc   : > { %5309 = vmatpush1.bf16.msra.mxu0 %v8019_v55  ;;  %5439 = vmatprep.subr.bf16.mxu1 %v7774_v56  ;;  %v1031_v55 = vld [vmem:[#allocation5 + $0x458] sm:$0xff] }
 0x3dd   : > { %5310 = vmatprep.subr.bf16.mxu0 %v8028_v57  ;;  %v1035_v56 = vld [vmem:[#allocation5 + $0x478] sm:$0xff]  ;;  %v1286_v57 = vld [vmem:[#allocation5 + $0xc50] sm:$0xff] }
 0x3de   : > { %v7830_v61 = vcombine.high %v1031_v55, %v1035_v56  ;;  %v7829_v5 = vcombine.low %v1031_v55, %v1035_v56  ;;  %v8083_v7 = vcombine.low %v1286_v57, %v1290_v59  ;;  %v7870_v55 = vcombine.high %v1071_v47, %v1075_v48 }
 0x3df   : > { %5440 = vmatpush1.bf16.msra.mxu1 %v7773_v62  ;;  %v8084_v62 = vcombine.high %v1286_v57, %v1290_v59  ;;  %v1079_v59 = vld [vmem:[#allocation5 + $0x5d8] sm:$0xff] }
 0x3e0   : > { %5311 = vmatpush1.bf16.msra.mxu0 %v8027_v1  ;;  %5441 = vmatprep.subr.bf16.mxu1 %v7782_v2  ;;  %v1039_v1 = vld [vmem:[#allocation5 + $0x498] sm:$0xff] }
 0x3e1   : > { %5312 = vmatprep.subr.bf16.mxu0 %v8036_v3  ;;  %v1043_v2 = vld [vmem:[#allocation5 + $0x4b8] sm:$0xff]  ;;  %v1294_v3 = vld [vmem:[#allocation5 + $0xc90] sm:$0xff] }
 0x3e2   : > { %v7838_v8 = vcombine.high %v1039_v1, %v1043_v2  ;;  %v8091_v18 = vcombine.low %v1294_v3, %v1298_v4 }
 0x3e3   : > { %5442 = vmatpush1.bf16.msra.mxu1 %v7781_v9  ;;  %v1534_v9 = vlaneseq }
 0x3e4   : > { %5313 = vmatpush1.bf16.msra.mxu0 %v8035_v11  ;;  %5443 = vmatprep.subr.bf16.mxu1 %v7790_v12  ;;  %v8092_v11 = vcombine.high %v1294_v3, %v1298_v4  ;;  %v1047_v12 = vld [vmem:[#allocation5 + $0x4d8] sm:$0xff] }
 0x3e5   : > { %5314 = vmatprep.subr.bf16.mxu0 %v8044_v13  ;;  %v1051_v13 = vld [vmem:[#allocation5 + $0x4f8] sm:$0xff] }
 0x3e6   : > { %v7846_v20 = vcombine.high %v1047_v12, %v1051_v13  ;;  %v7845_v30 = vcombine.low %v1047_v12, %v1051_v13 }
 0x3e7   : > { %5444 = vmatpush1.bf16.msra.mxu1 %v7789_v23  ;;  %v10492_v23 = vshrl.u32 %v1534_v9, 7 }
 0x3e8   : > { %5315 = vmatpush1.bf16.msra.mxu0 %v8043_v24  ;;  %5445 = vmatprep.subr.bf16.mxu1 %v7798_v25  ;;  %v8100_v24 = vcombine.high %v1302_v15, %v1306_v16  ;;  %v1055_v25 = vld [vmem:[#allocation5 + $0x518] sm:$0xff]  ;;  %v1342_v16 = vld [vmem:[#allocation5 + $0xe10] sm:$0xff] }
 0x3e9   : > { %5316 = vmatprep.subr.bf16.mxu0 %v8052_v27  ;;  %v1059_v27 = vld [vmem:[#allocation5 + $0x538] sm:$0xff]  ;;  %v10498_v38 = vsub.s32 1, %v10492_v23 }
 0x3ea   : > { %v1091_v15 = vld [vmem:[#allocation5 + $0x638] sm:$0xff] }
 0x3eb   : > { %5446 = vmatpush1.bf16.msra.mxu1 %v7797_v33  ;;  %v10495_v33 = vsub.s32 0, %v10492_v23  ;;  %v1541_v49 = vrot.slane %v1532_v37, %v10498_v38 }
 0x3ec   : > { %5317 = vmatpush1.bf16.msra.mxu0 %v8051_v34  ;;  %5447 = vmatprep.subr.bf16.mxu1 %v7806_v35  ;;  %v8108_v34 = vcombine.high %v1310_v28, %v1314_v29  ;;  %v1063_v35 = vld [vmem:[#allocation5 + $0x558] sm:$0xff] }
 0x3ed   : > { %5318 = vmatprep.subr.bf16.mxu0 %v8060_v36  ;;  %v1067_v36 = vld [vmem:[#allocation5 + $0x578] sm:$0xff]  ;;  %v4815_v3 = vadd.f32 %v10478_v19, %v1541_v49 }
 0x3ef   : > { %5448 = vmatpush1.bf16.msra.mxu1 %v7805_v41  ;;  %v7853_v41 = vcombine.low %v1055_v25, %v1059_v27 }
 0x3f0   : > { %5319 = vmatpush1.bf16.msra.mxu0 %v8059_v43  ;;  %5449 = vmatprep.subr.bf16.mxu1 %v7814_v44  ;;  %v8107_v43 = vcombine.low %v1310_v28, %v1314_v29  ;;  %v7862_v44 = vcombine.high %v1063_v35, %v1067_v36  ;;  %v1099_v28 = vld [vmem:[#allocation5 + $0x678] sm:$0xff]  ;;  %v1350_v29 = vld [vmem:[#allocation5 + $0xe50] sm:$0xff] }
 0x3f1   : > { %5320 = vmatprep.subr.bf16.mxu0 %v8068_v45  ;;  %v1537_v45 = vrot.slane %v1532_v37, %v10495_v33  ;;  %v1107_v37 = vld [vmem:[#allocation5 + $0x6b8] sm:$0xff] }
 0x3f3   : > { %5450 = vmatpush1.bf16.msra.mxu1 %v7813_v51  ;;  %v1326_v51 = vld [vmem:[#allocation5 + $0xd90] sm:$0xff]  ;;  %v4809_v56 = vadd.f32 %v10472_v10, %v1537_v45 }
 0x3f4   : > { %5321 = vmatpush1.bf16.msra.mxu0 %v8067_v52  ;;  %5462 = vmatprep.subr.bf16.mxu1 %v7822_v53  ;;  %v1330_v52 = vld [vmem:[#allocation5 + $0xdb0] sm:$0xff]  ;;  %v7861_v53 = vcombine.low %v1063_v35, %v1067_v36  ;;  %v1103_v36 = vld [vmem:[#allocation5 + $0x698] sm:$0xff] }
 0x3f5   : > { %5333 = vmatprep.subr.bf16.mxu0 %v8076_v54  ;;  %v8115_v54 = vcombine.low %v1318_v39, %v1322_v40  ;;  %v8124_v57 = vcombine.high %v1326_v51, %v1330_v52  ;;  %v8123_v9 = vcombine.low %v1326_v51, %v1330_v52  ;;  %v1358_v39 = vld [vmem:[#allocation5 + $0xe90] sm:$0xff]  ;;  %v7901_v51 = vcombine.low %v1103_v36, %v1107_v37 }
 0x3f6   : > { %5452 = vmatmul.mubr.bf16.vlgmr.msra.gmra.mrb[8].mxu1 %v10428_v21  ;;  %v7837_v21 = vcombine.low %v1039_v1, %v1043_v2  ;;  %v1338_v1 = vld [vmem:[#allocation5 + $0xdf0] sm:$0xff]  ;;  %v4813_v2 = vadd.f32 %v10476_v17, %v1537_v45  ;;  %v1087_v17 = vld [vmem:[#allocation5 + $0x618] sm:$0xff] }
 0x3f7   : > { %5323 = vmatmul.mubr.bf16.vlgmr.msra.gmra.mrb[4].mxu0 %v10444_v42  ;;  %5463 = vmatpush1.bf16.msra.mxu1 %v7821_v60  ;;  %v1083_v60 = vld [vmem:[#allocation5 + $0x5f8] sm:$0xff]  ;;  %v1362_v40 = vld [vmem:[#allocation5 + $0xeb0] sm:$0xff] }
 0x3f8   : > { %5334 = vmatpush1.bf16.msra.mxu0 %v8075_v58  ;;  %5464 = vmatprep.subr.bf16.mxu1 %v7830_v61  ;;  %v4811_v58 = vadd.f32 %v10474_v14, %v1541_v49  ;;  %v8156_v45 = vcombine.high %v1358_v39, %v1362_v40  ;;  %v1370_v49 = vld [vmem:[#allocation5 + $0xef0] sm:$0xff]  ;;  %v8155_v52 = vcombine.low %v1358_v39, %v1362_v40 }
 0x3f9   : > { %5335 = vmatprep.subr.bf16.mxu0 %v8084_v62  ;;  %5365 = vmatprep.mubr.bf16.mxu0 %v10446_v50  ;;  %v1334_v62 = vld [vmem:[#allocation5 + $0xdd0] sm:$0xff] }
 0x3fa   : > { %5494 = vmatprep.mubr.bf16.mxu1 %v10421_v0  ;;  %v7854_v0 = vcombine.high %v1055_v25, %v1059_v27  ;;  %v8132_v13 = vcombine.high %v1334_v62, %v1338_v1  ;;  %v1095_v27 = vld [vmem:[#allocation5 + $0x658] sm:$0xff] }
 0x3fb   : > { %5465 = vmatpush1.bf16.msra.mxu1 %v7829_v5 }
 0x3fc   : > { %5336 = vmatpush1.bf16.msra.mxu0 %v8083_v7  ;;  %5466 = vmatprep.subr.bf16.mxu1 %v7838_v8  ;;  %v7869_v7 = vcombine.low %v1071_v47, %v1075_v48  ;;  %v1115_v47 = vld [vmem:[#allocation5 + $0x6f8] sm:$0xff]  ;;  %v1366_v48 = vld [vmem:[#allocation5 + $0xed0] sm:$0xff] }
 0x3fd   : > { %5337 = vmatprep.subr.bf16.mxu0 %v8092_v11  ;;  %v7878_v11 = vcombine.high %v1079_v59, %v1083_v60 }
 0x3ff   : > { %5467 = vmatpush1.bf16.msra.mxu1 %v7837_v21  ;;  %v1346_v21 = vld [vmem:[#allocation5 + $0xe30] sm:$0xff] }
 0x400   : > { %5338 = vmatpush1.bf16.msra.mxu0 %v8091_v18  ;;  %5468 = vmatprep.subr.bf16.mxu1 %v7846_v20  ;;  %v7877_v18 = vcombine.low %v1079_v59, %v1083_v60  ;;  %v8131_v20 = vcombine.low %v1334_v62, %v1338_v1  ;;  %v8140_v25 = vcombine.high %v1342_v16, %v1346_v21  ;;  %v1378_v59 = vld [vmem:[#allocation5 + $0xf30] sm:$0xff]  ;;  %v1127_v1 = vld [vmem:[#allocation5 + $0x758] sm:$0xff] }
 0x401   : > { %5339 = vmatprep.subr.bf16.mxu0 %v8100_v24  ;;  %v7886_v24 = vcombine.high %v1087_v17, %v1091_v15 }
 0x403   : > { %5469 = vmatpush1.bf16.msra.mxu1 %v7845_v30  ;;  %v1354_v30 = vld [vmem:[#allocation5 + $0xe70] sm:$0xff] }
 0x404   : > { %5340 = vmatpush1.bf16.msra.mxu0 %v8099_v31  ;;  %5470 = vmatprep.subr.bf16.mxu1 %v7854_v0  ;;  %v7885_v31 = vcombine.low %v1087_v17, %v1091_v15  ;;  %v8139_v0 = vcombine.low %v1342_v16, %v1346_v21  ;;  %v8148_v35 = vcombine.high %v1350_v29, %v1354_v30  ;;  %v1390_v17 = vld [vmem:[#allocation5 + $0xf90] sm:$0xff] }
 0x405   : > { %5341 = vmatprep.subr.bf16.mxu0 %v8108_v34  ;;  %v7894_v34 = vcombine.high %v1095_v27, %v1099_v28  ;;  %v1394_v15 = vld [vmem:[#allocation5 + $0xfb0] sm:$0xff] }
 0x407   : > { %5471 = vmatpush1.bf16.msra.mxu1 %v7853_v41  ;;  %v7893_v41 = vcombine.low %v1095_v27, %v1099_v28  ;;  %v1398_v27 = vld [vmem:[#allocation5 + $0xfd0] sm:$0xff] }
 0x408   : > { %5342 = vmatpush1.bf16.msra.mxu0 %v8107_v43  ;;  %5472 = vmatprep.subr.bf16.mxu1 %v7862_v44  ;;  %v8147_v43 = vcombine.low %v1350_v29, %v1354_v30  ;;  %v7902_v44 = vcombine.high %v1103_v36, %v1107_v37  ;;  %v1402_v28 = vld [vmem:[#allocation5 + $0xff0] sm:$0xff]  ;;  %v8187_v30 = vcombine.low %v1390_v17, %v1394_v15 }
 0x409   : > { %5343 = vmatprep.subr.bf16.mxu0 %v8116_v46  ;;  %v1111_v46 = vld [vmem:[#allocation5 + $0x6d8] sm:$0xff]  ;;  %v1406_v36 = vld [vmem:[#allocation5 + $0x1010] sm:$0xff]  ;;  %v8195_v40 = vcombine.low %v1398_v27, %v1402_v28 }
 0x40a   : > { %v4980_v61 = vpop.f32.mrb[0].mxu0  ;;  %v7909_v60 = vcombine.low %v1111_v46, %v1115_v47  ;;  %v1410_v37 = vld [vmem:[#allocation5 + $0x1030] sm:$0xff] }
 0x40b   : > { %v10506_v4 = vadd.f32 %v4980_v61, %v4809_v56  ;;  %v4982_v5 = vpop.f32.mrb[1].mxu0  ;;  %5473 = vmatpush1.bf16.msra.mxu1 %v7861_v53  ;;  %v7910_v53 = vcombine.high %v1111_v46, %v1115_v47  ;;  %v1123_v56 = vld [vmem:[#allocation5 + $0x738] sm:$0xff]  ;;  %v1414_v46 = vld [vmem:[#allocation5 + $0x1050] sm:$0xff] }
 0x40c   : > { %v10508_v8 = vadd.f32 %v4982_v5, %v4811_v58  ;;  %v4984_v10 = vpop.f32.mrb[2].mxu0  ;;  %5344 = vmatpush1.bf16.msra.mxu0 %v8115_v54  ;;  %5474 = vmatprep.subr.bf16.mxu1 %v7870_v55  ;;  %v8164_v54 = vcombine.high %v1366_v48, %v1370_v49  ;;  %v1119_v55 = vld [vmem:[#allocation5 + $0x718] sm:$0xff]  ;;  %v8163_v58 = vcombine.low %v1366_v48, %v1370_v49  ;;  %v1386_v5 = vld [vmem:[#allocation5 + $0xf70] sm:$0xff] }
 0x40d   : > { %v10510_v14 = vadd.f32 %v4984_v10, %v4813_v2  ;;  %v4986_v12 = vpop.f32.mrb[3].mxu0  ;;  %5345 = vmatprep.subr.bf16.mxu0 %v8124_v57  ;;  %v1374_v57 = vld [vmem:[#allocation5 + $0xf10] sm:$0xff]  ;;  %v7918_v61 = vcombine.high %v1119_v55, %v1123_v56  ;;  %v1131_v2 = vld [vmem:[#allocation5 + $0x778] sm:$0xff]  ;;  %v8203_v49 = vcombine.low %v1406_v36, %v1410_v37 }
 0x40e   : > { %v10512_v19 = vadd.f32 %v4986_v12, %v4815_v3  ;;  %v8172_v62 = vcombine.high %v1374_v57, %v1378_v59  ;;  %v1382_v3 = vld [vmem:[#allocation5 + $0xf50] sm:$0xff]  ;;  %v8171_v10 = vcombine.low %v1374_v57, %v1378_v59  ;;  %v1135_v12 = vld [vmem:[#allocation5 + $0x798] sm:$0xff]  ;;  %v7925_v16 = vcombine.low %v1127_v1, %v1131_v2 }
 0x40f   : > { %5475 = vmatpush1.bf16.msra.mxu1 %v7869_v7  ;;  %v7917_v7 = vcombine.low %v1119_v55, %v1123_v56  ;;  %v8179_v21 = vcombine.low %v1382_v3, %v1386_v5  ;;  %v1418_v47 = vld [vmem:[#allocation5 + $0x1070] sm:$0xff] }
 0x410   : > { %5346 = vmatpush1.bf16.msra.mxu0 %v8123_v9  ;;  %5476 = vmatprep.subr.bf16.mxu1 %v7878_v11  ;;  %v7926_v9 = vcombine.high %v1127_v1, %v1131_v2  ;;  %v8180_v11 = vcombine.high %v1382_v3, %v1386_v5  ;;  %v1422_v55 = vld [vmem:[#allocation5 + $0x1090] sm:$0xff]  ;;  %v8211_v59 = vcombine.low %v1414_v46, %v1418_v47 }
 0x411   : > { %5347 = vmatprep.subr.bf16.mxu0 %v8132_v13  ;;  %v1139_v13 = vld [vmem:[#allocation5 + $0x7b8] sm:$0xff]  ;;  %v1426_v56 = vld [vmem:[#allocation5 + $0x10b0] sm:$0xff] }
 0x412   : > { %v7933_v29 = vcombine.low %v1135_v12, %v1139_v13  ;;  %v1430_v1 = vld [vmem:[#allocation5 + $0x10d0] sm:$0xff]  ;;  %v8219_v3 = vcombine.low %v1422_v55, %v1426_v56 }
 0x413   : > { %5477 = vmatpush1.bf16.msra.mxu1 %v7877_v18  ;;  %v7934_v18 = vcombine.high %v1135_v12, %v1139_v13  ;;  %v1434_v2 = vld [vmem:[#allocation5 + $0x10f0] sm:$0xff] }
 0x414   : > { %5348 = vmatpush1.bf16.msra.mxu0 %v8131_v20  ;;  %5478 = vmatprep.subr.bf16.mxu1 %v7886_v24  ;;  %v8188_v20 = vcombine.high %v1390_v17, %v1394_v15  ;;  %v1143_v24 = vld [vmem:[#allocation5 + $0x7d8] sm:$0xff]  ;;  %v1442_v12 = vld [vmem:[#allocation5 + $0x1130] sm:$0xff]  ;;  %v8227_v17 = vcombine.low %v1430_v1, %v1434_v2 }
 0x415   : > { %5349 = vmatprep.subr.bf16.mxu0 %v8140_v25  ;;  %v1147_v25 = vld [vmem:[#allocation5 + $0x7f8] sm:$0xff] }
 0x416   : > { %v7941_v39 = vcombine.low %v1143_v24, %v1147_v25 }
 0x417   : > { %5479 = vmatpush1.bf16.msra.mxu1 %v7885_v31  ;;  %v7942_v31 = vcombine.high %v1143_v24, %v1147_v25 }
 0x418   : > { %5350 = vmatpush1.bf16.msra.mxu0 %v8139_v0  ;;  %5480 = vmatprep.subr.bf16.mxu1 %v7894_v34  ;;  %v8196_v0 = vcombine.high %v1398_v27, %v1402_v28  ;;  %v1151_v34 = vld [vmem:[#allocation5 + $0x818] sm:$0xff] }
 0x419   : > { %5351 = vmatprep.subr.bf16.mxu0 %v8148_v35  ;;  %v1155_v35 = vld [vmem:[#allocation5 + $0x838] sm:$0xff] }
 0x41a   : > { %v7949_v48 = vcombine.low %v1151_v34, %v1155_v35 }
 0x41b   : > { %5481 = vmatpush1.bf16.msra.mxu1 %v7893_v41  ;;  %v7950_v41 = vcombine.high %v1151_v34, %v1155_v35 }
 0x41c   : > { %5352 = vmatpush1.bf16.msra.mxu0 %v8147_v43  ;;  %5482 = vmatprep.subr.bf16.mxu1 %v7902_v44  ;;  %v8204_v43 = vcombine.high %v1406_v36, %v1410_v37  ;;  %v1159_v44 = vld [vmem:[#allocation5 + $0x858] sm:$0xff] }
 0x41d   : > { %5353 = vmatprep.subr.bf16.mxu0 %v8156_v45  ;;  %v1163_v45 = vld [vmem:[#allocation5 + $0x878] sm:$0xff] }
 0x41e   : > { %v7957_v57 = vcombine.low %v1159_v44, %v1163_v45 }
 0x41f   : > { %5483 = vmatpush1.bf16.msra.mxu1 %v7901_v51  ;;  %v7958_v51 = vcombine.high %v1159_v44, %v1163_v45 }
 0x420   : > { %5354 = vmatpush1.bf16.msra.mxu0 %v8155_v52  ;;  %5484 = vmatprep.subr.bf16.mxu1 %v7910_v53  ;;  %v8212_v52 = vcombine.high %v1414_v46, %v1418_v47  ;;  %v1167_v53 = vld [vmem:[#allocation5 + $0x898] sm:$0xff] }
 0x421   : > { %5355 = vmatprep.subr.bf16.mxu0 %v8164_v54  ;;  %v1171_v54 = vld [vmem:[#allocation5 + $0x8b8] sm:$0xff] }
 0x423   : > { %5485 = vmatpush1.bf16.msra.mxu1 %v7909_v60  ;;  %v7966_v60 = vcombine.high %v1167_v53, %v1171_v54 }
 0x424   : > { %5356 = vmatpush1.bf16.msra.mxu0 %v8163_v58  ;;  %5486 = vmatprep.subr.bf16.mxu1 %v7918_v61  ;;  %v8220_v58 = vcombine.high %v1422_v55, %v1426_v56  ;;  %v1175_v61 = vld [vmem:[#allocation5 + $0x8d8] sm:$0xff] }
 0x425   : > { %5357 = vmatprep.subr.bf16.mxu0 %v8172_v62  ;;  %v1179_v62 = vld [vmem:[#allocation5 + $0x8f8] sm:$0xff] }
 0x426   : > { %v7974_v5 = vcombine.high %v1175_v61, %v1179_v62  ;;  %v7973_v13 = vcombine.low %v1175_v61, %v1179_v62 }
 0x427   : > { %5487 = vmatpush1.bf16.msra.mxu1 %v7917_v7  ;;  %v8228_v7 = vcombine.high %v1430_v1, %v1434_v2 }
 0x428   : > { %5358 = vmatpush1.bf16.msra.mxu0 %v8171_v10  ;;  %5488 = vmatprep.subr.bf16.mxu1 %v7926_v9  ;;  %v1183_v10 = vld [vmem:[#allocation5 + $0x918] sm:$0xff] }
 0x429   : > { %5359 = vmatprep.subr.bf16.mxu0 %v8180_v11  ;;  %v1187_v9 = vld [vmem:[#allocation5 + $0x938] sm:$0xff]  ;;  %v1438_v11 = vld [vmem:[#allocation5 + $0x1110] sm:$0xff] }
 0x42a   : > { %v7982_v15 = vcombine.high %v1183_v10, %v1187_v9  ;;  %v7981_v24 = vcombine.low %v1183_v10, %v1187_v9  ;;  %v8235_v25 = vcombine.low %v1438_v11, %v1442_v12 }
 0x42b   : > { %5489 = vmatpush1.bf16.msra.mxu1 %v7925_v16  ;;  %v1191_v16 = vld [vmem:[#allocation5 + $0x958] sm:$0xff] }
 0x42c   : > { %5360 = vmatpush1.bf16.msra.mxu0 %v8179_v21  ;;  %5490 = vmatprep.subr.bf16.mxu1 %v7934_v18  ;;  %v1195_v21 = vld [vmem:[#allocation5 + $0x978] sm:$0xff]  ;;  %v1446_v18 = vld [vmem:[#allocation5 + $0x1150] sm:$0xff] }
 0x42d   : > { %5361 = vmatprep.subr.bf16.mxu0 %v8188_v20  ;;  %v1450_v20 = vld [vmem:[#allocation5 + $0x1170] sm:$0xff]  ;;  %v7990_v27 = vcombine.high %v1191_v16, %v1195_v21  ;;  %v7989_v34 = vcombine.low %v1191_v16, %v1195_v21 }
 0x42e   : > { %v8244_v28 = vcombine.high %v1446_v18, %v1450_v20  ;;  %v8243_v35 = vcombine.low %v1446_v18, %v1450_v20 }
 0x42f   : > { %5491 = vmatpush1.bf16.msra.mxu1 %v7933_v29  ;;  %v1199_v29 = vld [vmem:[#allocation5 + $0x998] sm:$0xff] }
 0x430   : > { %5362 = vmatpush1.bf16.msra.mxu0 %v8187_v30  ;;  %5492 = vmatprep.subr.bf16.mxu1 %v7942_v31  ;;  %v1203_v30 = vld [vmem:[#allocation5 + $0x9b8] sm:$0xff]  ;;  %v1454_v31 = vld [vmem:[#allocation5 + $0x1190] sm:$0xff] }
 0x431   : > { %5363 = vmatprep.subr.bf16.mxu0 %v8196_v0  ;;  %v1458_v0 = vld [vmem:[#allocation5 + $0x11b0] sm:$0xff]  ;;  %v7998_v36 = vcombine.high %v1199_v29, %v1203_v30  ;;  %v7997_v44 = vcombine.low %v1199_v29, %v1203_v30 }
 0x432   : > { %v8252_v37 = vcombine.high %v1454_v31, %v1458_v0  ;;  %v8251_v45 = vcombine.low %v1454_v31, %v1458_v0 }
 0x433   : > { %5493 = vmatpush1.bf16.msra.mxu1 %v7941_v39  ;;  %v1207_v39 = vld [vmem:[#allocation5 + $0x9d8] sm:$0xff] }
 0x434   : > { %5364 = vmatpush1.bf16.msra.mxu0 %v8195_v40  ;;  %5505 = vmatprep.subr.bf16.mxu1 %v7950_v41  ;;  %v1211_v40 = vld [vmem:[#allocation5 + $0x9f8] sm:$0xff]  ;;  %v1462_v41 = vld [vmem:[#allocation5 + $0x11d0] sm:$0xff] }
 0x435   : > { %5376 = vmatprep.subr.bf16.mxu0 %v8204_v43  ;;  %v1466_v43 = vld [vmem:[#allocation5 + $0x11f0] sm:$0xff]  ;;  %v8006_v46 = vcombine.high %v1207_v39, %v1211_v40 }
 0x436   : > { %5495 = vmatmul.mubr.bf16.vlgmr.msra.gmra.mrb[8].mxu1 %v10432_v26  ;;  %v7965_v26 = vcombine.low %v1167_v53, %v1171_v54  ;;  %v8260_v47 = vcombine.high %v1462_v41, %v1466_v43  ;;  %v8005_v53 = vcombine.low %v1207_v39, %v1211_v40  ;;  %v8259_v54 = vcombine.low %v1462_v41, %v1466_v43 }
 0x437   : > { %5366 = vmatmul.mubr.bf16.vlgmr.msra.gmra.mrb[4].mxu0 %v10456_v63  ;;  %5506 = vmatpush1.bf16.msra.mxu1 %v7949_v48  ;;  %v1215_v48 = vld [vmem:[#allocation5 + $0xa18] sm:$0xff] }
 0x438   : > { %5377 = vmatpush1.bf16.msra.mxu0 %v8203_v49  ;;  %5507 = vmatprep.subr.bf16.mxu1 %v7958_v51  ;;  %v1219_v49 = vld [vmem:[#allocation5 + $0xa38] sm:$0xff]  ;;  %v1470_v51 = vld [vmem:[#allocation5 + $0x1210] sm:$0xff] }
 0x439   : > { %5378 = vmatprep.subr.bf16.mxu0 %v8212_v52  ;;  %5408 = vmatprep.mubr.bf16.mxu0 %v10458_v6  ;;  %v1474_v52 = vld [vmem:[#allocation5 + $0x1230] sm:$0xff]  ;;  %v8014_v55 = vcombine.high %v1215_v48, %v1219_v49  ;;  %v8013_v61 = vcombine.low %v1215_v48, %v1219_v49 }
 0x43a   : > { %5537 = vmatprep.mubr.bf16.mxu1 %v10434_v32  ;;  %v8236_v32 = vcombine.high %v1438_v11, %v1442_v12  ;;  %v8268_v56 = vcombine.high %v1470_v51, %v1474_v52  ;;  %v8267_v62 = vcombine.low %v1470_v51, %v1474_v52 }
 0x43b   : > { %5508 = vmatpush1.bf16.msra.mxu1 %v7957_v57  ;;  %v1223_v57 = vld [vmem:[#allocation5 + $0xa58] sm:$0xff] }
 0x43c   : > { %5379 = vmatpush1.bf16.msra.mxu0 %v8211_v59  ;;  %5509 = vmatprep.subr.bf16.mxu1 %v7966_v60  ;;  %v1227_v59 = vld [vmem:[#allocation5 + $0xa78] sm:$0xff]  ;;  %v1478_v60 = vld [vmem:[#allocation5 + $0x1250] sm:$0xff] }
 0x43d   : > { %5380 = vmatprep.subr.bf16.mxu0 %v8220_v58  ;;  %v1482_v58 = vld [vmem:[#allocation5 + $0x1270] sm:$0xff]  ;;  %v8022_v1 = vcombine.high %v1223_v57, %v1227_v59  ;;  %v8021_v10 = vcombine.low %v1223_v57, %v1227_v59 }
 0x43e   : > { %v8276_v2 = vcombine.high %v1478_v60, %v1482_v58  ;;  %v8275_v9 = vcombine.low %v1478_v60, %v1482_v58 }
 0x43f   : > { %5510 = vmatpush1.bf16.msra.mxu1 %v7965_v26  ;;  %v1231_v26 = vld [vmem:[#allocation5 + $0xa98] sm:$0xff] }
 0x440   : > { %5381 = vmatpush1.bf16.msra.mxu0 %v8219_v3  ;;  %5511 = vmatprep.subr.bf16.mxu1 %v7974_v5  ;;  %v1235_v3 = vld [vmem:[#allocation5 + $0xab8] sm:$0xff]  ;;  %v1486_v5 = vld [vmem:[#allocation5 + $0x1290] sm:$0xff] }
 0x441   : > { %5382 = vmatprep.subr.bf16.mxu0 %v8228_v7  ;;  %v1490_v7 = vld [vmem:[#allocation5 + $0x12b0] sm:$0xff]  ;;  %v8030_v11 = vcombine.high %v1231_v26, %v1235_v3  ;;  %v8029_v16 = vcombine.low %v1231_v26, %v1235_v3  ;;  %v1287_v3 = vld [vmem:[#allocation5 + $0xc58] sm:$0xff] }
 0x442   : > { %v8284_v12 = vcombine.high %v1486_v5, %v1490_v7  ;;  %v8283_v21 = vcombine.low %v1486_v5, %v1490_v7  ;;  %v1291_v5 = vld [vmem:[#allocation5 + $0xc78] sm:$0xff] }
 0x443   : > { %5512 = vmatpush1.bf16.msra.mxu1 %v7973_v13  ;;  %v1239_v13 = vld [vmem:[#allocation5 + $0xad8] sm:$0xff] }
 0x444   : > { %5383 = vmatpush1.bf16.msra.mxu0 %v8227_v17  ;;  %5513 = vmatprep.subr.bf16.mxu1 %v7982_v15  ;;  %v1243_v17 = vld [vmem:[#allocation5 + $0xaf8] sm:$0xff]  ;;  %v1494_v15 = vld [vmem:[#allocation5 + $0x12d0] sm:$0xff] }
 0x445   : > { %5384 = vmatprep.subr.bf16.mxu0 %v8236_v32  ;;  %v1498_v32 = vld [vmem:[#allocation5 + $0x12f0] sm:$0xff]  ;;  %v8038_v18 = vcombine.high %v1239_v13, %v1243_v17  ;;  %v8037_v29 = vcombine.low %v1239_v13, %v1243_v17  ;;  %v1303_v17 = vld [vmem:[#allocation5 + $0xcd8] sm:$0xff] }
 0x446   : > { %v8292_v20 = vcombine.high %v1494_v15, %v1498_v32  ;;  %v8291_v30 = vcombine.low %v1494_v15, %v1498_v32  ;;  %v1307_v15 = vld [vmem:[#allocation5 + $0xcf8] sm:$0xff] }
 0x447   : > { %5514 = vmatpush1.bf16.msra.mxu1 %v7981_v24  ;;  %v1247_v24 = vld [vmem:[#allocation5 + $0xb18] sm:$0xff] }
 0x448   : > { %5385 = vmatpush1.bf16.msra.mxu0 %v8235_v25  ;;  %5515 = vmatprep.subr.bf16.mxu1 %v7990_v27  ;;  %v1251_v25 = vld [vmem:[#allocation5 + $0xb38] sm:$0xff]  ;;  %v1502_v27 = vld [vmem:[#allocation5 + $0x1310] sm:$0xff] }
 0x449   : > { %5386 = vmatprep.subr.bf16.mxu0 %v8244_v28  ;;  %v1506_v28 = vld [vmem:[#allocation5 + $0x1330] sm:$0xff]  ;;  %v8046_v31 = vcombine.high %v1247_v24, %v1251_v25  ;;  %v8045_v39 = vcombine.low %v1247_v24, %v1251_v25  ;;  %v1319_v24 = vld [vmem:[#allocation5 + $0xd58] sm:$0xff] }
 0x44a   : > { %v8300_v0 = vcombine.high %v1502_v27, %v1506_v28  ;;  %v8299_v40 = vcombine.low %v1502_v27, %v1506_v28  ;;  %v1323_v25 = vld [vmem:[#allocation5 + $0xd78] sm:$0xff] }
 0x44b   : > { %5516 = vmatpush1.bf16.msra.mxu1 %v7989_v34  ;;  %v1255_v34 = vld [vmem:[#allocation5 + $0xb58] sm:$0xff]  ;;  %v8118_v28 = vcombine.high %v1319_v24, %v1323_v25 }
 0x44c   : > { %5387 = vmatpush1.bf16.msra.mxu0 %v8243_v35  ;;  %5517 = vmatprep.subr.bf16.mxu1 %v7998_v36  ;;  %v1259_v35 = vld [vmem:[#allocation5 + $0xb78] sm:$0xff]  ;;  %v1510_v36 = vld [vmem:[#allocation5 + $0x1350] sm:$0xff] }
 0x44d   : > { %5388 = vmatprep.subr.bf16.mxu0 %v8252_v37  ;;  %v1514_v37 = vld [vmem:[#allocation5 + $0x1370] sm:$0xff]  ;;  %v8054_v41 = vcombine.high %v1255_v34, %v1259_v35  ;;  %v8053_v48 = vcombine.low %v1255_v34, %v1259_v35  ;;  %v1335_v34 = vld [vmem:[#allocation5 + $0xdd8] sm:$0xff] }
 0x44e   : > { %v8308_v43 = vcombine.high %v1510_v36, %v1514_v37  ;;  %v8307_v49 = vcombine.low %v1510_v36, %v1514_v37  ;;  %v1339_v35 = vld [vmem:[#allocation5 + $0xdf8] sm:$0xff] }
 0x44f   : > { %5518 = vmatpush1.bf16.msra.mxu1 %v7997_v44  ;;  %v1263_v44 = vld [vmem:[#allocation5 + $0xb98] sm:$0xff] }
 0x450   : > { %5389 = vmatpush1.bf16.msra.mxu0 %v8251_v45  ;;  %5519 = vmatprep.subr.bf16.mxu1 %v8006_v46  ;;  %v1267_v45 = vld [vmem:[#allocation5 + $0xbb8] sm:$0xff]  ;;  %v1518_v46 = vld [vmem:[#allocation5 + $0x1390] sm:$0xff] }
 0x451   : > { %5390 = vmatprep.subr.bf16.mxu0 %v8260_v47  ;;  %v1522_v47 = vld [vmem:[#allocation5 + $0x13b0] sm:$0xff]  ;;  %v8062_v51 = vcombine.high %v1263_v44, %v1267_v45  ;;  %v8061_v57 = vcombine.low %v1263_v44, %v1267_v45  ;;  %v1347_v44 = vld [vmem:[#allocation5 + $0xe38] sm:$0xff]  ;;  %v8133_v45 = vcombine.low %v1335_v34, %v1339_v35 }
 0x452   : > { %v8316_v52 = vcombine.high %v1518_v46, %v1522_v47  ;;  %v8315_v59 = vcombine.low %v1518_v46, %v1522_v47  ;;  %v1351_v47 = vld [vmem:[#allocation5 + $0xe58] sm:$0xff] }
 0x453   : > { %5520 = vmatpush1.bf16.msra.mxu1 %v8005_v53  ;;  %v1271_v53 = vld [vmem:[#allocation5 + $0xbd8] sm:$0xff] }
 0x454   : > { %5391 = vmatpush1.bf16.msra.mxu0 %v8259_v54  ;;  %5521 = vmatprep.subr.bf16.mxu1 %v8014_v55  ;;  %v1275_v54 = vld [vmem:[#allocation5 + $0xbf8] sm:$0xff]  ;;  %v1526_v55 = vld [vmem:[#allocation5 + $0x13d0] sm:$0xff] }
 0x455   : > { %5392 = vmatprep.subr.bf16.mxu0 %v8268_v56  ;;  %v1530_v56 = vld [vmem:[#allocation5 + $0x13f0] sm:$0xff]  ;;  %v8070_v60 = vcombine.high %v1271_v53, %v1275_v54 }
 0x456   : > { %v8324_v58 = vcombine.high %v1526_v55, %v1530_v56 }
 0x457   : > { %5522 = vmatpush1.bf16.msra.mxu1 %v8013_v61  ;;  %v1279_v61 = vld [vmem:[#allocation5 + $0xc18] sm:$0xff] }
 0x458   : > { %5393 = vmatpush1.bf16.msra.mxu0 %v8267_v62  ;;  %5523 = vmatprep.subr.bf16.mxu1 %v8022_v1  ;;  %v1283_v62 = vld [vmem:[#allocation5 + $0xc38] sm:$0xff]  ;;  %v8069_v1 = vcombine.low %v1271_v53, %v1275_v54 }
 0x459   : > { %5394 = vmatprep.subr.bf16.mxu0 %v8276_v2  ;;  %v8323_v2 = vcombine.low %v1526_v55, %v1530_v56  ;;  %v8078_v26 = vcombine.high %v1279_v61, %v1283_v62  ;;  %v8077_v7 = vcombine.low %v1279_v61, %v1283_v62  ;;  %v1363_v53 = vld [vmem:[#allocation5 + $0xeb8] sm:$0xff] }
 0x45a   : > { %v1367_v56 = vld [vmem:[#allocation5 + $0xed8] sm:$0xff] }
 0x45b   : > { %5524 = vmatpush1.bf16.msra.mxu1 %v8021_v10  ;;  %v8086_v10 = vcombine.high %v1287_v3, %v1291_v5  ;;  %v1379_v61 = vld [vmem:[#allocation5 + $0xf38] sm:$0xff] }
 0x45c   : > { %5395 = vmatpush1.bf16.msra.mxu0 %v8275_v9  ;;  %5525 = vmatprep.subr.bf16.mxu1 %v8030_v11  ;;  %v1295_v9 = vld [vmem:[#allocation5 + $0xc98] sm:$0xff] }
 0x45d   : > { %5396 = vmatprep.subr.bf16.mxu0 %v8284_v12  ;;  %v1299_v11 = vld [vmem:[#allocation5 + $0xcb8] sm:$0xff]  ;;  %v8085_v12 = vcombine.low %v1287_v3, %v1291_v5 }
 0x45e   : > { %v8094_v13 = vcombine.high %v1295_v9, %v1299_v11  ;;  %v8093_v32 = vcombine.low %v1295_v9, %v1299_v11 }
 0x45f   : > { %5526 = vmatpush1.bf16.msra.mxu1 %v8029_v16  ;;  %v8102_v16 = vcombine.high %v1303_v17, %v1307_v15 }
 0x460   : > { %5397 = vmatpush1.bf16.msra.mxu0 %v8283_v21  ;;  %5527 = vmatprep.subr.bf16.mxu1 %v8038_v18  ;;  %v1311_v21 = vld [vmem:[#allocation5 + $0xd18] sm:$0xff] }
 0x461   : > { %5398 = vmatprep.subr.bf16.mxu0 %v8292_v20  ;;  %v1315_v18 = vld [vmem:[#allocation5 + $0xd38] sm:$0xff]  ;;  %v8101_v20 = vcombine.low %v1303_v17, %v1307_v15 }
 0x462   : > { %v8109_v27 = vcombine.low %v1311_v21, %v1315_v18 }
 0x463   : > { %5528 = vmatpush1.bf16.msra.mxu1 %v8037_v29  ;;  %v1327_v29 = vld [vmem:[#allocation5 + $0xd98] sm:$0xff] }
 0x464   : > { %5399 = vmatpush1.bf16.msra.mxu0 %v8291_v30  ;;  %5529 = vmatprep.subr.bf16.mxu1 %v8046_v31  ;;  %v8117_v30 = vcombine.low %v1319_v24, %v1323_v25 }
 0x465   : > { %5400 = vmatprep.subr.bf16.mxu0 %v8300_v0 }
 0x467   : > { %5530 = vmatpush1.bf16.msra.mxu1 %v8045_v39 }
 0x468   : > { %5401 = vmatpush1.bf16.msra.mxu0 %v8299_v40  ;;  %5531 = vmatprep.subr.bf16.mxu1 %v8054_v41  ;;  %v8134_v41 = vcombine.high %v1335_v34, %v1339_v35 }
 0x469   : > { %5402 = vmatprep.subr.bf16.mxu0 %v8308_v43  ;;  %v1343_v43 = vld [vmem:[#allocation5 + $0xe18] sm:$0xff] }
 0x46a   : > { %v8142_v46 = vcombine.high %v1343_v43, %v1347_v44 }
 0x46b   : > { %5532 = vmatpush1.bf16.msra.mxu1 %v8053_v48  ;;  %v1355_v48 = vld [vmem:[#allocation5 + $0xe78] sm:$0xff] }
 0x46c   : > { %5403 = vmatpush1.bf16.msra.mxu0 %v8307_v49  ;;  %5533 = vmatprep.subr.bf16.mxu1 %v8062_v51  ;;  %v8141_v49 = vcombine.low %v1343_v43, %v1347_v44  ;;  %v8150_v51 = vcombine.high %v1351_v47, %v1355_v48  ;;  %v8149_v54 = vcombine.low %v1351_v47, %v1355_v48  ;;  %v1455_v47 = vld [vmem:[#allocation5 + $0x1198] sm:$0xff] }
 0x46d   : > { %5404 = vmatprep.subr.bf16.mxu0 %v8316_v52  ;;  %v1359_v52 = vld [vmem:[#allocation5 + $0xe98] sm:$0xff] }
 0x46e   : > { %v8158_v55 = vcombine.high %v1359_v52, %v1363_v53  ;;  %v1459_v48 = vld [vmem:[#allocation5 + $0x11b8] sm:$0xff] }
 0x46f   : > { %5534 = vmatpush1.bf16.msra.mxu1 %v8061_v57  ;;  %v1371_v57 = vld [vmem:[#allocation5 + $0xef8] sm:$0xff] }
 0x470   : > { %5405 = vmatpush1.bf16.msra.mxu0 %v8315_v59  ;;  %5535 = vmatprep.subr.bf16.mxu1 %v8070_v60  ;;  %v8157_v59 = vcombine.low %v1359_v52, %v1363_v53  ;;  %v8166_v60 = vcombine.high %v1367_v56, %v1371_v57  ;;  %v8165_v62 = vcombine.low %v1367_v56, %v1371_v57  ;;  %v1463_v52 = vld [vmem:[#allocation5 + $0x11d8] sm:$0xff] }
 0x471   : > { %5406 = vmatprep.subr.bf16.mxu0 %v8324_v58  ;;  %v1375_v58 = vld [vmem:[#allocation5 + $0xf18] sm:$0xff] }
 0x472   : > { %v8173_v3 = vcombine.low %v1375_v58, %v1379_v61  ;;  %v1467_v53 = vld [vmem:[#allocation5 + $0x11f8] sm:$0xff] }
 0x473   : > { %5536 = vmatpush1.bf16.msra.mxu1 %v8069_v1  ;;  %v8174_v1 = vcombine.high %v1375_v58, %v1379_v61  ;;  %v1471_v56 = vld [vmem:[#allocation5 + $0x1218] sm:$0xff] }
 0x474   : > { %5407 = vmatpush1.bf16.msra.mxu0 %v8323_v2  ;;  %5548 = vmatprep.subr.bf16.mxu1 %v8078_v26  ;;  %v1383_v2 = vld [vmem:[#allocation5 + $0xf58] sm:$0xff] }
 0x475   : > { %v1387_v26 = vld [vmem:[#allocation5 + $0xf78] sm:$0xff] }
 0x476   : > { %5538 = vmatmul.mubr.bf16.vlgmr.msra.gmra.mrb[8].mxu1 %v10444_v42  ;;  %v8110_v42 = vcombine.high %v1311_v21, %v1315_v18  ;;  %v8182_v5 = vcombine.high %v1383_v2, %v1387_v26  ;;  %v8181_v9 = vcombine.low %v1383_v2, %v1387_v26  ;;  %v1475_v57 = vld [vmem:[#allocation5 + $0x1238] sm:$0xff] }
 0x477   : > { %5409 = vmatmul.mubr.bf16.vlgmr.msra.gmra.mrb[4].mxu0 %v10466_v22  ;;  %5549 = vmatpush1.bf16.msra.mxu1 %v8077_v7  ;;  %v1391_v7 = vld [vmem:[#allocation5 + $0xf98] sm:$0xff] }
 0x478   : > { %5550 = vmatprep.subr.bf16.mxu1 %v8086_v10  ;;  %5580 = vmatprep.mubr.bf16.mxu1 %v10446_v50  ;;  %v1331_v50 = vld [vmem:[#allocation5 + $0xdb8] sm:$0xff] }
 0x479   : > { %v8126_v31 = vcombine.high %v1327_v29, %v1331_v50  ;;  %v8125_v39 = vcombine.low %v1327_v29, %v1331_v50  ;;  %v1395_v10 = vld [vmem:[#allocation5 + $0xfb8] sm:$0xff] }
 0x47a   : > { %v8190_v11 = vcombine.high %v1391_v7, %v1395_v10  ;;  %v8189_v17 = vcombine.low %v1391_v7, %v1395_v10  ;;  %v1479_v58 = vld [vmem:[#allocation5 + $0x1258] sm:$0xff] }
 0x47b   : > { %5551 = vmatpush1.bf16.msra.mxu1 %v8085_v12  ;;  %v1399_v12 = vld [vmem:[#allocation5 + $0xfd8] sm:$0xff] }
 0x47c   : > { %5552 = vmatprep.subr.bf16.mxu1 %v8094_v13  ;;  %v1403_v13 = vld [vmem:[#allocation5 + $0xff8] sm:$0xff] }
 0x47d   : > { %v8198_v15 = vcombine.high %v1399_v12, %v1403_v13  ;;  %v8197_v21 = vcombine.low %v1399_v12, %v1403_v13  ;;  %v1483_v61 = vld [vmem:[#allocation5 + $0x1278] sm:$0xff] }
 0x47e   : > { %v1487_v2 = vld [vmem:[#allocation5 + $0x1298] sm:$0xff] }
 0x47f   : > { %5553 = vmatpush1.bf16.msra.mxu1 %v8093_v32  ;;  %v1407_v32 = vld [vmem:[#allocation5 + $0x1018] sm:$0xff] }
 0x480   : > { %5554 = vmatprep.subr.bf16.mxu1 %v8102_v16  ;;  %v1411_v16 = vld [vmem:[#allocation5 + $0x1038] sm:$0xff] }
 0x481   : > { %v8206_v18 = vcombine.high %v1407_v32, %v1411_v16  ;;  %v8205_v24 = vcombine.low %v1407_v32, %v1411_v16  ;;  %v1491_v26 = vld [vmem:[#allocation5 + $0x12b8] sm:$0xff] }
 0x482   : > { %v1495_v7 = vld [vmem:[#allocation5 + $0x12d8] sm:$0xff] }
 0x483   : > { %5555 = vmatpush1.bf16.msra.mxu1 %v8101_v20  ;;  %v1415_v20 = vld [vmem:[#allocation5 + $0x1058] sm:$0xff] }
 0x484   : > { %5556 = vmatprep.subr.bf16.mxu1 %v8110_v42  ;;  %v1419_v42 = vld [vmem:[#allocation5 + $0x1078] sm:$0xff] }
 0x485   : > { %v8214_v25 = vcombine.high %v1415_v20, %v1419_v42  ;;  %v8213_v29 = vcombine.low %v1415_v20, %v1419_v42  ;;  %v1499_v10 = vld [vmem:[#allocation5 + $0x12f8] sm:$0xff] }
 0x486   : > { %v1503_v12 = vld [vmem:[#allocation5 + $0x1318] sm:$0xff] }
 0x487   : > { %5557 = vmatpush1.bf16.msra.mxu1 %v8109_v27  ;;  %v1423_v27 = vld [vmem:[#allocation5 + $0x1098] sm:$0xff] }
 0x488   : > { %5558 = vmatprep.subr.bf16.mxu1 %v8118_v28  ;;  %v1427_v28 = vld [vmem:[#allocation5 + $0x10b8] sm:$0xff] }
 0x489   : > { %v10521_v0 = vpop.f32.mrb[4].mxu1  ;;  %v8222_v50 = vcombine.high %v1423_v27, %v1427_v28  ;;  %v8221_v34 = vcombine.low %v1423_v27, %v1427_v28  ;;  %v1507_v13 = vld [vmem:[#allocation5 + $0x1338] sm:$0xff] }
 0x48a   : > { %v10523_v36 = vpop.f32.mrb[5].mxu1  ;;  %v1511_v32 = vld [vmem:[#allocation5 + $0x1358] sm:$0xff] }
 0x48b   : > { %v10525_v37 = vpop.f32.mrb[6].mxu1  ;;  %5559 = vmatpush1.bf16.msra.mxu1 %v8117_v30  ;;  %v1431_v30 = vld [vmem:[#allocation5 + $0x10d8] sm:$0xff] }
 0x48c   : > { %v10527_v40 = vpop.f32.mrb[7].mxu1  ;;  %5560 = vmatprep.subr.bf16.mxu1 %v8126_v31  ;;  %v1435_v31 = vld [vmem:[#allocation5 + $0x10f8] sm:$0xff] }
 0x48d   : > { %v8230_v35 = vcombine.high %v1431_v30, %v1435_v31  ;;  %v8229_v43 = vcombine.low %v1431_v30, %v1435_v31  ;;  %v1515_v16 = vld [vmem:[#allocation5 + $0x1378] sm:$0xff] }
 0x48e   : > { %v1519_v20 = vld [vmem:[#allocation5 + $0x1398] sm:$0xff] }
 0x48f   : > { %5561 = vmatpush1.bf16.msra.mxu1 %v8125_v39  ;;  %v1439_v39 = vld [vmem:[#allocation5 + $0x1118] sm:$0xff] }
 0x490   : > { %5562 = vmatprep.subr.bf16.mxu1 %v8134_v41  ;;  %v1443_v41 = vld [vmem:[#allocation5 + $0x1138] sm:$0xff] }
 0x491   : > { %v8238_v44 = vcombine.high %v1439_v39, %v1443_v41  ;;  %v1523_v42 = vld [vmem:[#allocation5 + $0x13b8] sm:$0xff] }
 0x492   : > { %v1527_v27 = vld [vmem:[#allocation5 + $0x13d8] sm:$0xff] }
 0x493   : > { %5563 = vmatpush1.bf16.msra.mxu1 %v8133_v45  ;;  %v1447_v45 = vld [vmem:[#allocation5 + $0x1158] sm:$0xff] }
 0x494   : > { %5564 = vmatprep.subr.bf16.mxu1 %v8142_v46  ;;  %v8237_v46 = vcombine.low %v1439_v39, %v1443_v41  ;;  %v1531_v28 = vld [vmem:[#allocation5 + $0x13f8] sm:$0xff] }
 0x495   : > { %v8325_v30 = vcombine.low %v1527_v27, %v1531_v28  ;;  %v8891_v41 = vld [vmem:[#allocation11] ss:$8 sps:$4 sm:$0xff]  }
 0x497   : > { %5565 = vmatpush1.bf16.msra.mxu1 %v8141_v49 }
 0x498   : > { %5566 = vmatprep.subr.bf16.mxu1 %v8150_v51  ;;  %v8254_v51 = vcombine.high %v1455_v47, %v1459_v48 }
 0x49b   : > { %5567 = vmatpush1.bf16.msra.mxu1 %v8149_v54  ;;  %v8253_v54 = vcombine.low %v1455_v47, %v1459_v48  ;;  %v8905_v47 = vld [vmem:[#allocation11 + $0x44] ss:$8 sps:$4 sm:$0xff]   ;;  %v8903_v48 = vld [vmem:[#allocation11 + $0x40] ss:$8 sps:$4 sm:$0xff]  }
 0x49c   : > { %5568 = vmatprep.subr.bf16.mxu1 %v8158_v55  ;;  %v8262_v55 = vcombine.high %v1463_v52, %v1467_v53 }
 0x49f   : > { %5569 = vmatpush1.bf16.msra.mxu1 %v8157_v59  ;;  %v8261_v59 = vcombine.low %v1463_v52, %v1467_v53  ;;  %v8911_v52 = vld [vmem:[#allocation11 + $0x64] ss:$8 sps:$4 sm:$0xff]   ;;  %v8909_v53 = vld [vmem:[#allocation11 + $0x60] ss:$8 sps:$4 sm:$0xff]  }
 0x4a0   : > { %5570 = vmatprep.subr.bf16.mxu1 %v8166_v60  ;;  %v8270_v60 = vcombine.high %v1471_v56, %v1475_v57 }
 0x4a3   : > { %5571 = vmatpush1.bf16.msra.mxu1 %v8165_v62  ;;  %v8269_v62 = vcombine.low %v1471_v56, %v1475_v57  ;;  %v10537_v56 = vsub.s32 2, %v10492_v23  ;;  %v9127_v57 = vld [vmem:[#allocation7] sm:$0xff] }
 0x4a4   : > { %5572 = vmatprep.subr.bf16.mxu1 %v8174_v1  ;;  %v8278_v1 = vcombine.high %v1479_v58, %v1483_v61 }
 0x4a7   : > { %5573 = vmatpush1.bf16.msra.mxu1 %v8173_v3  ;;  %v8277_v3 = vcombine.low %v1479_v58, %v1483_v61  ;;  %v10544_v58 = vsub.s32 4, %v10492_v23 }
 0x4a8   : > { %5574 = vmatprep.subr.bf16.mxu1 %v8182_v5  ;;  %v8286_v5 = vcombine.high %v1487_v2, %v1491_v26 }
 0x4ab   : > { %5575 = vmatpush1.bf16.msra.mxu1 %v8181_v9  ;;  %v8285_v9 = vcombine.low %v1487_v2, %v1491_v26  ;;  %v5652_v2 = vmul.f32 %v10506_v4, %v10506_v4  ;;  %v5653_v26 = vmul.f32 %v10508_v8, %v10508_v8 }
 0x4ac   : > { %5576 = vmatprep.subr.bf16.mxu1 %v8190_v11  ;;  %v8294_v11 = vcombine.high %v1495_v7, %v1499_v10 }
 0x4af   : > { %5577 = vmatpush1.bf16.msra.mxu1 %v8189_v17  ;;  %v8293_v17 = vcombine.low %v1495_v7, %v1499_v10  ;;  %v5661_v7 = vmul.f32 %v10512_v19, %v10512_v19 }
 0x4b0   : > { %5578 = vmatprep.subr.bf16.mxu1 %v8198_v15  ;;  %v8302_v15 = vcombine.high %v1503_v12, %v1507_v13 }
 0x4b3   : > { %5579 = vmatpush1.bf16.msra.mxu1 %v8197_v21  ;;  %v8301_v21 = vcombine.low %v1503_v12, %v1507_v13 }
 0x4b4   : > { %5591 = vmatprep.subr.bf16.mxu1 %v8206_v18  ;;  %v8310_v18 = vcombine.high %v1511_v32, %v1515_v16 }
 0x4b6   : > { %5581 = vmatmul.mubr.bf16.vlgmr.msra.gmra.mrb[8].mxu1 %v10456_v63  ;;  %v1451_v63 = vld [vmem:[#allocation5 + $0x1178] sm:$0xff] }
 0x4b7   : > { %5592 = vmatpush1.bf16.msra.mxu1 %v8205_v24  ;;  %5623 = vmatprep.mubr.bf16.mxu1 %v10458_v6  ;;  %v8246_v6 = vcombine.high %v1447_v45, %v1451_v63  ;;  %v8245_v49 = vcombine.low %v1447_v45, %v1451_v63  ;;  %v8309_v24 = vcombine.low %v1511_v32, %v1515_v16  ;;  %v8894_v45 = vld [vmem:[#allocation11 + $0x10] ss:$8 sps:$4 sm:$0xff]   ;;  %v8899_v63 = vld [vmem:[#allocation11 + $0x24] ss:$8 sps:$4 sm:$0xff]  }
 0x4b8   : > { %5593 = vmatprep.subr.bf16.mxu1 %v8214_v25  ;;  %v8318_v25 = vcombine.high %v1519_v20, %v1523_v42 }
 0x4bb   : > { %5594 = vmatpush1.bf16.msra.mxu1 %v8213_v29  ;;  %v8317_v29 = vcombine.low %v1519_v20, %v1523_v42 }
 0x4bc   : > { %5595 = vmatprep.subr.bf16.mxu1 %v8222_v50  ;;  %v8326_v50 = vcombine.high %v1527_v27, %v1531_v28  ;;  %v10594_v27 = vsub.s32 7, %v10492_v23 }
 0x4bf   : > { %5596 = vmatpush1.bf16.msra.mxu1 %v8221_v34 }
 0x4c0   : > { %5597 = vmatprep.subr.bf16.mxu1 %v8230_v35 }
 0x4c3   : > { %5598 = vmatpush1.bf16.msra.mxu1 %v8229_v43  ;;  %v8893_v43 = vld [vmem:[#allocation11 + $0x4] ss:$8 sps:$4 sm:$0xff]  }
 0x4c4   : > { %5599 = vmatprep.subr.bf16.mxu1 %v8238_v44  ;;  %v8896_v44 = vld [vmem:[#allocation11 + $0x14] ss:$8 sps:$4 sm:$0xff]   ;;  %6652 = vmatprep.subr.bf16.mxu0 %v8893_v43 }
 0x4c5   : > { %6653 = vmatpush1.bf16.msra.mxu0 %v8891_v41 }
 0x4c6   : > { %6654 = vmatprep.subr.bf16.mxu0 %v8896_v44 }
 0x4c7   : > { %5600 = vmatpush1.bf16.msra.mxu1 %v8237_v46  ;;  %v8897_v46 = vld [vmem:[#allocation11 + $0x20] ss:$8 sps:$4 sm:$0xff]  }
 0x4c8   : > { %5601 = vmatprep.subr.bf16.mxu1 %v8246_v6  ;;  %v8902_v6 = vld [vmem:[#allocation11 + $0x34] ss:$8 sps:$4 sm:$0xff]  }
 0x4c9   : > { %6655 = vmatpush1.bf16.msra.mxu0 %v8894_v45 }
 0x4ca   : > { %6656 = vmatprep.subr.bf16.mxu0 %v8899_v63  ;;  %v1565_v63 = vrot.slane %v9127_v57, %v10594_v27 }
 0x4cb   : > { %5602 = vmatpush1.bf16.msra.mxu1 %v8245_v49  ;;  %v8908_v49 = vld [vmem:[#allocation11 + $0x54] ss:$8 sps:$4 sm:$0xff]  }
 0x4cc   : > { %5603 = vmatprep.subr.bf16.mxu1 %v8254_v51  ;;  %v8906_v51 = vld [vmem:[#allocation11 + $0x50] ss:$8 sps:$4 sm:$0xff]  }
 0x4cd   : > { %6657 = vmatpush1.bf16.msra.mxu0 %v8897_v46 }
 0x4ce   : > { %6658 = vmatprep.subr.bf16.mxu0 %v8902_v6 }
 0x4cf   : > { %5604 = vmatpush1.bf16.msra.mxu1 %v8253_v54  ;;  %v8914_v54 = vld [vmem:[#allocation11 + $0x74] ss:$8 sps:$4 sm:$0xff]  }
 0x4d0   : > { %5605 = vmatprep.subr.bf16.mxu1 %v8262_v55  ;;  %v8912_v55 = vld [vmem:[#allocation11 + $0x70] ss:$8 sps:$4 sm:$0xff]  }
 0x4d3   : > { %5606 = vmatpush1.bf16.msra.mxu1 %v8261_v59  ;;  %v1545_v59 = vrot.slane %v9127_v57, %v10537_v56 }
 0x4d4   : > { %5607 = vmatprep.subr.bf16.mxu1 %v8270_v60  ;;  %v10541_v60 = vsub.s32 3, %v10492_v23 }
 0x4d5   : > { %v10547_v61 = vadd.f32 %v10521_v0, %v1545_v59  ;;  %v5660_v0 = vmul.f32 %v10510_v14, %v10510_v14 }
 0x4d7   : > { %5608 = vmatpush1.bf16.msra.mxu1 %v8269_v62  ;;  %v1549_v62 = vrot.slane %v9127_v57, %v10541_v60  ;;  %v5654_v10 = vmul.f32 %v10547_v61, %v10547_v61 }
 0x4d8   : > { %5609 = vmatprep.subr.bf16.mxu1 %v8278_v1  ;;  %v10551_v1 = vadd.f32 %v10525_v37, %v1545_v59  ;;  %v5634_v37 = vadd.f32 %v10508_v8, %v10506_v4 }
 0x4d9   : > { %v10577_v13 = vadd.f32 %v10527_v40, %v1549_v62 }
 0x4da   : > { %v5662_v12 = vmul.f32 %v10551_v1, %v10551_v1 }
 0x4db   : > { %5610 = vmatpush1.bf16.msra.mxu1 %v8277_v3  ;;  %v1553_v3 = vrot.slane %v9127_v57, %v10544_v58 }
 0x4dc   : > { %5611 = vmatprep.subr.bf16.mxu1 %v8286_v5  ;;  %v10559_v5 = vsub.s32 5, %v10492_v23 }
 0x4de   : > { %v1557_v16 = vrot.slane %v9127_v57, %v10559_v5 }
 0x4df   : > { %5612 = vmatpush1.bf16.msra.mxu1 %v8285_v9  ;;  %v10570_v9 = vadd.f32 %v10523_v36, %v1549_v62 }
 0x4e0   : > { %5613 = vmatprep.subr.bf16.mxu1 %v8294_v11  ;;  %v5643_v11 = vadd.f32 %v10512_v19, %v10510_v14 }
 0x4e1   : > { %v5655_v42 = vmul.f32 %v10570_v9, %v10570_v9 }
 0x4e2   : > { %v5644_v36 = vadd.f32 %v10551_v1, %v5643_v11 }
 0x4e3   : > { %5614 = vmatpush1.bf16.msra.mxu1 %v8293_v17  ;;  %v5668_v17 = vadd.f32 %v5653_v26, %v5652_v2 }
 0x4e4   : > { %5615 = vmatprep.subr.bf16.mxu1 %v8302_v15  ;;  %v5635_v15 = vadd.f32 %v10547_v61, %v5634_v37 }
 0x4e5   : > { %v5669_v20 = vadd.f32 %v5668_v17, %v5654_v10 }
 0x4e6   : > { %v5636_v28 = vadd.f32 %v10570_v9, %v5635_v15 }
 0x4e7   : > { %5616 = vmatpush1.bf16.msra.mxu1 %v8301_v21  ;;  %v5677_v21 = vadd.f32 %v5661_v7, %v5660_v0  ;;  %v5670_v41 = vadd.f32 %v5669_v20, %v5655_v42  ;;  %v8920_v20 = vld [vmem:[#allocation11 + $0x94] ss:$8 sps:$4 sm:$0xff]   ;;  %v8918_v42 = vld [vmem:[#allocation11 + $0x90] ss:$8 sps:$4 sm:$0xff]  }
 0x4e8   : > { %5617 = vmatprep.subr.bf16.mxu1 %v8310_v18 }
 0x4e9   : > { %v5678_v40 = vadd.f32 %v5677_v21, %v5662_v12  ;;  %v8917_v21 = vld [vmem:[#allocation11 + $0x84] ss:$8 sps:$4 sm:$0xff]  }
 0x4eb   : > { %5618 = vmatpush1.bf16.msra.mxu1 %v8309_v24  ;;  %v10589_v24 = vsub.s32 6, %v10492_v23 }
 0x4ec   : > { %5619 = vmatprep.subr.bf16.mxu1 %v8318_v25  ;;  %v5663_v25 = vmul.f32 %v10577_v13, %v10577_v13 }
 0x4ed   : > { %v1561_v43 = vrot.slane %v9127_v57, %v10589_v24 }
 0x4ee   : > { %v5679_v44 = vadd.f32 %v5678_v40, %v5663_v25  ;;  %v8923_v40 = vld [vmem:[#allocation11 + $0xa4] ss:$8 sps:$4 sm:$0xff]   ;;  %v8921_v25 = vld [vmem:[#allocation11 + $0xa0] ss:$8 sps:$4 sm:$0xff]  }
 0x4ef   : > { %5620 = vmatpush1.bf16.msra.mxu1 %v8317_v29 }
 0x4f0   : > { %5621 = vmatprep.subr.bf16.mxu1 %v8326_v50 }
 0x4f3   : > { %5622 = vmatpush1.bf16.msra.mxu1 %v8325_v30  ;;  %v5645_v30 = vadd.f32 %v10577_v13, %v5644_v36  ;;  %v8915_v36 = vld [vmem:[#allocation11 + $0x80] ss:$8 sps:$4 sm:$0xff]  }
 0x4f6   : > { %5624 = vmatmul.mubr.bf16.vlgmr.msra.gmra.mrb[8].mxu1 %v10466_v22  ;;  %v8900_v22 = vld [vmem:[#allocation11 + $0x30] ss:$8 sps:$4 sm:$0xff]  }
 0x4f7   : > { %6659 = vmatpush1.bf16.msra.mxu0 %v8900_v22 }
 0x4f8   : > { %6660 = vmatprep.subr.bf16.mxu0 %v8905_v47 }
 0x4fb   : > { %6661 = vmatpush1.bf16.msra.mxu0 %v8903_v48 }
 0x4fc   : > { %6662 = vmatprep.subr.bf16.mxu0 %v8908_v49 }
 0x4ff   : > { %6663 = vmatpush1.bf16.msra.mxu0 %v8906_v51 }
 0x500   : > { %6664 = vmatprep.subr.bf16.mxu0 %v8911_v52 }
 0x503   : > { %6665 = vmatpush1.bf16.msra.mxu0 %v8909_v53 }
 0x504   : > { %6666 = vmatprep.subr.bf16.mxu0 %v8914_v54 }
 0x507   : > { %6667 = vmatpush1.bf16.msra.mxu0 %v8912_v55 }
 0x508   : > { %6668 = vmatprep.subr.bf16.mxu0 %v8917_v21 }
 0x50b   : > { %6669 = vmatpush1.bf16.msra.mxu0 %v8915_v36 }
 0x50c   : > { %6670 = vmatprep.subr.bf16.mxu0 %v8920_v20 }
 0x50f   : > { %6671 = vmatpush1.bf16.msra.mxu0 %v8918_v42 }
 0x510   : > { %6672 = vmatprep.subr.bf16.mxu0 %v8923_v40 }
 0x513   : > { %6673 = vmatpush1.bf16.msra.mxu0 %v8921_v25 }
 0x54a   : > { %v5410_v31 = vpop.f32.mrb[4].mxu0 }
 0x54b   : > { %v10532_v34 = vpop.f32.mrb[5].mxu0  ;;  %v10580_v32 = vadd.f32 %v5410_v31, %v1553_v3 }
 0x54c   : > { %v5414_v35 = vpop.f32.mrb[6].mxu0  ;;  %v10600_v50 = vadd.f32 %v10532_v34, %v1557_v16 }
 0x54d   : > { %v10534_v39 = vpop.f32.mrb[7].mxu0  ;;  %v10584_v18 = vadd.f32 %v5414_v35, %v1553_v3  ;;  %v5656_v29 = vmul.f32 %v10580_v32, %v10580_v32  ;;  %v5637_v23 = vadd.f32 %v10580_v32, %v5636_v28  ;;  %v8924_v28 = vld [vmem:[#allocation11 + $0xb0] ss:$8 sps:$4 sm:$0xff]  }
 0x54e   : > { %v10606_v35 = vadd.f32 %v10534_v39, %v1557_v16  ;;  %v5657_v34 = vmul.f32 %v10600_v50, %v10600_v50 }
 0x54f   : > { %v5664_v31 = vmul.f32 %v10584_v18, %v10584_v18  ;;  %v5646_v45 = vadd.f32 %v10584_v18, %v5645_v30  ;;  %v5671_v46 = vadd.f32 %v5670_v41, %v5656_v29  ;;  %v5638_v49 = vadd.f32 %v10600_v50, %v5637_v23  ;;  %v8926_v29 = vld [vmem:[#allocation11 + $0xb4] ss:$8 sps:$4 sm:$0xff]   ;;  %v8929_v30 = vld [vmem:[#allocation11 + $0xc4] ss:$8 sps:$4 sm:$0xff]   ;;  %v8930_v23 = vld [vmem:[#allocation11 + $0xd0] ss:$8 sps:$4 sm:$0xff]  }
 0x550   : > { %v5665_v22 = vmul.f32 %v10606_v35, %v10606_v35  ;;  %6674 = vmatprep.subr.bf16.mxu0 %v8926_v29  ;;  %v8932_v41 = vld [vmem:[#allocation11 + $0xd4] ss:$8 sps:$4 sm:$0xff]  }
 0x551   : > { %v5680_v6 = vadd.f32 %v5679_v44, %v5664_v31  ;;  %v5647_v51 = vadd.f32 %v10606_v35, %v5646_v45  ;;  %v5672_v62 = vadd.f32 %v5671_v46, %v5657_v34  ;;  %6675 = vmatpush1.bf16.msra.mxu0 %v8924_v28  ;;  %v8927_v31 = vld [vmem:[#allocation11 + $0xc0] ss:$8 sps:$4 sm:$0xff]   ;;  %v8938_v45 = vld [vmem:[#allocation11 + $0xf4] ss:$8 sps:$4 sm:$0xff]   ;;  %v8941_v34 = vld [vmem:[#allocation11 + $0x104] ss:$8 sps:$4 sm:$0xff]  }
 0x552   : > { %6676 = vmatprep.subr.bf16.mxu0 %v8929_v30  ;;  %v8933_v44 = vld [vmem:[#allocation11 + $0xe0] ss:$8 sps:$4 sm:$0xff]  }
 0x553   : > { %v5681_v3 = vadd.f32 %v5680_v6, %v5665_v22 }
 0x555   : > { %6677 = vmatpush1.bf16.msra.mxu0 %v8927_v31 }
 0x556   : > { %6678 = vmatprep.subr.bf16.mxu0 %v8932_v41 }
 0x559   : > { %6679 = vmatpush1.bf16.msra.mxu0 %v8930_v23 }
 0x5c9   : > { %v5625_v39 = vpop.f32.mrb[8].mxu1 }
 0x5ca   : > { %v10616_v47 = vadd.f32 %v5625_v39, %v1561_v43  ;;  %v5627_v48 = vpop.f32.mrb[9].mxu1 }
 0x5cb   : > { %v10620_v52 = vadd.f32 %v5627_v48, %v1565_v63  ;;  %v5629_v53 = vpop.f32.mrb[10].mxu1 }
 0x5cc   : > { %v10622_v54 = vadd.f32 %v5629_v53, %v1561_v43  ;;  %v5631_v55 = vpop.f32.mrb[11].mxu1  ;;  %v5639_v57 = vadd.f32 %v10616_v47, %v5638_v49  ;;  %v5658_v59 = vmul.f32 %v10616_v47, %v10616_v47  ;;  %v8935_v43 = vld [vmem:[#allocation11 + $0xe4] ss:$8 sps:$4 sm:$0xff]  }
 0x5cd   : > { %v10627_v2 = vadd.f32 %v5631_v55, %v1565_v63  ;;  %v5659_v26 = vmul.f32 %v10620_v52, %v10620_v52  ;;  %6680 = vmatprep.subr.bf16.mxu0 %v8935_v43  ;;  %v8936_v63 = vld [vmem:[#allocation11 + $0xf0] ss:$8 sps:$4 sm:$0xff]  }
 0x5ce   : > { %v5666_v0 = vmul.f32 %v10622_v54, %v10622_v54  ;;  %v5640_v7 = vadd.f32 %v10620_v52, %v5639_v57  ;;  %v5673_v37 = vadd.f32 %v5672_v62, %v5658_v59  ;;  %v5648_v10 = vadd.f32 %v10622_v54, %v5647_v51  ;;  %6681 = vmatpush1.bf16.msra.mxu0 %v8933_v44 }
 0x5cf   : > { %v5667_v12 = vmul.f32 %v10627_v2, %v10627_v2  ;;  %6682 = vmatprep.subr.bf16.mxu0 %v8938_v45 }
 0x5d0   : > { %5641 = vadd.xlane.f32.xlu0 %v5640_v7  ;;  %v5674_v11 = vadd.f32 %v5673_v37, %v5659_v26  ;;  %v5682_v17 = vadd.f32 %v5681_v3, %v5666_v0  ;;  %v5649_v15 = vadd.f32 %v10627_v2, %v5648_v10  ;;  %v5732_v0 = vld [vmem:[#allocation8] sm:$0xff]  ;;  %v5790_v7 = vld [vmem:[#allocation10] sm:$0xff] }
 0x5d1   : > { %v10658_v21 = vrot.slane %v5790_v7, %v10589_v24  ;;  %v5741_v36 = vrot.slane %v5732_v0, %v10498_v38  ;;  %v5799_v20 = vrot.slane %v5790_v7, %v10498_v38  ;;  %v5749_v42 = vrot.slane %v5732_v0, %v10541_v60 }
 0x5d2   : > { %5675 = vadd.xlane.f32.xlu1 %v5674_v11  ;;  %v5683_v16 = vadd.f32 %v5682_v17, %v5667_v12  ;;  %6683 = vmatpush1.bf16.msra.mxu0 %v8936_v63  ;;  %v10643_v11 = vrot.slane %v5732_v0, %v10537_v56  ;;  %v10646_v12 = vrot.slane %v5790_v7, %v10537_v56 }
 0x5d3   : > { %6695 = vmatprep.subr.bf16.mxu0 %v8941_v34  ;;  %v10649_v17 = vrot.slane %v5732_v0, %v10544_v58  ;;  %v5737_v56 = vrot.slane %v5732_v0, %v10495_v33  ;;  %v5795_v40 = vrot.slane %v5790_v7, %v10495_v33  ;;  %v10667_v25 = vrot.slane %v5732_v0, %v10559_v5 }
 0x5d4   : > { %5650 = vadd.xlane.f32.xlu0 %v5649_v15  ;;  %v10652_v15 = vrot.slane %v5790_v7, %v10544_v58  ;;  %v5807_v58 = vrot.slane %v5790_v7, %v10541_v60  ;;  %v10670_v28 = vrot.slane %v5790_v7, %v10559_v5  ;;  %v10675_v30 = vrot.slane %v5732_v0, %v10594_v27 }
 0x5d5   : > { %v10678_v31 = vrot.slane %v5790_v7, %v10594_v27 }
 0x5d6   : > { %5684 = vadd.xlane.f32.xlu1 %v5683_v16  ;;  %v10655_v16 = vrot.slane %v5732_v0, %v10589_v24 }
 0x65d   : > { %v5642_v46 = vpop.xlane.xlu0 %5641 }
 0x65e   : > { %v5686_v6 = vmul.f32 0.0009765625, %v5642_v46 }
 0x65f   : > { %v5676_v22 = vpop.xlane.xlu1 %5675 }
 0x660   : > { %v5688_v39 = vmul.f32 0.0009765625, %v5676_v22  ;;  %v5690_v48 = vmul.f32 %v5686_v6, %v5686_v6  ;;  %v5697_v24 = vsub.f32 %v10508_v8, %v5686_v6  ;;  %v5696_v29 = vsub.f32 %v10506_v4, %v5686_v6 }
 0x661   : > { %v5651_v49 = vpop.xlane.xlu0 %5650  ;;  %v5699_v41 = vsub.f32 %v10570_v9, %v5686_v6  ;;  %v5698_v60 = vsub.f32 %v10547_v61, %v5686_v6  ;;  %v5701_v23 = vsub.f32 %v10600_v50, %v5686_v6  ;;  %v5700_v43 = vsub.f32 %v10580_v32, %v5686_v6 }
 0x662   : > { %v5692_v51 = vsub.f32 %v5688_v39, %v5690_v48  ;;  %v10638_v53 = vmul.f32 0.0009765625, %v5651_v49  ;;  %v5703_v8 = vsub.f32 %v10620_v52, %v5686_v6  ;;  %v5702_v44 = vsub.f32 %v10616_v47, %v5686_v6 }
 0x663   : > { %v5685_v55 = vpop.xlane.xlu1 %5684 }
 0x664   : > { %v5694_v57 = vmax.f32 %v5692_v51, 0.0  ;;  %v5689_v59 = vmul.f32 0.0009765625, %v5685_v55  ;;  %v5691_v62 = vmul.f32 %v10638_v53, %v10638_v53  ;;  %v5705_v5 = vsub.f32 %v10512_v19, %v10638_v53 }
 0x665   : > { %v5704_v4 = vsub.f32 %v10510_v14, %v10638_v53  ;;  %v5707_v9 = vsub.f32 %v10577_v13, %v10638_v53  ;;  %v5706_v61 = vsub.f32 %v10551_v1, %v10638_v53  ;;  %v5709_v32 = vsub.f32 %v10606_v35, %v10638_v53 }
 0x666   : > { %v5712_v26 = vadd.f32 1e-05, %v5694_v57  ;;  %v5693_v3 = vsub.f32 %v5689_v59, %v5691_v62  ;;  %v5708_v19 = vsub.f32 %v10584_v18, %v10638_v53  ;;  %v5711_v18 = vsub.f32 %v10627_v2, %v10638_v53 }
 0x667   : > { %v5710_v49 = vsub.f32 %v10622_v54, %v10638_v53 }
 0x668   : > { %9111 = vrsqrt.f32 %v5712_v26  ;;  %v5695_v37 = vmax.f32 %v5693_v3, 0.0 }
 0x66a   : > { %v5713_v10 = vadd.f32 1e-05, %v5695_v37 }
 0x66c   : > { %9113 = vrsqrt.f32 %v5713_v10 }
 0x672   : > { %v9112_v27 = vpop.eup %9111 }
 0x673   : > { %v5717_v50 = vmul.f32 %v9112_v27, %v5697_v24  ;;  %v5716_v45 = vmul.f32 %v9112_v27, %v5696_v29  ;;  %v5719_v14 = vmul.f32 %v9112_v27, %v5699_v41  ;;  %v5718_v63 = vmul.f32 %v9112_v27, %v5698_v60 }
 0x674   : > { %v5721_v52 = vmul.f32 %v9112_v27, %v5701_v23  ;;  %v5720_v34 = vmul.f32 %v9112_v27, %v5700_v43  ;;  %v5723_v47 = vmul.f32 %v9112_v27, %v5703_v8  ;;  %v5722_v46 = vmul.f32 %v9112_v27, %v5702_v44 }
 0x675   : > { %v5775_v6 = vmul.f32 %v5741_v36, %v5717_v50  ;;  %v5774_v22 = vmul.f32 %v5737_v56, %v5716_v45  ;;  %v5777_v13 = vmul.f32 %v5749_v42, %v5719_v14  ;;  %v5776_v39 = vmul.f32 %v10643_v11, %v5718_v63  ;;  %v8944_v14 = vld [vmem:[#allocation11 + $0x114] ss:$8 sps:$4 sm:$0xff]  }
 0x676   : > { %v9114_v1 = vpop.eup %9113  ;;  %v5779_v48 = vmul.f32 %v10667_v25, %v5721_v52  ;;  %v5778_v35 = vmul.f32 %v10649_v17, %v5720_v34  ;;  %v5781_v10 = vmul.f32 %v10675_v30, %v5723_v47  ;;  %v5780_v24 = vmul.f32 %v10655_v16, %v5722_v46 }
 0x677   : > { %v5725_v51 = vmul.f32 %v9114_v1, %v5705_v5  ;;  %v5833_v55 = vadd.f32 %v5799_v20, %v5775_v6  ;;  %v5724_v57 = vmul.f32 %v9114_v1, %v5704_v4  ;;  %v5832_v59 = vadd.f32 %v5795_v40, %v5774_v22  ;;  %v8942_v22 = vld [vmem:[#allocation11 + $0x110] ss:$8 sps:$4 sm:$0xff]  }
 0x678   : > { %v5727_v62 = vmul.f32 %v9114_v1, %v5707_v9  ;;  %v5835_v26 = vadd.f32 %v5807_v58, %v5777_v13  ;;  %v5726_v3 = vmul.f32 %v9114_v1, %v5706_v61  ;;  %v5834_v0 = vadd.f32 %v10646_v12, %v5776_v39 }
 0x679   : > { %v5783_v7 = vmul.f32 %v5741_v36, %v5725_v51  ;;  %v5782_v37 = vmul.f32 %v5737_v56, %v5724_v57  ;;  %v5849_v29 = vmax.f32 %v5833_v55, 0.0  ;;  %v5848_v2 = vmax.f32 %v5832_v59, 0.0  ;;  %v8950_v59 = vld [vmem:[#allocation11 + $0x134] ss:$8 sps:$4 sm:$0xff]  }
 0x67a   : > { %v5785_v41 = vmul.f32 %v5749_v42, %v5727_v62  ;;  %v5784_v54 = vmul.f32 %v10643_v11, %v5726_v3  ;;  %v5851_v23 = vmax.f32 %v5835_v26, 0.0  ;;  %v5729_v43 = vmul.f32 %v9114_v1, %v5709_v32  ;;  %v8951_v26 = vld [vmem:[#allocation11 + $0x140] ss:$8 sps:$4 sm:$0xff]   ;;  %v8956_v3 = vld [vmem:[#allocation11 + $0x154] ss:$8 sps:$4 sm:$0xff]  }
 0x67b   : > { %v5841_v53 = vadd.f32 %v5799_v20, %v5783_v7  ;;  %v5840_v60 = vadd.f32 %v5795_v40, %v5782_v37  ;;  %v5837_v8 = vadd.f32 %v10670_v28, %v5779_v48  ;;  %v5728_v36 = vmul.f32 %v9114_v1, %v5708_v19  ;;  %v8939_v40 = vld [vmem:[#allocation11 + $0x100] ss:$8 sps:$4 sm:$0xff]   ;;  %v8947_v48 = vld [vmem:[#allocation11 + $0x124] ss:$8 sps:$4 sm:$0xff]   ;;  %v8962_v37 = vld [vmem:[#allocation11 + $0x174] ss:$8 sps:$4 sm:$0xff]  }
 0x67c   : > { %v5843_v5 = vadd.f32 %v5807_v58, %v5785_v41  ;;  %v5842_v4 = vadd.f32 %v10646_v12, %v5784_v54  ;;  %v5850_v27 = vmax.f32 %v5834_v0, 0.0  ;;  %v5787_v9 = vmul.f32 %v10667_v25, %v5729_v43  ;;  %v8959_v0 = vld [vmem:[#allocation11 + $0x164] ss:$8 sps:$4 sm:$0xff]   ;;  %v8957_v7 = vld [vmem:[#allocation11 + $0x160] ss:$8 sps:$4 sm:$0xff]  }
 0x67d   : > { %v5857_v56 = vmax.f32 %v5841_v53, 0.0  ;;  %v5856_v44 = vmax.f32 %v5840_v60, 0.0  ;;  %v5786_v42 = vmul.f32 %v10649_v17, %v5728_v36  ;;  %v5836_v11 = vadd.f32 %v10652_v15, %v5778_v35  ;;  %v8966_v41 = vld [vmem:[#allocation11 + $0x190] ss:$8 sps:$4 sm:$0xff]   ;;  %v8971_v54 = vld [vmem:[#allocation11 + $0x1a4] ss:$8 sps:$4 sm:$0xff]  }
 0x67e   : > { %v5859_v61 = vmax.f32 %v5843_v5, 0.0  ;;  %v5858_v50 = vmax.f32 %v5842_v4, 0.0  ;;  %v5845_v58 = vadd.f32 %v10670_v28, %v5787_v9  ;;  %v5731_v12 = vmul.f32 %v9114_v1, %v5711_v18  ;;  %v8969_v53 = vld [vmem:[#allocation11 + $0x1a0] ss:$8 sps:$4 sm:$0xff]   ;;  %v8974_v60 = vld [vmem:[#allocation11 + $0x1b4] ss:$8 sps:$4 sm:$0xff]  }
 0x67f   : > { %v5865_v20 = vpack.c.bf16 %v5857_v56, %v5849_v29  ;;  %v5864_v32 = vpack.c.bf16 %v5856_v44, %v5848_v2  ;;  %v5853_v63 = vmax.f32 %v5837_v8, 0.0  ;;  %v5844_v52 = vadd.f32 %v10652_v15, %v5786_v42  ;;  %v8963_v29 = vld [vmem:[#allocation11 + $0x180] ss:$8 sps:$4 sm:$0xff]   ;;  %v8968_v2 = vld [vmem:[#allocation11 + $0x194] ss:$8 sps:$4 sm:$0xff]  }
 0x680   : > { %v5867_v45 = vpack.c.bf16 %v5859_v61, %v5851_v23  ;;  %v10715_v19 = vpack.c.bf16 %v5858_v50, %v5850_v27  ;;  %v5861_v25 = vmax.f32 %v5845_v58, 0.0  ;;  %v5789_v34 = vmul.f32 %v10675_v30, %v5731_v12  ;;  %v8972_v23 = vld [vmem:[#allocation11 + $0x1b0] ss:$8 sps:$4 sm:$0xff]   ;;  %v8977_v43 = vld [vmem:[#allocation11 + $0x1c4] ss:$8 sps:$4 sm:$0xff]  }
 0x681   : > { %6684 = vmatprep.mubr.bf16.mxu0 %v5865_v20  ;;  %v5839_v17 = vadd.f32 %v10678_v31, %v5781_v10  ;;  %v5730_v47 = vmul.f32 %v9114_v1, %v5710_v49  ;;  %v5852_v46 = vmax.f32 %v5836_v11, 0.0  ;;  %v5860_v6 = vmax.f32 %v5844_v52, 0.0  ;;  %v8945_v49 = vld [vmem:[#allocation11 + $0x120] ss:$8 sps:$4 sm:$0xff]   ;;  %v8960_v10 = vld [vmem:[#allocation11 + $0x170] ss:$8 sps:$4 sm:$0xff]  }
 0x682   : > { %6685 = vmatmul.mubr.bf16.vlgmr.msra.gmra.mrb[8].mxu0 %v5864_v32  ;;  %v5838_v28 = vadd.f32 %v10658_v21, %v5780_v24  ;;  %v10721_v13 = vpack.c.bf16 %v5861_v25, %v5853_v63  ;;  %v5847_v39 = vadd.f32 %v10678_v31, %v5789_v34  ;;  %v8953_v31 = vld [vmem:[#allocation11 + $0x144] ss:$8 sps:$4 sm:$0xff]   ;;  %v8975_v5 = vld [vmem:[#allocation11 + $0x1c0] ss:$8 sps:$4 sm:$0xff]   ;;  %v8980_v4 = vld [vmem:[#allocation11 + $0x1d4] ss:$8 sps:$4 sm:$0xff]  }
 0x683   : > { %6696 = vmatpush1.bf16.msra.mxu0 %v8939_v40  ;;  %6727 = vmatprep.mubr.bf16.mxu0 %v5867_v45  ;;  %v5788_v15 = vmul.f32 %v10655_v16, %v5730_v47  ;;  %v10725_v30 = vpack.c.bf16 %v5860_v6, %v5852_v46  ;;  %v5855_v35 = vmax.f32 %v5839_v17, 0.0  ;;  %v8948_v16 = vld [vmem:[#allocation11 + $0x130] ss:$8 sps:$4 sm:$0xff]   ;;  %v8965_v24 = vld [vmem:[#allocation11 + $0x184] ss:$8 sps:$4 sm:$0xff]  }
 0x684   : > { %6697 = vmatprep.subr.bf16.mxu0 %v8944_v14  ;;  %v5863_v1 = vmax.f32 %v5847_v39, 0.0  ;;  %v5854_v55 = vmax.f32 %v5838_v28, 0.0  ;;  %v8978_v8 = vld [vmem:[#allocation11 + $0x1d0] ss:$8 sps:$4 sm:$0xff]   ;;  %v8983_v36 = vld [vmem:[#allocation11 + $0x1e4] ss:$8 sps:$4 sm:$0xff]  }
 0x685   : > { %v5846_v18 = vadd.f32 %v10658_v21, %v5788_v15  ;;  %v8954_v21 = vld [vmem:[#allocation11 + $0x150] ss:$8 sps:$4 sm:$0xff]   ;;  %v8981_v56 = vld [vmem:[#allocation11 + $0x1e0] ss:$8 sps:$4 sm:$0xff]   ;;  %v8986_v44 = vld [vmem:[#allocation11 + $0x1f4] ss:$8 sps:$4 sm:$0xff]  }
 0x686   : > { %v10728_v51 = vpack.c.bf16 %v5863_v1, %v5855_v35  ;;  %v8984_v27 = vld [vmem:[#allocation11 + $0x1f0] ss:$8 sps:$4 sm:$0xff]   ;;  %v8989_v9 = vld [vmem:[#allocation11 + $0x204] ss:$8 sps:$4 sm:$0xff]   ;;  %v8987_v61 = vld [vmem:[#allocation11 + $0x200] ss:$8 sps:$4 sm:$0xff]  }
 0x687   : > { %6698 = vmatpush1.bf16.msra.mxu0 %v8942_v22  ;;  %v5862_v57 = vmax.f32 %v5846_v18, 0.0  ;;  %v8992_v50 = vld [vmem:[#allocation11 + $0x214] ss:$8 sps:$4 sm:$0xff]   ;;  %v8990_v42 = vld [vmem:[#allocation11 + $0x210] ss:$8 sps:$4 sm:$0xff]  }
 0x688   : > { %6699 = vmatprep.subr.bf16.mxu0 %v8947_v48  ;;  %v8995_v11 = vld [vmem:[#allocation11 + $0x224] ss:$8 sps:$4 sm:$0xff]   ;;  %v8993_v20 = vld [vmem:[#allocation11 + $0x220] ss:$8 sps:$4 sm:$0xff]   ;;  %v8998_v40 = vld [vmem:[#allocation11 + $0x234] ss:$8 sps:$4 sm:$0xff]  }
 0x689   : > { %v10730_v62 = vpack.c.bf16 %v5862_v57, %v5854_v55  ;;  %v8996_v32 = vld [vmem:[#allocation11 + $0x230] ss:$8 sps:$4 sm:$0xff]   ;;  %v9001_v58 = vld [vmem:[#allocation11 + $0x244] ss:$8 sps:$4 sm:$0xff]   ;;  %v8999_v12 = vld [vmem:[#allocation11 + $0x240] ss:$8 sps:$4 sm:$0xff]  }
 0x68a   : > { %v9004_v45 = vld [vmem:[#allocation11 + $0x254] ss:$8 sps:$4 sm:$0xff]   ;;  %v9002_v14 = vld [vmem:[#allocation11 + $0x250] ss:$8 sps:$4 sm:$0xff]   ;;  %v9005_v63 = vld [vmem:[#allocation11 + $0x260] ss:$8 sps:$4 sm:$0xff]  }
 0x68b   : > { %6700 = vmatpush1.bf16.msra.mxu0 %v8945_v49  ;;  %v9010_v52 = vld [vmem:[#allocation11 + $0x274] ss:$8 sps:$4 sm:$0xff]   ;;  %v9008_v25 = vld [vmem:[#allocation11 + $0x270] ss:$8 sps:$4 sm:$0xff]   ;;  %v9013_v34 = vld [vmem:[#allocation11 + $0x284] ss:$8 sps:$4 sm:$0xff]  }
 0x68c   : > { %6701 = vmatprep.subr.bf16.mxu0 %v8950_v59  ;;  %v9011_v17 = vld [vmem:[#allocation11 + $0x280] ss:$8 sps:$4 sm:$0xff]   ;;  %v9016_v47 = vld [vmem:[#allocation11 + $0x294] ss:$8 sps:$4 sm:$0xff]   ;;  %v9014_v46 = vld [vmem:[#allocation11 + $0x290] ss:$8 sps:$4 sm:$0xff]  }
 0x68d   : > { %v9019_v6 = vld [vmem:[#allocation11 + $0x2a4] ss:$8 sps:$4 sm:$0xff]   ;;  %v9017_v28 = vld [vmem:[#allocation11 + $0x2a0] ss:$8 sps:$4 sm:$0xff]   ;;  %v9022_v22 = vld [vmem:[#allocation11 + $0x2b4] ss:$8 sps:$4 sm:$0xff]  }
 0x68e   : > { %v9025_v39 = vld [vmem:[#allocation11 + $0x2c4] ss:$8 sps:$4 sm:$0xff]   ;;  %v9023_v15 = vld [vmem:[#allocation11 + $0x2c0] ss:$8 sps:$4 sm:$0xff]   ;;  %v9028_v48 = vld [vmem:[#allocation11 + $0x2d4] ss:$8 sps:$4 sm:$0xff]  }
 0x68f   : > { %6702 = vmatpush1.bf16.msra.mxu0 %v8948_v16  ;;  %v9026_v35 = vld [vmem:[#allocation11 + $0x2d0] ss:$8 sps:$4 sm:$0xff]   ;;  %v9031_v1 = vld [vmem:[#allocation11 + $0x2e4] ss:$8 sps:$4 sm:$0xff]   ;;  %v9029_v18 = vld [vmem:[#allocation11 + $0x2e0] ss:$8 sps:$4 sm:$0xff]  }
 0x690   : > { %6703 = vmatprep.subr.bf16.mxu0 %v8953_v31  ;;  %v9034_v49 = vld [vmem:[#allocation11 + $0x2f4] ss:$8 sps:$4 sm:$0xff]   ;;  %v9032_v55 = vld [vmem:[#allocation11 + $0x2f0] ss:$8 sps:$4 sm:$0xff]   ;;  %v9037_v57 = vld [vmem:[#allocation11 + $0x304] ss:$8 sps:$4 sm:$0xff]  }
 0x691   : > { %v9035_v59 = vld [vmem:[#allocation11 + $0x300] ss:$8 sps:$4 sm:$0xff]   ;;  %v9040_v16 = vld [vmem:[#allocation11 + $0x314] ss:$8 sps:$4 sm:$0xff]   ;;  %v9038_v31 = vld [vmem:[#allocation11 + $0x310] ss:$8 sps:$4 sm:$0xff]  }
 0x693   : > { %6704 = vmatpush1.bf16.msra.mxu0 %v8951_v26  ;;  %v9043_v26 = vld [vmem:[#allocation11 + $0x324] ss:$8 sps:$4 sm:$0xff]  }
 0x694   : > { %6705 = vmatprep.subr.bf16.mxu0 %v8956_v3  ;;  %v9041_v3 = vld [vmem:[#allocation11 + $0x320] ss:$8 sps:$4 sm:$0xff]  }
 0x697   : > { %6706 = vmatpush1.bf16.msra.mxu0 %v8954_v21  ;;  %v9046_v21 = vld [vmem:[#allocation11 + $0x334] ss:$8 sps:$4 sm:$0xff]  }
 0x698   : > { %6707 = vmatprep.subr.bf16.mxu0 %v8959_v0  ;;  %v9044_v0 = vld [vmem:[#allocation11 + $0x330] ss:$8 sps:$4 sm:$0xff]  }
 0x69b   : > { %6708 = vmatpush1.bf16.msra.mxu0 %v8957_v7  ;;  %v9049_v7 = vld [vmem:[#allocation11 + $0x344] ss:$8 sps:$4 sm:$0xff]  }
 0x69c   : > { %6709 = vmatprep.subr.bf16.mxu0 %v8962_v37  ;;  %v9047_v37 = vld [vmem:[#allocation11 + $0x340] ss:$8 sps:$4 sm:$0xff]  }
 0x69f   : > { %6710 = vmatpush1.bf16.msra.mxu0 %v8960_v10  ;;  %v9052_v10 = vld [vmem:[#allocation11 + $0x354] ss:$8 sps:$4 sm:$0xff]  }
 0x6a0   : > { %6711 = vmatprep.subr.bf16.mxu0 %v8965_v24  ;;  %v9055_v24 = vld [vmem:[#allocation11 + $0x364] ss:$8 sps:$4 sm:$0xff]  }
 0x6a3   : > { %6712 = vmatpush1.bf16.msra.mxu0 %v8963_v29  ;;  %v9058_v29 = vld [vmem:[#allocation11 + $0x374] ss:$8 sps:$4 sm:$0xff]  }
 0x6a4   : > { %6713 = vmatprep.subr.bf16.mxu0 %v8968_v2  ;;  %v9056_v2 = vld [vmem:[#allocation11 + $0x370] ss:$8 sps:$4 sm:$0xff]  }
 0x6a7   : > { %6714 = vmatpush1.bf16.msra.mxu0 %v8966_v41  ;;  %v9061_v41 = vld [vmem:[#allocation11 + $0x384] ss:$8 sps:$4 sm:$0xff]  }
 0x6a8   : > { %6715 = vmatprep.subr.bf16.mxu0 %v8971_v54  ;;  %v9059_v54 = vld [vmem:[#allocation11 + $0x380] ss:$8 sps:$4 sm:$0xff]  }
 0x6ab   : > { %6716 = vmatpush1.bf16.msra.mxu0 %v8969_v53  ;;  %v9064_v53 = vld [vmem:[#allocation11 + $0x394] ss:$8 sps:$4 sm:$0xff]  }
 0x6ac   : > { %6717 = vmatprep.subr.bf16.mxu0 %v8974_v60  ;;  %v9062_v60 = vld [vmem:[#allocation11 + $0x390] ss:$8 sps:$4 sm:$0xff]  }
 0x6af   : > { %6718 = vmatpush1.bf16.msra.mxu0 %v8972_v23  ;;  %v9067_v23 = vld [vmem:[#allocation11 + $0x3a4] ss:$8 sps:$4 sm:$0xff]  }
 0x6b0   : > { %6719 = vmatprep.subr.bf16.mxu0 %v8977_v43  ;;  %v9065_v43 = vld [vmem:[#allocation11 + $0x3a0] ss:$8 sps:$4 sm:$0xff]  }
 0x6b3   : > { %6720 = vmatpush1.bf16.msra.mxu0 %v8975_v5  ;;  %v9070_v5 = vld [vmem:[#allocation11 + $0x3b4] ss:$8 sps:$4 sm:$0xff]  }
 0x6b4   : > { %6721 = vmatprep.subr.bf16.mxu0 %v8980_v4  ;;  %v9068_v4 = vld [vmem:[#allocation11 + $0x3b0] ss:$8 sps:$4 sm:$0xff]  }
 0x6b7   : > { %6722 = vmatpush1.bf16.msra.mxu0 %v8978_v8  ;;  %v9073_v8 = vld [vmem:[#allocation11 + $0x3c4] ss:$8 sps:$4 sm:$0xff]  }
 0x6b8   : > { %6723 = vmatprep.subr.bf16.mxu0 %v8983_v36  ;;  %v9071_v36 = vld [vmem:[#allocation11 + $0x3c0] ss:$8 sps:$4 sm:$0xff]  }
 0x6bb   : > { %6724 = vmatpush1.bf16.msra.mxu0 %v8981_v56  ;;  %v9076_v56 = vld [vmem:[#allocation11 + $0x3d4] ss:$8 sps:$4 sm:$0xff]  }
 0x6bc   : > { %6725 = vmatprep.subr.bf16.mxu0 %v8986_v44  ;;  %v9074_v44 = vld [vmem:[#allocation11 + $0x3d0] ss:$8 sps:$4 sm:$0xff]  }
 0x6bf   : > { %6726 = vmatpush1.bf16.msra.mxu0 %v8984_v27  ;;  %v9079_v27 = vld [vmem:[#allocation11 + $0x3e4] ss:$8 sps:$4 sm:$0xff]  }
 0x6c0   : > { %6738 = vmatprep.subr.bf16.mxu0 %v8989_v9  ;;  %v9077_v9 = vld [vmem:[#allocation11 + $0x3e0] ss:$8 sps:$4 sm:$0xff]  }
 0x6c2   : > { %6728 = vmatmul.mubr.bf16.vlgmr.msra.gmra.mrb[8].mxu0 %v10715_v19  ;;  %v9007_v19 = vld [vmem:[#allocation11 + $0x264] ss:$8 sps:$4 sm:$0xff]  }
 0x6c3   : > { %6739 = vmatpush1.bf16.msra.mxu0 %v8987_v61  ;;  %6770 = vmatprep.mubr.bf16.mxu0 %v10721_v13  ;;  %v9020_v13 = vld [vmem:[#allocation11 + $0x2b0] ss:$8 sps:$4 sm:$0xff]   ;;  %v9082_v61 = vld [vmem:[#allocation11 + $0x3f4] ss:$8 sps:$4 sm:$0xff]  }
 0x6c4   : > { %6740 = vmatprep.subr.bf16.mxu0 %v8992_v50  ;;  %v9080_v50 = vld [vmem:[#allocation11 + $0x3f0] ss:$8 sps:$4 sm:$0xff]  }
 0x6c7   : > { %6741 = vmatpush1.bf16.msra.mxu0 %v8990_v42  ;;  %v6000_v42 = vld [vmem:[#allocation13] sm:$0x3] }
 0x6c8   : > { %6742 = vmatprep.subr.bf16.mxu0 %v8995_v11  ;;  %v6005_v11 = vrot.slane %v6000_v42, %v10495_v33 }
 0x6cb   : > { %6743 = vmatpush1.bf16.msra.mxu0 %v8993_v20  ;;  %v6009_v20 = vrot.slane %v6000_v42, %v10498_v38 }
 0x6cc   : > { %6744 = vmatprep.subr.bf16.mxu0 %v8998_v40 }
 0x6cf   : > { %6745 = vmatpush1.bf16.msra.mxu0 %v8996_v32 }
 0x6d0   : > { %6746 = vmatprep.subr.bf16.mxu0 %v9001_v58 }
 0x6d3   : > { %6747 = vmatpush1.bf16.msra.mxu0 %v8999_v12 }
 0x6d4   : > { %6748 = vmatprep.subr.bf16.mxu0 %v9004_v45 }
 0x6d7   : > { %6749 = vmatpush1.bf16.msra.mxu0 %v9002_v14 }
 0x6d8   : > { %6750 = vmatprep.subr.bf16.mxu0 %v9007_v19 }
 0x6db   : > { %6751 = vmatpush1.bf16.msra.mxu0 %v9005_v63 }
 0x6dc   : > { %6752 = vmatprep.subr.bf16.mxu0 %v9010_v52 }
 0x6df   : > { %6753 = vmatpush1.bf16.msra.mxu0 %v9008_v25 }
 0x6e0   : > { %6754 = vmatprep.subr.bf16.mxu0 %v9013_v34 }
 0x6e3   : > { %6755 = vmatpush1.bf16.msra.mxu0 %v9011_v17 }
 0x6e4   : > { %6756 = vmatprep.subr.bf16.mxu0 %v9016_v47 }
 0x6e7   : > { %6757 = vmatpush1.bf16.msra.mxu0 %v9014_v46 }
 0x6e8   : > { %6758 = vmatprep.subr.bf16.mxu0 %v9019_v6 }
 0x6eb   : > { %6759 = vmatpush1.bf16.msra.mxu0 %v9017_v28  ;;  %v9083_v28 = vld [vmem:[#allocation17 + $0x40] sm:$0xff]  }
 0x6ec   : > { %6760 = vmatprep.subr.bf16.mxu0 %v9022_v22  ;;  %v9084_v22 = vld [vmem:[#allocation17] sm:$0xff]   ;;  %8501 = vmatprep.subr.bf16.mxu1 %v9083_v28 }
 0x6ed   : > { %8502 = vmatpush3.bf16.msra.mxu1 %v9084_v22 }
 0x6ef   : > { %6761 = vmatpush1.bf16.msra.mxu0 %v9020_v13  ;;  %v9085_v13 = vld [vmem:[#allocation17 + $0x48] sm:$0xff]  }
 0x6f0   : > { %6762 = vmatprep.subr.bf16.mxu0 %v9025_v39  ;;  %v9086_v39 = vld [vmem:[#allocation17 + $0x8] sm:$0xff]   ;;  %8503 = vmatprep.subr.bf16.mxu1 %v9085_v13 }
 0x6f1   : > { %8504 = vmatpush3.bf16.msra.mxu1 %v9086_v39 }
 0x6f3   : > { %6763 = vmatpush1.bf16.msra.mxu0 %v9023_v15  ;;  %v9087_v15 = vld [vmem:[#allocation17 + $0x50] sm:$0xff]  }
 0x6f4   : > { %6764 = vmatprep.subr.bf16.mxu0 %v9028_v48  ;;  %v9088_v48 = vld [vmem:[#allocation17 + $0x10] sm:$0xff]   ;;  %8505 = vmatprep.subr.bf16.mxu1 %v9087_v15 }
 0x6f5   : > { %8506 = vmatpush3.bf16.msra.mxu1 %v9088_v48 }
 0x6f7   : > { %6765 = vmatpush1.bf16.msra.mxu0 %v9026_v35  ;;  %v9089_v35 = vld [vmem:[#allocation17 + $0x58] sm:$0xff]  }
 0x6f8   : > { %6766 = vmatprep.subr.bf16.mxu0 %v9031_v1  ;;  %v9090_v1 = vld [vmem:[#allocation17 + $0x18] sm:$0xff]   ;;  %8507 = vmatprep.subr.bf16.mxu1 %v9089_v35 }
 0x6f9   : > { %8508 = vmatpush3.bf16.msra.mxu1 %v9090_v1 }
 0x6fb   : > { %6767 = vmatpush1.bf16.msra.mxu0 %v9029_v18  ;;  %v9091_v18 = vld [vmem:[#allocation17 + $0x60] sm:$0xff]  }
 0x6fc   : > { %6768 = vmatprep.subr.bf16.mxu0 %v9034_v49  ;;  %v9092_v49 = vld [vmem:[#allocation17 + $0x20] sm:$0xff]   ;;  %8509 = vmatprep.subr.bf16.mxu1 %v9091_v18 }
 0x6fd   : > { %8510 = vmatpush3.bf16.msra.mxu1 %v9092_v49  ;;  %v9762_v49 = vmov 0.0  }
 0x6ff   : > { %6769 = vmatpush1.bf16.msra.mxu0 %v9032_v55  ;;  %v9093_v55 = vld [vmem:[#allocation17 + $0x68] sm:$0xff]  }
 0x700   : > { %6781 = vmatprep.subr.bf16.mxu0 %v9037_v57  ;;  %v9094_v57 = vld [vmem:[#allocation17 + $0x28] sm:$0xff]   ;;  %8511 = vmatprep.subr.bf16.mxu1 %v9093_v55 }
 0x701   : > { %8512 = vmatpush3.bf16.msra.mxu1 %v9094_v57  ;;  %v9099_v55 = vld [vmem:[%s10991_s24] sm:$0xff]   ;;  %v9100_v57 = vld [vmem:[%s10991_s24 + $0x8] sm:$0xff]  }
 0x702   : > { %6771 = vmatmul.mubr.bf16.vlgmr.msra.gmra.mrb[8].mxu0 %v10725_v30  ;;  %v9050_v30 = vld [vmem:[#allocation11 + $0x350] ss:$8 sps:$4 sm:$0xff]  }
 0x703   : > { %6782 = vmatpush1.bf16.msra.mxu0 %v9035_v59  ;;  %6813 = vmatprep.mubr.bf16.mxu0 %v10728_v51  ;;  %v9053_v51 = vld [vmem:[#allocation11 + $0x360] ss:$8 sps:$4 sm:$0xff]   ;;  %v9095_v59 = vld [vmem:[#allocation17 + $0x70] sm:$0xff]  }
 0x704   : > { %6783 = vmatprep.subr.bf16.mxu0 %v9040_v16  ;;  %v9096_v16 = vld [vmem:[#allocation17 + $0x30] sm:$0xff]   ;;  %8513 = vmatprep.subr.bf16.mxu1 %v9095_v59 }
 0x705   : > { %8514 = vmatpush3.bf16.msra.mxu1 %v9096_v16  ;;  %v9101_v59 = vld [vmem:[%s10991_s24 + $0x10] sm:$0xff]   ;;  %v9102_v16 = vld [vmem:[%s10991_s24 + $0x18] sm:$0xff]  }
 0x707   : > { %6784 = vmatpush1.bf16.msra.mxu0 %v9038_v31  ;;  %v9097_v31 = vld [vmem:[#allocation17 + $0x78] sm:$0xff]  }
 0x708   : > { %6785 = vmatprep.subr.bf16.mxu0 %v9043_v26  ;;  %v9098_v26 = vld [vmem:[#allocation17 + $0x38] sm:$0xff]   ;;  %8515 = vmatprep.subr.bf16.mxu1 %v9097_v31  ;;  %v9103_v31 = vld [vmem:[%s10991_s24 + $0x20] sm:$0xff]  }
 0x709   : > { %8516 = vmatpush3.bf16.msra.mxu1 %v9098_v26  ;;  %v9104_v26 = vld [vmem:[%s10991_s24 + $0x28] sm:$0xff]  }
 0x70a   : > { %8537 = vmatprep.subr.bf16.mxu1 %v9762_v49 }
 0x70b   : > { %6786 = vmatpush1.bf16.msra.mxu0 %v9041_v3 }
 0x70c   : > { %6787 = vmatprep.subr.bf16.mxu0 %v9046_v21 }
 0x70f   : > { %6788 = vmatpush1.bf16.msra.mxu0 %v9044_v0 }
 0x710   : > { %6789 = vmatprep.subr.bf16.mxu0 %v9049_v7 }
 0x713   : > { %6790 = vmatpush1.bf16.msra.mxu0 %v9047_v37 }
 0x714   : > { %6791 = vmatprep.subr.bf16.mxu0 %v9052_v10 }
 0x717   : > { %6792 = vmatpush1.bf16.msra.mxu0 %v9050_v30 }
 0x718   : > { %6793 = vmatprep.subr.bf16.mxu0 %v9055_v24 }
 0x71b   : > { %6794 = vmatpush1.bf16.msra.mxu0 %v9053_v51 }
 0x71c   : > { %6795 = vmatprep.subr.bf16.mxu0 %v9058_v29 }
 0x71f   : > { %6796 = vmatpush1.bf16.msra.mxu0 %v9056_v2 }
 0x720   : > { %6797 = vmatprep.subr.bf16.mxu0 %v9061_v41 }
 0x723   : > { %6798 = vmatpush1.bf16.msra.mxu0 %v9059_v54 }
 0x724   : > { %6799 = vmatprep.subr.bf16.mxu0 %v9064_v53 }
 0x727   : > { %6800 = vmatpush1.bf16.msra.mxu0 %v9062_v60 }
 0x728   : > { %6801 = vmatprep.subr.bf16.mxu0 %v9067_v23 }
 0x72b   : > { %6802 = vmatpush1.bf16.msra.mxu0 %v9065_v43  ;;  %v6862_v43 = vld [vmem:[#allocation14] sm:$0x3] }
 0x72c   : > { %6803 = vmatprep.subr.bf16.mxu0 %v9070_v5  ;;  %v6878_v5 = vld [vmem:[#allocation16] sm:$0x3] }
 0x72f   : > { %6804 = vmatpush1.bf16.msra.mxu0 %v9068_v4 }
 0x730   : > { %6805 = vmatprep.subr.bf16.mxu0 %v9073_v8 }
 0x733   : > { %6806 = vmatpush1.bf16.msra.mxu0 %v9071_v36  ;;  %v6867_v36 = vrot.slane %v6862_v43, %v10495_v33 }
 0x734   : > { %6807 = vmatprep.subr.bf16.mxu0 %v9076_v56  ;;  %v6871_v56 = vrot.slane %v6862_v43, %v10498_v38 }
 0x737   : > { %6808 = vmatpush1.bf16.msra.mxu0 %v9074_v44 }
 0x738   : > { %6809 = vmatprep.subr.bf16.mxu0 %v9079_v27  ;;  %v6883_v27 = vrot.slane %v6878_v5, %v10495_v33 }
 0x73b   : > { %6810 = vmatpush1.bf16.msra.mxu0 %v9077_v9  ;;  %v6887_v9 = vrot.slane %v6878_v5, %v10498_v38 }
 0x73c   : > { %6811 = vmatprep.subr.bf16.mxu0 %v9082_v61 }
 0x73f   : > { %6812 = vmatpush1.bf16.msra.mxu0 %v9080_v50 }
 0x742   : > { %6814 = vmatmul.mubr.bf16.vlgmr.msra.gmra.mrb[8].mxu0 %v10730_v62 }
 0x815   : > { %v6815_v40 = vpop.f32.mrb[8].mxu0 }
 0x816   : > { %v10739_v32 = vadd.f32 %v6815_v40, %v6005_v11  ;;  %v6817_v58 = vpop.f32.mrb[9].mxu0 }
 0x817   : > { %v10741_v12 = vadd.f32 %v6817_v58, %v6009_v20  ;;  %v6819_v45 = vpop.f32.mrb[10].mxu0 }
 0x818   : > { %v10743_v14 = vadd.f32 %v6819_v45, %v6005_v11  ;;  %v6821_v19 = vpop.f32.mrb[11].mxu0  ;;  %v6830_v52 = vmul.f32 %v10739_v32, %v10739_v32 }
 0x819   : > { %v10745_v63 = vadd.f32 %v6821_v19, %v6009_v20  ;;  %v6824_v62 = vadd.f32 %v10741_v12, %v10739_v32  ;;  %v6831_v25 = vmul.f32 %v10741_v12, %v10741_v12 }
 0x81a   : > { %v6832_v17 = vmul.f32 %v10743_v14, %v10743_v14 }
 0x81b   : > { %6825 = vadd.xlane.f32.xlu0 %v6824_v62  ;;  %v6827_v34 = vadd.f32 %v10745_v63, %v10743_v14  ;;  %v6833_v47 = vmul.f32 %v10745_v63, %v10745_v63  ;;  %v6834_v46 = vadd.f32 %v6831_v25, %v6830_v52 }
 0x81d   : > { %6828 = vadd.xlane.f32.xlu1 %v6827_v34  ;;  %v6837_v6 = vadd.f32 %v6833_v47, %v6832_v17 }
 0x81f   : > { %6835 = vadd.xlane.f32.xlu0 %v6834_v46 }
 0x821   : > { %6838 = vadd.xlane.f32.xlu1 %v6837_v6  ;;  %v8455_v6 = vld [vmem:[#allocation19] ss:$0 sm:$0xff] }
 0x8a8   : > { %v6826_v3 = vpop.xlane.xlu0 %6825 }
 0x8a9   : > { %v6840_v21 = vmul.f32 0.00390625, %v6826_v3  ;;  %v9105_v3 = vld [vmem:[%s10991_s24 + $0x30] sm:$0xff]  }
 0x8aa   : > { %v6829_v0 = vpop.xlane.xlu1 %6828 }
 0x8ab   : > { %v6841_v7 = vmul.f32 0.00390625, %v6829_v0  ;;  %v6844_v10 = vmul.f32 %v6840_v21, %v6840_v21  ;;  %v6850_v4 = vsub.f32 %v10739_v32, %v6840_v21  ;;  %v6851_v8 = vsub.f32 %v10741_v12, %v6840_v21  ;;  %v9106_v21 = vld [vmem:[%s10991_s24 + $0x38] sm:$0xff]  }
 0x8ac   : > { %v6836_v37 = vpop.xlane.xlu0 %6835 }
 0x8ad   : > { %v6842_v30 = vmul.f32 0.00390625, %v6836_v37  ;;  %v6845_v29 = vmul.f32 %v6841_v7, %v6841_v7  ;;  %v6852_v61 = vsub.f32 %v10743_v14, %v6841_v7  ;;  %v6853_v50 = vsub.f32 %v10745_v63, %v6841_v7 }
 0x8ae   : > { %v6839_v24 = vpop.xlane.xlu1 %6838 }
 0x8af   : > { %v6846_v51 = vsub.f32 %v6842_v30, %v6844_v10  ;;  %v6843_v2 = vmul.f32 0.00390625, %v6839_v24 }
 0x8b1   : > { %v6848_v41 = vmax.f32 %v6846_v51, 0.0  ;;  %v6847_v54 = vsub.f32 %v6843_v2, %v6845_v29 }
 0x8b3   : > { %v6854_v53 = vadd.f32 1e-05, %v6848_v41  ;;  %v6849_v60 = vmax.f32 %v6847_v54, 0.0 }
 0x8b5   : > { %9115 = vrsqrt.f32 %v6854_v53  ;;  %v6855_v23 = vadd.f32 1e-05, %v6849_v60 }
 0x8b7   : > { %9117 = vrsqrt.f32 %v6855_v23 }
 0x8bf   : > { %v9116_v44 = vpop.eup %9115 }
 0x8c0   : > { %v6859_v42 = vmul.f32 %v9116_v44, %v6851_v8  ;;  %v6858_v11 = vmul.f32 %v9116_v44, %v6850_v4 }
 0x8c1   : > { %v9118_v20 = vpop.eup %9117 }
 0x8c2   : > { %v6861_v40 = vmul.f32 %v9118_v20, %v6853_v50  ;;  %v6875_v32 = vmul.f32 %v6871_v56, %v6859_v42  ;;  %v6860_v58 = vmul.f32 %v9118_v20, %v6852_v61  ;;  %v6874_v12 = vmul.f32 %v6867_v36, %v6858_v11 }
 0x8c4   : > { %v6877_v45 = vmul.f32 %v6871_v56, %v6861_v40  ;;  %v6891_v19 = vadd.f32 %v6887_v9, %v6875_v32  ;;  %v6876_v62 = vmul.f32 %v6867_v36, %v6860_v58  ;;  %v6890_v52 = vadd.f32 %v6883_v27, %v6874_v12  ;;  %v8472_v36 = vld [vmem:[#allocation20] ss:$0 sm:$0xff]  ;;  %v8474_v12 = vld [vmem:[#allocation23] ss:$0 sm:$0xff] }
 0x8c6   : > { %v6893_v25 = vadd.f32 %v6887_v9, %v6877_v45  ;;  %v6892_v34 = vadd.f32 %v6883_v27, %v6876_v62  ;;  %v6895_v33 = vmax.f32 %v6891_v19, 0.0  ;;  %v6894_v38 = vmax.f32 %v6890_v52, 0.0  ;;  %v8473_v9 = vld [vmem:[#allocation22] ss:$0 sm:$0xff] }
 0x8c8   : > { %v6897_v17 = vmax.f32 %v6893_v25, 0.0  ;;  %v6896_v47 = vmax.f32 %v6892_v34, 0.0 }
 0x8ca   : > { %v6899_v14 = vpack.c.bf16 %v6897_v17, %v6895_v33  ;;  %v6898_v46 = vpack.c.bf16 %v6896_v47, %v6894_v38 }
 0x8cc   : > { %7067 = vmatprep.mubr.bf16.mxu1 %v6899_v14 }
 0x8cd   : > { %7068 = vmatmul.mubr.bf16.vlgmr.msra.gmra.mrb[12].mxu1 %v6898_v46 }
 0x8ce   : > { %8538 = vmatpush3.bf16.msra.mxu1 %v9099_v55  ;;  %8553 = vmatprep.mubr.msk.bf16.mxu1 %vm9763_vm0, %v9762_v49 }
 0x8cf   : > { %8539 = vmatprep.subr.bf16.mxu1 %v9762_v49 }
 0x8d2   : > { %8540 = vmatpush3.bf16.msra.mxu1 %v9100_v57 }
 0x8d3   : > { %8541 = vmatprep.subr.bf16.mxu1 %v9762_v49 }
 0x8d6   : > { %8542 = vmatpush3.bf16.msra.mxu1 %v9101_v59 }
 0x8d7   : > { %8543 = vmatprep.subr.bf16.mxu1 %v9762_v49 }
 0x8da   : > { %8544 = vmatpush3.bf16.msra.mxu1 %v9102_v16 }
 0x8db   : > { %8545 = vmatprep.subr.bf16.mxu1 %v9762_v49 }
 0x8de   : > { %8546 = vmatpush3.bf16.msra.mxu1 %v9103_v31 }
 0x8df   : > { %8547 = vmatprep.subr.bf16.mxu1 %v9762_v49 }
 0x8e2   : > { %8548 = vmatpush3.bf16.msra.mxu1 %v9104_v26 }
 0x8e3   : > { %8549 = vmatprep.subr.bf16.mxu1 %v9762_v49 }
 0x8e6   : > { %8550 = vmatpush3.bf16.msra.mxu1 %v9105_v3 }
 0x8e7   : > { %8551 = vmatprep.subr.bf16.mxu1 %v9762_v49 }
 0x8ea   : > { %8552 = vmatpush3.bf16.msra.mxu1 %v9106_v21 }
 0x8eb   : > { %8557 = vmatprep.subr.bf16.mxu1 %v9762_v49 }
 0x9a0   : > { %v8517_v63 = vpop.f32.mrb[12].mxu1 }
 0x9a1   : > { %v8518_v28 = vpop.f32.mrb[13].mxu1 }
 0x9a2   : > { %v8519_v22 = vadd.f32 %v8518_v28, %v8517_v63  ;;  %v8520_v13 = vpop.f32.mrb[14].mxu1  ;;  %v9107_v63 = vld [vmem:[#allocation28] sm:$0xff]   ;;  %v9109_v28 = vld [vmem:[#allocation28 + $0x10] sm:$0xff]  }
 0x9a3   : > { %v8521_v39 = vpop.f32.mrb[15].mxu1 }
 0x9a4   : > { %v7070_v15 = vadd.f32 %v8519_v22, %v8455_v6  ;;  %v8522_v48 = vadd.f32 %v8521_v39, %v8520_v13  ;;  %v9110_v22 = vld [vmem:[#allocation28 + $0x18] sm:$0xff]  }
 0x9a6   : > { %v7073_v35 = vadd.f32 %v8522_v48, %v8455_v6  ;;  %7076 = vadd.xlane.f32.xlu0 %v7070_v15  ;;  %v7080_v1 = vmul.f32 %v7070_v15, %v7070_v15  ;;  %v9108_v6 = vld [vmem:[#allocation28 + $0x8] sm:$0xff]  }
 0x9a8   : > { %7078 = vadd.xlane.f32.xlu1 %v7073_v35  ;;  %v7081_v18 = vmul.f32 %v7073_v35, %v7073_v35 }
 0x9aa   : > { %7082 = vadd.xlane.f32.xlu0 %v7080_v1 }
 0x9ac   : > { %7084 = vadd.xlane.f32.xlu1 %v7081_v18 }
 0xa33   : > { %v7077_v0 = vpop.xlane.xlu0 %7076 }
 0xa34   : > { %v7086_v7 = vmul.f32 0.0078125, %v7077_v0 }
 0xa35   : > { %v7079_v37 = vpop.xlane.xlu1 %7078 }
 0xa36   : > { %v7087_v10 = vmul.f32 0.0078125, %v7079_v37  ;;  %v7090_v24 = vmul.f32 %v7086_v7, %v7086_v7  ;;  %v7096_v4 = vsub.f32 %v7070_v15, %v7086_v7  ;;  %v8483_v37 = vld [vmem:[#allocation25] ss:$0 sm:$0xff] }
 0xa37   : > { %v7083_v30 = vpop.xlane.xlu0 %7082 }
 0xa38   : > { %v7088_v51 = vmul.f32 0.0078125, %v7083_v30  ;;  %v7091_v2 = vmul.f32 %v7087_v10, %v7087_v10  ;;  %v7097_v56 = vsub.f32 %v7073_v35, %v7087_v10 }
 0xa39   : > { %v7085_v29 = vpop.xlane.xlu1 %7084 }
 0xa3a   : > { %v7092_v41 = vsub.f32 %v7088_v51, %v7090_v24  ;;  %v7089_v54 = vmul.f32 0.0078125, %v7085_v29  ;;  %v8484_v51 = vld [vmem:[#allocation26] ss:$0 sm:$0xff] }
 0xa3c   : > { %v7094_v53 = vmax.f32 %v7092_v41, 0.0  ;;  %v7093_v60 = vsub.f32 %v7089_v54, %v7091_v2 }
 0xa3e   : > { %v7098_v23 = vadd.f32 1e-05, %v7094_v53  ;;  %v7095_v43 = vmax.f32 %v7093_v60, 0.0 }
 0xa40   : > { %9119 = vrsqrt.f32 %v7098_v23  ;;  %v7099_v5 = vadd.f32 1e-05, %v7095_v43 }
 0xa42   : > { %9121 = vrsqrt.f32 %v7099_v5  ;;  %v8485_v5 = vld [vmem:[#allocation29] ss:$0 sm:$0xff] }
 0xa4a   : > { %v9120_v8 = vpop.eup %9119 }
 0xa4b   : > { %v7102_v44 = vmul.f32 %v9120_v8, %v7096_v4 }
 0xa4c   : > { %v9122_v27 = vpop.eup %9121 }
 0xa4d   : > { %v7103_v61 = vmul.f32 %v9122_v27, %v7097_v56  ;;  %v7111_v50 = vmul.f32 %v8472_v36, %v7102_v44 }
 0xa4f   : > { %v7112_v42 = vmul.f32 %v8472_v36, %v7103_v61  ;;  %v7120_v11 = vadd.f32 %v8473_v9, %v7111_v50 }
 0xa51   : > { %v7121_v20 = vadd.f32 %v8473_v9, %v7112_v42  ;;  %v7122_v40 = vmax.f32 %v7120_v11, 0.0 }
 0xa53   : > { %v7123_v32 = vmax.f32 %v7121_v20, 0.0 }
 0xa55   : > { %v7124_v58 = vpack.c.bf16 %v7123_v32, %v7122_v40 }
 0xa57   : > { %8554 = vmatmul.mubr.bf16.vlgmr.msra.gmra.mrb[16].mxu1 %v7124_v58 }
 0xa58   : > { %8565 = vmatprep.mubr.msk.bf16.mxu1 %vm9763_vm0, %v9762_v49  ;;  %8558 = vmatpush3.bf16.msra.mxu1 %v9107_v63 }
 0xa59   : > { %8559 = vmatprep.subr.bf16.mxu1 %v9762_v49 }
 0xa5c   : > { %8560 = vmatpush3.bf16.msra.mxu1 %v9108_v6 }
 0xa5d   : > { %8561 = vmatprep.subr.bf16.mxu1 %v9762_v49 }
 0xa60   : > { %8562 = vmatpush3.bf16.msra.mxu1 %v9109_v28 }
 0xa61   : > { %8563 = vmatprep.subr.bf16.mxu1 %v9762_v49 }
 0xa64   : > { %8564 = vmatpush3.bf16.msra.mxu1 %v9110_v22 }
 0xb2a   : > { %v7230_v45 = vpop.f32.mrb[16].mxu1 }
 0xb2b   : > { %v7231_v19 = vadd.f32 %v8474_v12, %v7230_v45  ;;  %v8555_v62 = vpop.f32.mrb[17].mxu1 }
 0xb2c   : > { %v7233_v52 = vpop.f32.mrb[18].mxu1 }
 0xb2d   : > { %v7234_v25 = vadd.f32 %v8474_v12, %v7233_v52  ;;  %v8556_v34 = vpop.f32.mrb[19].mxu1  ;;  %v7238_v33 = vsel %vm7237_vm1, %v7231_v19, 0.0  ;;  %v7244_v17 = vmul.f32 %v7231_v19, %v7231_v19 }
 0xb2e   : > { %7239 = vadd.xlane.f32.xlu0 %v7238_v33 }
 0xb2f   : > { %v7241_v38 = vsel %vm7237_vm1, %v7234_v25, 0.0  ;;  %v7245_v47 = vmul.f32 %v7234_v25, %v7234_v25  ;;  %v7246_v14 = vsel %vm7237_vm1, %v7244_v17, 0.0 }
 0xb30   : > { %7242 = vadd.xlane.f32.xlu1 %v7241_v38 }
 0xb31   : > { %v7249_v46 = vsel %vm7237_vm1, %v7245_v47, 0.0 }
 0xb32   : > { %7247 = vadd.xlane.f32.xlu0 %v7246_v14 }
 0xb34   : > { %7250 = vadd.xlane.f32.xlu1 %v7249_v46 }
 0xbbb   : > { %v7240_v13 = vpop.xlane.xlu0 %7239 }
 0xbbc   : > { %v7252_v39 = vmul.f32 0.015625, %v7240_v13 }
 0xbbd   : > { %v7243_v15 = vpop.xlane.xlu1 %7242 }
 0xbbe   : > { %v7253_v48 = vmul.f32 0.015625, %v7243_v15  ;;  %v7256_v1 = vmul.f32 %v7252_v39, %v7252_v39  ;;  %v7262_v49 = vsub.f32 %v7231_v19, %v7252_v39 }
 0xbbf   : > { %v7248_v35 = vpop.xlane.xlu0 %7247 }
 0xbc0   : > { %v7254_v18 = vmul.f32 0.015625, %v7248_v35  ;;  %v7257_v57 = vmul.f32 %v7253_v48, %v7253_v48  ;;  %v7263_v10 = vsub.f32 %v7234_v25, %v7253_v48 }
 0xbc1   : > { %v7251_v55 = vpop.xlane.xlu1 %7250 }
 0xbc2   : > { %v7258_v59 = vsub.f32 %v7254_v18, %v7256_v1  ;;  %v7255_v16 = vmul.f32 0.015625, %v7251_v55 }
 0xbc4   : > { %v7260_v31 = vmax.f32 %v7258_v59, 0.0  ;;  %v7259_v26 = vsub.f32 %v7255_v16, %v7257_v57 }
 0xbc6   : > { %v7264_v3 = vadd.f32 1e-05, %v7260_v31  ;;  %v7261_v21 = vmax.f32 %v7259_v26, 0.0 }
 0xbc8   : > { %9123 = vrsqrt.f32 %v7264_v3  ;;  %v7265_v0 = vadd.f32 1e-05, %v7261_v21 }
 0xbca   : > { %9125 = vrsqrt.f32 %v7265_v0 }
 0xbd2   : > { %v9124_v7 = vpop.eup %9123 }
 0xbd3   : > { %v7268_v30 = vmul.f32 %v9124_v7, %v7262_v49 }
 0xbd4   : > { %v9126_v24 = vpop.eup %9125 }
 0xbd5   : > { %v7277_v29 = vmul.f32 %v8483_v37, %v7268_v30  ;;  %v7269_v2 = vmul.f32 %v9126_v24, %v7263_v10 }
 0xbd7   : > { %v7286_v41 = vadd.f32 %v8484_v51, %v7277_v29  ;;  %v7278_v54 = vmul.f32 %v8483_v37, %v7269_v2 }
 0xbd9   : > { %v7288_v53 = vmax.f32 %v7286_v41, 0.0  ;;  %v7287_v60 = vadd.f32 %v8484_v51, %v7278_v54 }
 0xbdb   : > { %7376 = vrot.lane.b32.xlu0 %v7288_v53, %s9764_s28  ;;  %v7289_v23 = vmax.f32 %v7287_v60, 0.0 }
 0xbdd   : > { %7378 = vrot.lane.b32.xlu1 %v7289_v23, %s9764_s28  ;;  %v7290_v43 = vpack.c.bf16 %v7289_v23, %v7288_v53 }
 0xbdf   : > { %8566 = vmatmul.mubr.msk.bf16.vlgmr.msra.gmra.mrb[20].mxu1 %vm7237_vm1, %v7290_v43 }
 0xc4d   : > { %v7377_v56 = vpop.permute.xlu0 %7376 }
 0xc4f   : > { %v7379_v50 = vpop.permute.xlu1 %7378 }
 0xcb2   : > { %v7367_v4 = vpop.f32.mrb[20].mxu1  ;;  %7393 = sbr.rel (!%p10993_p3) target bundleno = 3287 (0xcd7), region = 172 }
 0xcb3   : > { %v7368_v8 = vadd.f32 %v8485_v5, %v7367_v4  ;;  %v8567_v36 = vpop.f32.mrb[21].mxu1 }
 0xcb4   : > { %v7370_v44 = vpop.f32.mrb[22].mxu1 }
 0xcb5   : > { %v7382_v27 = vsel %vm7237_vm1, %v7368_v8, %v7377_v56  ;;  %v7371_v9 = vadd.f32 %v8485_v5, %v7370_v44  ;;  %v8568_v61 = vpop.f32.mrb[23].mxu1 }
 0xcb6   : > { %7384 = vst [vmem:[%s849_s27] sm:$0xff] %v7382_v27 }
 0xcb7   : > { %v7383_v42 = vsel %vm7237_vm1, %v7371_v9, %v7379_v50 }
 0xcb8   : > { %7385 = vst [vmem:[%s849_s27 + $0x8] sm:$0xff] %v7383_v42 }
 0xcb9   : > { %s11008_s22 = smov (!%p7396_p6, %s7395_s22), 2 }
 0xcba   : > { %s10819_s26 = sshll.u32 %s11008_s22, 7 }
 0xcbb   : > { %s7400_s4 = ssub.s32 256, %s10819_s26 }
 0xcbc   : > { %7401 = vsyncadd %s10925_s3, %s7400_s4  ;;  %p8494_p5 = scmp.ne.s32.totalorder %s10819_s26, 0  ;;  %s8500_s30 = sshll.u32 %s10994_s20, 8 }
 0xcbd   : > { %s10995_s18 = sld [smem:[#allocation62_spill]]  ;;  %s7406_s2 = sshll.u32 %s849_s27, 4  ;;  %s10831_s2 = int_to_ptr.vmem [resolvable:$true] %s7406_s2 }
 0xcbe   : > { %s9632_s22 = scalar_lea.vmem %s10831_s2, %s10819_s26  ;;  %s9765_s4 = smov [#allocation31]  }
 0xcbf   : > { %p9633_p11 = scmp.ne.s32.totalorder %s10831_s2, %s9632_s22  ;;  %s9636_s3 = sshll.u32 %s9765_s4, 4  ;;  %s9637_s3 = int_to_ptr.vmem [resolvable:$false] %s9636_s3 }
 0xcc0   : > { %s9638_s20 = scalar_lea.vmem %s9637_s3, 512  ;;  %p9639_p12 = scmp.lt.s32.totalorder %s10831_s2, %s9637_s3 }
 0xcc1   : > { %p9634_p13 = pnand %p9633_p11, %p8494_p5  ;;  %p9640_p7 = scmp.lt.s32.totalorder %s9638_s20, %s9632_s22 }
 0xcc3   : > { %s10829_s21 = scalar_lea.hbm %s10995_s18, %s8500_s30  ;;  %p9635_p0 = pneg %p9634_p13 }
 0xcc4   : > { %p9641_p2 = por %p9640_p7, %p9639_p12 }
 0xcc6   : > { %p9642_p8 = pnand %p9641_p2, %p9635_p0 }
 0xcc8   : > { %9645 = shalt.err (!%p9642_p8)
}
 0xcc9   : > { %s9646_s27 = scalar_lea.hbm %s10829_s21, %s10819_s26  ;;  %s9650_s28 = scalar_lea.hbm %s10995_s18, 384 }
 0xcca   : > { %p9647_p9 = scmp.ne.s32.totalorder %s10829_s21, %s9646_s27  ;;  %p9651_p3 = scmp.lt.u32.totalorder %s10829_s21, %s10995_s18 }
 0xccb   : > { %p9652_p6 = scmp.lt.u32.totalorder %s9650_s28, %s9646_s27  ;;  %p9654_p13 = scmp.lt.u32.totalorder %s9646_s27, %s10829_s21 }
 0xccc   : > { %p9648_p10 = pnand %p9647_p9, %p8494_p5 }
 0xccd   : > { %p9653_p11 = por %p9652_p6, %p9651_p3 }
 0xcce   : > { %p9649_p1 = pneg %p9648_p10 }
 0xccf   : > { %p9655_p0 = por %p9654_p13, %p9653_p11 }
 0xcd1   : > { %p9656_p12 = pnand %p9655_p0, %p9649_p1 }
 0xcd3   : > { %9659 = shalt.err (!%p9656_p12)
}
 0xcd4   : > { %s9766_s4 = smov 128   ;;  %s9767_s20 = smov 8  }
 0xcd5   : > { %s10996_s30 = scalar_lea.sflag [#allocation4], %s10368_s0 }
 0xcd6   : > { %7412 = dma.vmem_to_hbm [thread:$0]  (%p8494_p5), %s10831_s2, %s10819_s26, %s10829_s21, %s10996_s30, %s9766_s4, %s9766_s4, %s9767_s20  }
 0xcd7 PF: > { %s10997_s1 = sld [smem:[#allocation43_spill]]  ;;  %s10998_s3 = sld [smem:[#allocation53_spill]] }
 0xcdd   : > { %s7421_s22 = sand.u32 1, %s10997_s1   ;;  %p11000_p7 = scmp.ne.s32.totalorder %s10998_s3, 0 }
 0xcde   : > { %s7422_s27 = scalar_lea.sflag [#allocation4], %s7421_s22 }
 0xcdf   : > { %p8791_p2 = pnand %p7660_p4, %p11000_p7 }
 0xce1   : > { %9717 = dma.done.wait (!%p8791_p2), %s7422_s27, 256  }
 0xce2   : > { %9719 = vsyncadd (!%p8791_p2), %s7422_s27, 4294967040  ;;  %s11001_s21 = sld [smem:[#allocation48_spill]]  ;;  %s11002_s0 = sld [smem:[#allocation44_spill]] }
 0xce3   : > { %s11003_s30 = sld [smem:[#allocation45_spill]]  ;;  %s11004_s20 = sld [smem:[#allocation49_spill]] }
 0xce8   : > { %p41_p8 = scmp.ge.s32.totalorder %s11001_s21, 4  }
 0xcea   :  { %43 = sbr.rel (!%p41_p8) target bundleno = 23 (0x17), region = 209 }
 0xcf1   :  { %7427 = vsyncpa [#allocation3], 1 }
 0xcf2   :  { %7429 = vsyncpa [#allocation3 + $0x1], 1 }
 0xcf3   :  { %7430 = vsyncpa [#allocation6], 1 }
 0xcf4   :  { %7431 = vsyncpa [#allocation9], 1 }
 0xcf5   :  { %7432 = vsyncpa [#allocation12], 1 }
 0xcf6   :  { %7433 = vsyncpa [#allocation15], 1 }
 0xcf7   :  { %7434 = vsyncpa [#allocation18], 1 }
 0xcf8   :  { %7435 = vsyncpa [#allocation21], 1 }
 0xcf9   :  { %7436 = vsyncpa [#allocation24], 1 }
 0xcfa   :  { %7437 = vsyncpa [#allocation27], 1 }
 0xcfb   :  { %7438 = vsyncpa [#allocation30], 1 }
 0xcfc   :  { %7439 = vsyncpa [#allocation4], 1 }
 0xcfd   :  { %7441 = vsyncpa [#allocation4 + $0x1], 1 }

</bundles_post_ra>
